<compile_context>
chip_gen: v7x
topology: tpu7x:2x2x1
jax: 0.10.0
libtpu: 0.0.40
codegen_flags: <defaults>
</compile_context>

<pallas_src>
import math
from functools import partial

import jax
import jax.numpy as jnp
from jax import lax
from jax.experimental import pallas as pl
from jax.experimental.pallas import tpu as pltpu

# "Contract on the last dim of both operands" == A @ B.T without any transpose.
_CONTRACT_LAST = (((1,), (1,)), ((), ()))


def _largest_divisor_block(total, max_block, quantum=8):
    """Largest divisor of `total` <= max_block that is a multiple of `quantum`
    (falls back to `total` itself so the (8,128) block rule always holds)."""
    if total <= max_block:
        return total
    for cand in range(max_block, quantum - 1, -1):
        if total % cand == 0 and cand % quantum == 0:
            return cand
    return total


def _pick_head_group(n_head, head_dim, target_lanes=128):
    """Heads per grid step so a group spans ~128 lanes (and divides n_head)."""
    g = max(1, min(n_head, target_lanes // max(head_dim, 1)))
    while n_head % g != 0:
        g -= 1
    return g


def _vmem_limit_bytes(T, D, block_q, n_groups, gdh, compute_bytes, out_bytes):
    weights = 4 * n_groups * gdh * D * compute_bytes          # Wq/Wk/Wv/Wo.T resident
    x_block = T * D * compute_bytes
    o_block = block_q * D * out_bytes
    av_scratch = n_groups * block_q * gdh * compute_bytes
    live = (3 * block_q * T + 2 * T * gdh + 4 * block_q * gdh + block_q * D) * 4
    total = 2 * (weights + x_block + o_block) + av_scratch + live
    return int(min(1.5 * total + (8 << 20), 64 << 20))        # v7x-safe cap


def mha_kernel(x_ref, wq_ref, wk_ref, wv_ref, wot_ref, bq_ref, bv_ref, bo_ref,
               o_ref, av_ref, *, block_q, group_heads, head_dim, compute_dtype):
    """One (batch b, q-tile qt, head-group hg) grid step.

    Ref shapes (leading Squeezed grid dims removed):
      x_ref   : (T, D)               bf16 activations (resident per batch)
      wq_ref  : (n_groups, Gdh, D)   bf16, pre-scaled by 1/sqrt(dh), resident
      wk_ref  : (n_groups, Gdh, D)   bf16, resident
      wv_ref  : (n_groups, Gdh, D)   bf16, resident
      wot_ref : (n_groups, Gdh, D)   bf16 rows of Wo.T, resident
      bq_ref  : (n_groups, 1, Gdh)   f32, pre-scaled, resident
      bv_ref  : (n_groups, 1, Gdh)   f32, resident
      bo_ref  : (1, D)               f32, resident
      o_ref   : (block_q, D)         output tile for (b, qt)
      av_ref  : (n_groups, block_q, Gdh) bf16 scratch (resident across hg)
    """
    qt = pl.program_id(1)
    hg = pl.program_id(2)
    n_groups = pl.num_programs(2)
    gdh = group_heads * head_dim

    q_start = pl.multiple_of(qt * block_q, block_q)
    xq = x_ref[pl.ds(q_start, block_q), :]            # (block_q, D) bf16
    x_all = x_ref[...]                                # (T, D)      bf16

    wq_g = wq_ref[hg]                                 # (Gdh, D) bf16
    wk_g = wk_ref[hg]
    wv_g = wv_ref[hg]

    # Per-group projections: x @ W_g.T (contract-on-last, no transpose),
    # bf16 MXU operands with f32 accumulation.  Softmax scale is pre-folded
    # into wq/bq in the wrapper.
    qh = lax.dot_general(xq, wq_g, _CONTRACT_LAST,
                         preferred_element_type=jnp.float32) + bq_ref[hg]
    kh = lax.dot_general(x_all, wk_g, _CONTRACT_LAST,
                         preferred_element_type=jnp.float32)
    vh = lax.dot_general(x_all, wv_g, _CONTRACT_LAST,
                         preferred_element_type=jnp.float32) + bv_ref[hg]

    qh = qh.astype(compute_dtype)                     # (block_q, Gdh)
    kh = kh.astype(compute_dtype)                     # (T, Gdh)
    vh = vh.astype(compute_dtype)                     # (T, Gdh)

    # Per-head attention inside the group (G small, statically unrolled).
    avs = []
    for g in range(group_heads):
        lo = g * head_dim
        q_g = qh[:, lo:lo + head_dim]
        k_g = kh[:, lo:lo + head_dim]
        v_g = vh[:, lo:lo + head_dim]
        s = lax.dot_general(q_g, k_g, _CONTRACT_LAST,
                            preferred_element_type=jnp.float32)   # (block_q, T)
        m = jnp.max(s, axis=-1, keepdims=True)
        p = jnp.exp(s - m)
        denom = jnp.sum(p, axis=-1, keepdims=True)
        p = (p * pl.reciprocal(denom, approx=True)).astype(compute_dtype)
        avs.append(jnp.dot(p, v_g, preferred_element_type=jnp.float32))
    group_av = avs[0] if group_heads == 1 else jnp.concatenate(avs, axis=-1)

    # One store per group into the bf16 slab (no f32 accumulator RMW).
    av_ref[hg] = group_av.astype(compute_dtype)

    # Single output-projection pass at the last head-group step.
    @pl.when(hg == n_groups - 1)
    def _():
        out = jnp.dot(av_ref[0], wot_ref[0], preferred_element_type=jnp.float32)
        for g in range(1, av_ref.shape[0]):           # static unroll over groups
            out = out + jnp.dot(av_ref[g], wot_ref[g],
                                preferred_element_type=jnp.float32)
        o_ref[...] = (out + bo_ref[...]).astype(o_ref.dtype)


def multi_head_attention(x, params, n_head, *, block_q=256,
                         compute_dtype=jnp.bfloat16, out_dtype=None):
    """x: (B, T, D). params: PyTorch-layout (out, in) weights / (out,) biases."""
    B, T, D = x.shape
    assert D % n_head == 0
    dh = D // n_head
    G = _pick_head_group(n_head, dh)                  # heads per grid step
    gdh = G * dh
    n_groups = n_head // G
    bq_blk = _largest_divisor_block(T, block_q)       # q-tile length
    nqt = T // bq_blk
    out_dtype = x.dtype if out_dtype is None else out_dtype

    f32 = jnp.float32
    cd = compute_dtype
    scale = 1.0 / math.sqrt(dh)

    # One-time weight prep outside the kernel (bf16, scale folded, Wo.T once).
    wq_r = (params["wq"].astype(f32) * scale).astype(cd).reshape(n_groups, gdh, D)
    wk_r = params["wk"].astype(cd).reshape(n_groups, gdh, D)
    wv_r = params["wv"].astype(cd).reshape(n_groups, gdh, D)
    wot_r = params["wo"].astype(cd).T.reshape(n_groups, gdh, D)   # rows of Wo.T
    bq_r = (params["bq"].astype(f32) * scale).reshape(n_groups, 1, gdh)
    bv_r = params["bv"].astype(f32).reshape(n_groups, 1, gdh)
    bo2 = params["bo"].astype(f32).reshape(1, D)
    x_c = x.astype(cd)

    x_spec = pl.BlockSpec((pl.Squeezed(), T, D), lambda b, qt, hg: (b, 0, 0))
    w_spec = pl.BlockSpec((n_groups, gdh, D), lambda b, qt, hg: (0, 0, 0))
    bh_spec = pl.BlockSpec((n_groups, 1, gdh), lambda b, qt, hg: (0, 0, 0))
    bo_spec = pl.BlockSpec((1, D), lambda b, qt, hg: (0, 0))
    out_spec = pl.BlockSpec((pl.Squeezed(), bq_blk, D), lambda b, qt, hg: (b, qt, 0))

    kernel = partial(mha_kernel, block_q=bq_blk, group_heads=G, head_dim=dh,
                     compute_dtype=cd)

    vmem_limit = _vmem_limit_bytes(T, D, bq_blk, n_groups, gdh,
                                   compute_bytes=jnp.dtype(cd).itemsize,
                                   out_bytes=jnp.dtype(out_dtype).itemsize)

    return pl.pallas_call(
        kernel,
        out_shape=jax.ShapeDtypeStruct((B, T, D), out_dtype),
        grid_spec=pltpu.PrefetchScalarGridSpec(
            num_scalar_prefetch=0,
            grid=(B, nqt, n_groups),          # head-group axis last = reduction
            in_specs=[x_spec,
                      w_spec, w_spec, w_spec,  # Wq, Wk, Wv (resident)
                      w_spec,                  # Wo.T rows (resident)
                      bh_spec, bh_spec,        # bq (scaled), bv (resident)
                      bo_spec],                # bo (resident)
            out_specs=out_spec,
            scratch_shapes=[pltpu.VMEM((n_groups, bq_blk, gdh), cd)],
        ),
        compiler_params=pltpu.CompilerParams(
            dimension_semantics=("parallel", "parallel", "arbitrary"),
            vmem_limit_bytes=vmem_limit,
        ),
    )(x_c, wq_r, wk_r, wv_r, wot_r, bq_r, bv_r, bo2)


def reference_mha(x, params, n_head):
    """Pure-JAX f32 reference mirroring the PyTorch module (SDPA, no mask)."""
    B, T, D = x.shape
    dh = D // n_head
    q = x @ params["wq"].T + params["bq"]
    k = x @ params["wk"].T
    v = x @ params["wv"].T + params["bv"]

    def split(t):
        return t.reshape(B, T, n_head, dh).transpose(0, 2, 1, 3)   # (B,H,T,dh)

    qh, kh, vh = split(q), split(k), split(v)
    s = jnp.einsum("bhqd,bhkd->bhqk", qh, kh) / math.sqrt(dh)
    p = jax.nn.softmax(s, axis=-1)
    a = jnp.einsum("bhqk,bhkd->bhqd", p, vh)
    a = a.transpose(0, 2, 1, 3).reshape(B, T, D)
    return a @ params["wo"].T + params["bo"]


if __name__ == "__main__":
    # Whisper-small attention config (n_state=512, n_head=8 -> dh=64), short
    # sequence.  block_q=128 forces two q-tiles and four head-groups of two
    # heads each, exercising every code path at real (8,128)-tile layouts.
    B, T, D, H = 2, 256, 512, 8

    key = jax.random.PRNGKey(0)
    ks = jax.random.split(key, 8)
    scale = 0.05
    params = {
        "wq": scale * jax.random.normal(ks[0], (D, D), jnp.float32),
        "bq": scale * jax.random.normal(ks[1], (D,), jnp.float32),
        "wk": scale * jax.random.normal(ks[2], (D, D), jnp.float32),
        "wv": scale * jax.random.normal(ks[3], (D, D), jnp.float32),
        "bv": scale * jax.random.normal(ks[4], (D,), jnp.float32),
        "wo": scale * jax.random.normal(ks[5], (D, D), jnp.float32),
        "bo": scale * jax.random.normal(ks[6], (D,), jnp.float32),
    }
    x = jax.random.normal(ks[7], (B, T, D), jnp.float32)

    out = multi_head_attention(x, params, H, block_q=128)
    out = jax.block_until_ready(out)

    ref = reference_mha(x, params, H)
    assert out.shape == (B, T, D)
    max_err = jnp.max(jnp.abs(out - ref))
    # bf16 MXU operands + approx reciprocal => looser tolerance than pure f32.
    assert jnp.allclose(out, ref, rtol=5e-2, atol=3e-2), f"max abs err {max_err}"

    print("KERNEL_OK")
</pallas_src>

<mosaic_0001>
module attributes {stable_mosaic.version = 11 : i64} {
  func.func @mha_kernel(%arg0: i32, %arg1: i32, %arg2: i32, %arg3: memref<1x256x512xbf16, #tpu.memory_space<vmem>>, %arg4: memref<4x128x512xbf16, #tpu.memory_space<vmem>>, %arg5: memref<4x128x512xbf16, #tpu.memory_space<vmem>>, %arg6: memref<4x128x512xbf16, #tpu.memory_space<vmem>>, %arg7: memref<4x128x512xbf16, #tpu.memory_space<vmem>>, %arg8: memref<4x1x128xf32, #tpu.memory_space<vmem>>, %arg9: memref<4x1x128xf32, #tpu.memory_space<vmem>>, %arg10: memref<1x512xf32, #tpu.memory_space<vmem>>, %arg11: memref<1x128x512xf32, #tpu.memory_space<vmem>>, %arg12: memref<4x128x128xbf16, #tpu.memory_space<vmem>>) attributes {dimension_semantics = [#tpu.dimension_semantics<parallel>, #tpu.dimension_semantics<parallel>, #tpu.dimension_semantics<arbitrary>], iteration_bounds = array<i64: 2, 2, 4>, scalar_prefetch = 0 : i64, scratch_operands = 1 : i64, tpu.core_type = #tpu.core_type<tc>, window_params = [{transform_indices = @transform_0, window_bounds = array<i64: 1, 256, 512>}, {pipeline_mode = #tpu.pipeline_mode<synchronous>, transform_indices = @transform_1, window_bounds = array<i64: 4, 128, 512>}, {pipeline_mode = #tpu.pipeline_mode<synchronous>, transform_indices = @transform_2, window_bounds = array<i64: 4, 128, 512>}, {pipeline_mode = #tpu.pipeline_mode<synchronous>, transform_indices = @transform_3, window_bounds = array<i64: 4, 128, 512>}, {pipeline_mode = #tpu.pipeline_mode<synchronous>, transform_indices = @transform_4, window_bounds = array<i64: 4, 128, 512>}, {pipeline_mode = #tpu.pipeline_mode<synchronous>, transform_indices = @transform_5, window_bounds = array<i64: 4, 1, 128>}, {pipeline_mode = #tpu.pipeline_mode<synchronous>, transform_indices = @transform_6, window_bounds = array<i64: 4, 1, 128>}, {pipeline_mode = #tpu.pipeline_mode<synchronous>, transform_indices = @transform_7, window_bounds = array<i64: 1, 512>}, {transform_indices = @transform_8, window_bounds = array<i64: 1, 128, 512>}]} {
    %c128_i32 = arith.constant 128 : i32
    %0 = arith.muli %arg1, %c128_i32 : i32
    %1 = tpu.assume_multiple %0, 128 : i32
    %c0 = arith.constant 0 : index
    %2 = arith.index_cast %1 : i32 to index
    %c0_0 = arith.constant 0 : index
    %3 = vector.load %arg3[%c0, %2, %c0_0] : memref<1x256x512xbf16, #tpu.memory_space<vmem>>, vector<1x128x512xbf16>
    %4 = vector.shape_cast %3 : vector<1x128x512xbf16> to vector<128x512xbf16>
    %c0_1 = arith.constant 0 : index
    %c0_2 = arith.constant 0 : index
    %c0_3 = arith.constant 0 : index
    %5 = vector.load %arg3[%c0_1, %c0_2, %c0_3] : memref<1x256x512xbf16, #tpu.memory_space<vmem>>, vector<1x256x512xbf16>
    %6 = vector.shape_cast %5 : vector<1x256x512xbf16> to vector<256x512xbf16>
    %7 = arith.index_cast %arg2 : i32 to index
    %c0_4 = arith.constant 0 : index
    %c0_5 = arith.constant 0 : index
    %8 = vector.load %arg4[%7, %c0_4, %c0_5] : memref<4x128x512xbf16, #tpu.memory_space<vmem>>, vector<1x128x512xbf16>
    %9 = vector.shape_cast %8 : vector<1x128x512xbf16> to vector<128x512xbf16>
    %10 = arith.index_cast %arg2 : i32 to index
    %c0_6 = arith.constant 0 : index
    %c0_7 = arith.constant 0 : index
    %11 = vector.load %arg5[%10, %c0_6, %c0_7] : memref<4x128x512xbf16, #tpu.memory_space<vmem>>, vector<1x128x512xbf16>
    %12 = vector.shape_cast %11 : vector<1x128x512xbf16> to vector<128x512xbf16>
    %13 = arith.index_cast %arg2 : i32 to index
    %c0_8 = arith.constant 0 : index
    %c0_9 = arith.constant 0 : index
    %14 = vector.load %arg6[%13, %c0_8, %c0_9] : memref<4x128x512xbf16, #tpu.memory_space<vmem>>, vector<1x128x512xbf16>
    %15 = vector.shape_cast %14 : vector<1x128x512xbf16> to vector<128x512xbf16>
    %cst = arith.constant dense<0.000000e+00> : vector<128x128xf32>
    %16 = tpu.matmul %4, %9, %cst {dimension_numbers = #tpu.dot_dimension_numbers<[1], [1], [0], [0], [0, 0, 1, 0], [], []>} : vector<128x512xbf16>, vector<128x512xbf16>, vector<128x128xf32> -> vector<128x128xf32>
    %17 = arith.index_cast %arg2 : i32 to index
    %c0_10 = arith.constant 0 : index
    %c0_11 = arith.constant 0 : index
    %18 = vector.load %arg8[%17, %c0_10, %c0_11] : memref<4x1x128xf32, #tpu.memory_space<vmem>>, vector<1x1x128xf32>
    %19 = vector.shape_cast %18 : vector<1x1x128xf32> to vector<1x128xf32>
    %20 = vector.broadcast %19 : vector<1x128xf32> to vector<128x128xf32>
    %21 = arith.addf %16, %20 : vector<128x128xf32>
    %cst_12 = arith.constant dense<0.000000e+00> : vector<256x128xf32>
    %22 = tpu.matmul %6, %12, %cst_12 {dimension_numbers = #tpu.dot_dimension_numbers<[1], [1], [0], [0], [0, 0, 1, 0], [], []>} : vector<256x512xbf16>, vector<128x512xbf16>, vector<256x128xf32> -> vector<256x128xf32>
    %cst_13 = arith.constant dense<0.000000e+00> : vector<256x128xf32>
    %23 = tpu.matmul %6, %15, %cst_13 {dimension_numbers = #tpu.dot_dimension_numbers<[1], [1], [0], [0], [0, 0, 1, 0], [], []>} : vector<256x512xbf16>, vector<128x512xbf16>, vector<256x128xf32> -> vector<256x128xf32>
    %24 = arith.index_cast %arg2 : i32 to index
    %c0_14 = arith.constant 0 : index
    %c0_15 = arith.constant 0 : index
    %25 = vector.load %arg9[%24, %c0_14, %c0_15] : memref<4x1x128xf32, #tpu.memory_space<vmem>>, vector<1x1x128xf32>
    %26 = vector.shape_cast %25 : vector<1x1x128xf32> to vector<1x128xf32>
    %27 = vector.broadcast %26 : vector<1x128xf32> to vector<256x128xf32>
    %28 = arith.addf %23, %27 : vector<256x128xf32>
    %29 = arith.truncf %21 : vector<128x128xf32> to vector<128x128xbf16>
    %30 = arith.truncf %22 : vector<256x128xf32> to vector<256x128xbf16>
    %31 = arith.truncf %28 : vector<256x128xf32> to vector<256x128xbf16>
    %32 = vector.extract_strided_slice %29 {offsets = [0, 0], sizes = [128, 64], strides = [1, 1]} : vector<128x128xbf16> to vector<128x64xbf16>
    %33 = vector.extract_strided_slice %30 {offsets = [0, 0], sizes = [256, 64], strides = [1, 1]} : vector<256x128xbf16> to vector<256x64xbf16>
    %34 = vector.extract_strided_slice %31 {offsets = [0, 0], sizes = [256, 64], strides = [1, 1]} : vector<256x128xbf16> to vector<256x64xbf16>
    %cst_16 = arith.constant dense<0.000000e+00> : vector<128x256xf32>
    %35 = tpu.matmul %32, %33, %cst_16 {dimension_numbers = #tpu.dot_dimension_numbers<[1], [1], [0], [0], [0, 0, 1, 0], [], []>} : vector<128x64xbf16>, vector<256x64xbf16>, vector<128x256xf32> -> vector<128x256xf32>
    %cst_17 = arith.constant dense<0xFF800000> : vector<128xf32>
    %36 = vector.multi_reduction <maximumf>, %35, %cst_17 [1] : vector<128x256xf32> to vector<128xf32>
    %37 = vector.shape_cast %36 : vector<128xf32> to vector<128x1xf32>
    %38 = vector.broadcast %37 : vector<128x1xf32> to vector<128x256xf32>
    %39 = arith.subf %35, %38 : vector<128x256xf32>
    %40 = math.exp %39 : vector<128x256xf32>
    %cst_18 = arith.constant dense<0.000000e+00> : vector<128xf32>
    %41 = vector.multi_reduction <add>, %40, %cst_18 [1] : vector<128x256xf32> to vector<128xf32>
    %42 = vector.shape_cast %41 : vector<128xf32> to vector<128x1xf32>
    %43 = tpu.reciprocal %42 {approx = true} : vector<128x1xf32> -> vector<128x1xf32>
    %44 = vector.broadcast %43 : vector<128x1xf32> to vector<128x256xf32>
    %45 = arith.mulf %40, %44 : vector<128x256xf32>
    %46 = arith.truncf %45 : vector<128x256xf32> to vector<128x256xbf16>
    %cst_19 = arith.constant dense<0.000000e+00> : vector<128x64xf32>
    %47 = tpu.matmul %46, %34, %cst_19 {dimension_numbers = #tpu.dot_dimension_numbers<[1], [0], [0], [1], [0, 0, 1, 1], [], []>} : vector<128x256xbf16>, vector<256x64xbf16>, vector<128x64xf32> -> vector<128x64xf32>
    %48 = vector.extract_strided_slice %29 {offsets = [0, 64], sizes = [128, 64], strides = [1, 1]} : vector<128x128xbf16> to vector<128x64xbf16>
    %49 = vector.extract_strided_slice %30 {offsets = [0, 64], sizes = [256, 64], strides = [1, 1]} : vector<256x128xbf16> to vector<256x64xbf16>
    %50 = vector.extract_strided_slice %31 {offsets = [0, 64], sizes = [256, 64], strides = [1, 1]} : vector<256x128xbf16> to vector<256x64xbf16>
    %cst_20 = arith.constant dense<0.000000e+00> : vector<128x256xf32>
    %51 = tpu.matmul %48, %49, %cst_20 {dimension_numbers = #tpu.dot_dimension_numbers<[1], [1], [0], [0], [0, 0, 1, 0], [], []>} : vector<128x64xbf16>, vector<256x64xbf16>, vector<128x256xf32> -> vector<128x256xf32>
    %cst_21 = arith.constant dense<0xFF800000> : vector<128xf32>
    %52 = vector.multi_reduction <maximumf>, %51, %cst_21 [1] : vector<128x256xf32> to vector<128xf32>
    %53 = vector.shape_cast %52 : vector<128xf32> to vector<128x1xf32>
    %54 = vector.broadcast %53 : vector<128x1xf32> to vector<128x256xf32>
    %55 = arith.subf %51, %54 : vector<128x256xf32>
    %56 = math.exp %55 : vector<128x256xf32>
    %cst_22 = arith.constant dense<0.000000e+00> : vector<128xf32>
    %57 = vector.multi_reduction <add>, %56, %cst_22 [1] : vector<128x256xf32> to vector<128xf32>
    %58 = vector.shape_cast %57 : vector<128xf32> to vector<128x1xf32>
    %59 = tpu.reciprocal %58 {approx = true} : vector<128x1xf32> -> vector<128x1xf32>
    %60 = vector.broadcast %59 : vector<128x1xf32> to vector<128x256xf32>
    %61 = arith.mulf %56, %60 : vector<128x256xf32>
    %62 = arith.truncf %61 : vector<128x256xf32> to vector<128x256xbf16>
    %cst_23 = arith.constant dense<0.000000e+00> : vector<128x64xf32>
    %63 = tpu.matmul %62, %50, %cst_23 {dimension_numbers = #tpu.dot_dimension_numbers<[1], [0], [0], [1], [0, 0, 1, 1], [], []>} : vector<128x256xbf16>, vector<256x64xbf16>, vector<128x64xf32> -> vector<128x64xf32>
    %64 = tpu.concatenate %47, %63 in 1 : vector<128x64xf32>, vector<128x64xf32> -> vector<128x128xf32>
    %65 = arith.truncf %64 : vector<128x128xf32> to vector<128x128xbf16>
    %66 = arith.index_cast %arg2 : i32 to index
    %c0_24 = arith.constant 0 : index
    %c0_25 = arith.constant 0 : index
    %67 = vector.load %arg12[%66, %c0_24, %c0_25] : memref<4x128x128xbf16, #tpu.memory_space<vmem>>, vector<1x128x128xbf16>
    %68 = vector.shape_cast %67 : vector<1x128x128xbf16> to vector<128x128xbf16>
    %69 = vector.shape_cast %65 : vector<128x128xbf16> to vector<1x128x128xbf16>
    tpu.vector_store %arg12[%66, %c0_24, %c0_25], %69 {strides = array<i32>} : memref<4x128x128xbf16, #tpu.memory_space<vmem>>, vector<1x128x128xbf16>,
    %c3_i32 = arith.constant 3 : i32
    %70 = arith.cmpi eq, %arg2, %c3_i32 : i32
    %71 = arith.extui %70 : i1 to i32
    %c0_i32 = arith.constant 0 : i32
    %72 = arith.cmpi ne, %71, %c0_i32 : i32
    scf.if %72 {
      %c0_26 = arith.constant 0 : index
      %c0_27 = arith.constant 0 : index
      %c0_28 = arith.constant 0 : index
      %73 = vector.load %arg12[%c0_26, %c0_27, %c0_28] : memref<4x128x128xbf16, #tpu.memory_space<vmem>>, vector<1x128x128xbf16>
      %74 = vector.shape_cast %73 : vector<1x128x128xbf16> to vector<128x128xbf16>
      %c0_29 = arith.constant 0 : index
      %c0_30 = arith.constant 0 : index
      %c0_31 = arith.constant 0 : index
      %75 = vector.load %arg7[%c0_29, %c0_30, %c0_31] : memref<4x128x512xbf16, #tpu.memory_space<vmem>>, vector<1x128x512xbf16>
      %76 = vector.shape_cast %75 : vector<1x128x512xbf16> to vector<128x512xbf16>
      %cst_32 = arith.constant dense<0.000000e+00> : vector<128x512xf32>
      %77 = tpu.matmul %74, %76, %cst_32 {dimension_numbers = #tpu.dot_dimension_numbers<[1], [0], [0], [1], [0, 0, 1, 1], [], []>} : vector<128x128xbf16>, vector<128x512xbf16>, vector<128x512xf32> -> vector<128x512xf32>
      %c1 = arith.constant 1 : index
      %c0_33 = arith.constant 0 : index
      %c0_34 = arith.constant 0 : index
      %78 = vector.load %arg12[%c1, %c0_33, %c0_34] : memref<4x128x128xbf16, #tpu.memory_space<vmem>>, vector<1x128x128xbf16>
      %79 = vector.shape_cast %78 : vector<1x128x128xbf16> to vector<128x128xbf16>
      %c1_35 = arith.constant 1 : index
      %c0_36 = arith.constant 0 : index
      %c0_37 = arith.constant 0 : index
      %80 = vector.load %arg7[%c1_35, %c0_36, %c0_37] : memref<4x128x512xbf16, #tpu.memory_space<vmem>>, vector<1x128x512xbf16>
      %81 = vector.shape_cast %80 : vector<1x128x512xbf16> to vector<128x512xbf16>
      %cst_38 = arith.constant dense<0.000000e+00> : vector<128x512xf32>
      %82 = tpu.matmul %79, %81, %cst_38 {dimension_numbers = #tpu.dot_dimension_numbers<[1], [0], [0], [1], [0, 0, 1, 1], [], []>} : vector<128x128xbf16>, vector<128x512xbf16>, vector<128x512xf32> -> vector<128x512xf32>
      %83 = arith.addf %77, %82 : vector<128x512xf32>
      %c2 = arith.constant 2 : index
      %c0_39 = arith.constant 0 : index
      %c0_40 = arith.constant 0 : index
      %84 = vector.load %arg12[%c2, %c0_39, %c0_40] : memref<4x128x128xbf16, #tpu.memory_space<vmem>>, vector<1x128x128xbf16>
      %85 = vector.shape_cast %84 : vector<1x128x128xbf16> to vector<128x128xbf16>
      %c2_41 = arith.constant 2 : index
      %c0_42 = arith.constant 0 : index
      %c0_43 = arith.constant 0 : index
      %86 = vector.load %arg7[%c2_41, %c0_42, %c0_43] : memref<4x128x512xbf16, #tpu.memory_space<vmem>>, vector<1x128x512xbf16>
      %87 = vector.shape_cast %86 : vector<1x128x512xbf16> to vector<128x512xbf16>
      %cst_44 = arith.constant dense<0.000000e+00> : vector<128x512xf32>
      %88 = tpu.matmul %85, %87, %cst_44 {dimension_numbers = #tpu.dot_dimension_numbers<[1], [0], [0], [1], [0, 0, 1, 1], [], []>} : vector<128x128xbf16>, vector<128x512xbf16>, vector<128x512xf32> -> vector<128x512xf32>
      %89 = arith.addf %83, %88 : vector<128x512xf32>
      %c3 = arith.constant 3 : index
      %c0_45 = arith.constant 0 : index
      %c0_46 = arith.constant 0 : index
      %90 = vector.load %arg12[%c3, %c0_45, %c0_46] : memref<4x128x128xbf16, #tpu.memory_space<vmem>>, vector<1x128x128xbf16>
      %91 = vector.shape_cast %90 : vector<1x128x128xbf16> to vector<128x128xbf16>
      %c3_47 = arith.constant 3 : index
      %c0_48 = arith.constant 0 : index
      %c0_49 = arith.constant 0 : index
      %92 = vector.load %arg7[%c3_47, %c0_48, %c0_49] : memref<4x128x512xbf16, #tpu.memory_space<vmem>>, vector<1x128x512xbf16>
      %93 = vector.shape_cast %92 : vector<1x128x512xbf16> to vector<128x512xbf16>
      %cst_50 = arith.constant dense<0.000000e+00> : vector<128x512xf32>
      %94 = tpu.matmul %91, %93, %cst_50 {dimension_numbers = #tpu.dot_dimension_numbers<[1], [0], [0], [1], [0, 0, 1, 1], [], []>} : vector<128x128xbf16>, vector<128x512xbf16>, vector<128x512xf32> -> vector<128x512xf32>
      %95 = arith.addf %89, %94 : vector<128x512xf32>
      %c0_51 = arith.constant 0 : index
      %c0_52 = arith.constant 0 : index
      %96 = vector.load %arg10[%c0_51, %c0_52] : memref<1x512xf32, #tpu.memory_space<vmem>>, vector<1x512xf32>
      %97 = vector.broadcast %96 : vector<1x512xf32> to vector<128x512xf32>
      %98 = arith.addf %95, %97 : vector<128x512xf32>
      %c0_53 = arith.constant 0 : index
      %c0_54 = arith.constant 0 : index
      %c0_55 = arith.constant 0 : index
      %99 = vector.load %arg11[%c0_53, %c0_54, %c0_55] : memref<1x128x512xf32, #tpu.memory_space<vmem>>, vector<1x128x512xf32>
      %100 = vector.shape_cast %99 : vector<1x128x512xf32> to vector<128x512xf32>
      %101 = vector.shape_cast %98 : vector<128x512xf32> to vector<1x128x512xf32>
      tpu.vector_store %arg11[%c0_53, %c0_54, %c0_55], %101 {strides = array<i32>} : memref<1x128x512xf32, #tpu.memory_space<vmem>>, vector<1x128x512xf32>,
    } else {
    }
    return
  }
  func.func @transform_0(%arg0: i32, %arg1: i32, %arg2: i32) -> (i32, i32, i32) {
    %c0_i32 = arith.constant 0 : i32
    %c0_i32_0 = arith.constant 0 : i32
    %c0_i32_1 = arith.constant 0 : i32
    return %arg0, %c0_i32, %c0_i32_0 : i32, i32, i32
  }
  func.func @transform_1(%arg0: i32, %arg1: i32, %arg2: i32) -> (i32, i32, i32) {
    %c0_i32 = arith.constant 0 : i32
    %c0_i32_0 = arith.constant 0 : i32
    %c0_i32_1 = arith.constant 0 : i32
    %c0_i32_2 = arith.constant 0 : i32
    return %c0_i32, %c0_i32_0, %c0_i32_1 : i32, i32, i32
  }
  func.func @transform_2(%arg0: i32, %arg1: i32, %arg2: i32) -> (i32, i32, i32) {
    %c0_i32 = arith.constant 0 : i32
    %c0_i32_0 = arith.constant 0 : i32
    %c0_i32_1 = arith.constant 0 : i32
    %c0_i32_2 = arith.constant 0 : i32
    return %c0_i32, %c0_i32_0, %c0_i32_1 : i32, i32, i32
  }
  func.func @transform_3(%arg0: i32, %arg1: i32, %arg2: i32) -> (i32, i32, i32) {
    %c0_i32 = arith.constant 0 : i32
    %c0_i32_0 = arith.constant 0 : i32
    %c0_i32_1 = arith.constant 0 : i32
    %c0_i32_2 = arith.constant 0 : i32
    return %c0_i32, %c0_i32_0, %c0_i32_1 : i32, i32, i32
  }
  func.func @transform_4(%arg0: i32, %arg1: i32, %arg2: i32) -> (i32, i32, i32) {
    %c0_i32 = arith.constant 0 : i32
    %c0_i32_0 = arith.constant 0 : i32
    %c0_i32_1 = arith.constant 0 : i32
    %c0_i32_2 = arith.constant 0 : i32
    return %c0_i32, %c0_i32_0, %c0_i32_1 : i32, i32, i32
  }
  func.func @transform_5(%arg0: i32, %arg1: i32, %arg2: i32) -> (i32, i32, i32) {
    %c0_i32 = arith.constant 0 : i32
    %c0_i32_0 = arith.constant 0 : i32
    %c0_i32_1 = arith.constant 0 : i32
    %c0_i32_2 = arith.constant 0 : i32
    return %c0_i32, %c0_i32_0, %c0_i32_1 : i32, i32, i32
  }
  func.func @transform_6(%arg0: i32, %arg1: i32, %arg2: i32) -> (i32, i32, i32) {
    %c0_i32 = arith.constant 0 : i32
    %c0_i32_0 = arith.constant 0 : i32
    %c0_i32_1 = arith.constant 0 : i32
    %c0_i32_2 = arith.constant 0 : i32
    return %c0_i32, %c0_i32_0, %c0_i32_1 : i32, i32, i32
  }
  func.func @transform_7(%arg0: i32, %arg1: i32, %arg2: i32) -> (i32, i32) {
    %c0_i32 = arith.constant 0 : i32
    %c0_i32_0 = arith.constant 0 : i32
    %c0_i32_1 = arith.constant 0 : i32
    return %c0_i32, %c0_i32_0 : i32, i32
  }
  func.func @transform_8(%arg0: i32, %arg1: i32, %arg2: i32) -> (i32, i32, i32) {
    %c0_i32 = arith.constant 0 : i32
    %c0_i32_0 = arith.constant 0 : i32
    return %arg0, %arg1, %c0_i32 : i32, i32, i32
  }
}

</mosaic_0001>

<bundles_post_ra>
// kernel: tpu_custom_call.1
= control target key start
LH: loop header
LB: loop body
LE: loop exit
PB: predicated region body
PF: predicated region fallthrough
CT: control target
= control target key end

     0   :  { %s10122_s0 = inlined_call_operand.hbm [shape: bf16[2,256,512], index: 0, kind: input, shape index: {}]   ;;  %s10123_s1 = inlined_call_operand.hbm [shape: bf16[4,128,512], index: 1, kind: input, shape index: {}]   ;;  %s10124_s2 = inlined_call_operand.hbm [shape: bf16[4,128,512], index: 2, kind: input, shape index: {}]   ;;  %s10125_s3 = inlined_call_operand.hbm [shape: bf16[4,128,512], index: 3, kind: input, shape index: {}]   ;;  %s10126_s4 = inlined_call_operand.hbm [shape: bf16[4,128,512], index: 4, kind: input, shape index: {}]   ;;  %s10127_s5 = inlined_call_operand.vmem [shape: f32[4,1,128], index: 5, kind: input, shape index: {}]   ;;  %s10128_s6 = inlined_call_operand.vmem [shape: f32[4,1,128], index: 6, kind: input, shape index: {}]   ;;  %s10129_s7 = inlined_call_operand.vmem [shape: f32[1,512], index: 7, kind: input, shape index: {}]   ;;  %s10130_s8 = inlined_call_operand.hbm [shape: f32[2,256,512], index: 8, kind: output, shape index: {}]  }
   0x1   :  { %10170 = sst [smem:[#allocation58_spill]] %s10123_s1 }
   0x2   :  { %10171 = sst [smem:[#allocation59_spill]] %s10124_s2 }
   0x3   :  { %10172 = sst [smem:[#allocation60_spill]] %s10125_s3 }
   0x4   :  { %10173 = sst [smem:[#allocation61_spill]] %s10127_s5 }
   0x5   :  { %10174 = sst [smem:[#allocation62_spill]] %s10128_s6 }
   0x6   :  { %10175 = sst [smem:[#allocation63_spill]] %s10129_s7 }
   0x7   :  { %10176 = sst [smem:[#allocation64_spill]] %s10130_s8 }
   0x8   :  { %13 = vsyncpa [#allocation4], 0 }
   0x9   :  { %15 = vsyncpa [#allocation4 + $0x1], 0 }
   0xa   :  { %16 = vsyncpa [#allocation7], 0 }
   0xb   :  { %17 = vsyncpa [#allocation10], 0 }
   0xc   :  { %18 = vsyncpa [#allocation5], 0 }
   0xd   :  { %20 = vsyncpa [#allocation5 + $0x1], 0  ;;  %s8140_s27 = smov 0   ;;  %s8142_s28 = smov 0  }
   0xe   :  { %s8144_s29 = smov 0   ;;  %s8146_s30 = smov 0  }
   0xf   :  { %s8148_s9 = smov 0   ;;  %s8150_s10 = smov 0  }
  0x10   :  { %s8152_s11 = smov 0   ;;  %s8154_s12 = smov 0  }
  0x11   :  { %s8156_s13 = smov 0   ;;  %s8158_s14 = smov 0  }
  0x12   :  { %s8160_s15 = smov 0   ;;  %s8162_s16 = smov 0  }
  0x13   :  { %s8164_s17 = smov 0  }
  0x14 LB: > { %10177 = sst [smem:[#allocation17_spill]] %s8033_s27  ;;  %s5928_s18 = sadd.s32 4294967295, %s8081_s17   ;;  %s8081_s17 = sphi %s8164_s17, %s26_s17   ;;  %s8077_s16 = sphi %s8162_s16, %s10298_s16   ;;  %s8073_s15 = sphi %s8160_s15, %s10297_s15   ;;  %s8069_s14 = sphi %s8158_s14, %s10296_s14   ;;  %s8065_s13 = sphi %s8156_s13, %s10295_s13   ;;  %s8061_s12 = sphi %s8154_s12, %s10294_s12   ;;  %s8057_s11 = sphi %s8152_s11, %s10293_s11   ;;  %s8053_s10 = sphi %s8150_s10, %s10292_s10   ;;  %s8049_s9 = sphi %s8148_s9, %s10291_s9   ;;  %s8045_s30 = sphi %s8146_s30, %s10290_s30   ;;  %s8041_s29 = sphi %s8144_s29, %s10289_s29   ;;  %s8037_s28 = sphi %s8142_s28, %s10288_s28   ;;  %s8033_s27 = sphi %s8140_s27, %s10285_s27  }
  0x15   : > { %10178 = sst [smem:[#allocation18_spill]] %s8037_s28  ;;  %s5929_s19 = sadd.s32 4294967294, %s8081_s17  }
  0x16   : > { %10179 = sst [smem:[#allocation19_spill]] %s8057_s11  ;;  %p65_p0 = scmp.ne.s32.totalorder %s8049_s9, %s8045_s30 }
  0x17   : > { %10180 = sst [smem:[#allocation20_spill]] %s8061_s12  ;;  %p8206_p1 = scmp.eq.s32.totalorder %s5928_s18, 0 }
  0x18   : > { %10181 = sst [smem:[#allocation21_spill]] %s8065_s13  ;;  %p237_p2 = scmp.ne.s32.totalorder %s8041_s29, %s8037_s28 }
  0x19   : > { %s10182_s20 = scalar_select %p8206_p1, 1, 0 }
  0x1a   : > { %p238_p3 = scmp.eq.s32.totalorder %s5928_s18, 15  ;;  %p8214_p4 = por %p8206_p1, %p65_p0 }
  0x1b   : > { %p243_p5 = scmp.ne.s32.totalorder %s8037_s28, %s8033_s27  ;;  %p244_p7 = scmp.eq.s32.totalorder %s5929_s19, 15 }
  0x1c   : > { %s10183_s21 = scalar_select %p8214_p4, 1, 0 }
  0x1d   : > { %p8220_p6 = por %p238_p3, %p237_p2  ;;  %p5930_p8 = scmp.ge.s32.totalorder %s8081_s17, 1 }
  0x1e   : > { %p251_p9 = scmp.lt.s32.totalorder %s8081_s17, 17  ;;  %p8226_p10 = por %p244_p7, %p243_p5 }
  0x1f   : > { %s10184_s22 = scalar_select %p8220_p6, 1, 0 }
  0x20   : > { %s10186_s23 = scalar_select %p8226_p10, 1, 0 }
  0x21   : > { %10185 = sst [smem:[#allocation22_spill]] %s10184_s22  ;;  %p8230_p11 = pnand %p5930_p8, %p251_p9 }
  0x22   : > { %10187 = sst [smem:[#allocation23_spill]] %s10186_s23  ;;  %s8083_s25 = smov [#allocation6]  }
  0x23   : > { %s10188_s24 = scalar_select %p8230_p11, 1, 0 }
  0x24   : > { %s263_s26 = sshll.u32 %s8083_s25, 4  ;;  %p6936_p12 = pneg %p8230_p11  ;;  %s264_s26 = int_to_ptr.vmem [resolvable:$true] %s263_s26 }
  0x25   : > { %s8084_s18 = smov [#allocation9]   ;;  %s10190_s1 = sld [smem:[#allocation58_spill]] }
  0x26   : > { %p8238_p13 = pnand %p6936_p12, %p8206_p1  ;;  %s289_s19 = sshll.u32 %s8084_s18, 4  ;;  %s8242_s19 = int_to_ptr.vmem [resolvable:$true] %s289_s19 }
  0x28   : > { %p8252_p2 = pneg %p8238_p13 }
  0x2b   : > { %s7793_s8 = scalar_lea.hbm %s10190_s1, 16384 }
  0x2c   : > { %p7794_p0 = scmp.ne.s32.totalorder %s10190_s1, %s7793_s8  ;;  %p7800_p7 = scmp.lt.u32.totalorder %s7793_s8, %s10190_s1 }
  0x2e   : > { %p7796_p3 = pnand %p8252_p2, %p7794_p0 }
  0x30   : > { %p7797_p5 = pneg %p7796_p3 }
  0x32   : > { %p7802_p8 = pnand %p7800_p7, %p7797_p5 }
  0x34   : > { %7805 = shalt.err (!%p7802_p8)
}
  0x35   : > { %s7806_s27 = scalar_lea.vmem %s264_s26, 16384  ;;  %p7814_p6 = scmp.lt.s32.totalorder %s264_s26, %s264_s26 }
  0x36   : > { %p7807_p9 = scmp.ne.s32.totalorder %s264_s26, %s7806_s27  ;;  %p7815_p1 = scmp.lt.s32.totalorder %s7806_s27, %s7806_s27 }
  0x38   : > { %p7809_p12 = pnand %p7807_p9, %p8252_p2  ;;  %p7816_p4 = por %p7815_p1, %p7814_p6 }
  0x3a   : > { %p7810_p10 = pneg %p7809_p12 }
  0x3c   : > { %p7817_p11 = pnand %p7816_p4, %p7810_p10 }
  0x3e   : > { %7820 = shalt.err (!%p7817_p11)
}
  0x3f   : > { %s10144_s13 = smov 256   ;;  %s10145_s22 = smov 16  }
  0x40   : > { %6939 = dma.hbm_to_vmem [thread:$0]  (!%p8238_p13), %s10190_s1, 16384, %s264_s26, [#allocation7], %s10144_s13, %s10144_s13, %s10145_s22  }
  0x41   : > { %s10192_s3 = sld [smem:[#allocation60_spill]] }
  0x47   : > { %s7821_s6 = scalar_lea.hbm %s10192_s3, 16384 }
  0x48   : > { %p7822_p1 = scmp.ne.s32.totalorder %s10192_s3, %s7821_s6  ;;  %p7828_p10 = scmp.lt.u32.totalorder %s7821_s6, %s10192_s3 }
  0x4a   : > { %p7824_p4 = pnand %p7822_p1, %p8252_p2 }
  0x4c   : > { %p7825_p6 = pneg %p7824_p4 }
  0x4e   : > { %p7830_p11 = pnand %p7828_p10, %p7825_p6 }
  0x50   : > { %7833 = shalt.err (!%p7830_p11)
}
  0x51   : > { %s7834_s26 = scalar_lea.vmem %s8242_s19, 16384  ;;  %p7842_p7 = scmp.lt.s32.totalorder %s8242_s19, %s8242_s19 }
  0x52   : > { %p7835_p0 = scmp.ne.s32.totalorder %s8242_s19, %s7834_s26  ;;  %p7843_p8 = scmp.lt.s32.totalorder %s7834_s26, %s7834_s26 }
  0x54   : > { %p7837_p3 = pnand %p7835_p0, %p8252_p2  ;;  %p7844_p9 = por %p7843_p8, %p7842_p7 }
  0x56   : > { %p7838_p5 = pneg %p7837_p3 }
  0x58   : > { %p7845_p12 = pnand %p7844_p9, %p7838_p5 }
  0x5a   : > { %7848 = shalt.err (!%p7845_p12)
}
  0x5b   : > { %6945 = dma.hbm_to_vmem [thread:$0]  (!%p8238_p13), %s10192_s3, 16384, %s8242_s19, [#allocation10], %s10144_s13, %s10144_s13, %s10145_s22  }
  0x5c   : > { %s8087_s11 = smov [#allocation8]   ;;  %s8088_s7 = smov [#allocation11]  }
  0x5d   : > { %s276_s12 = sshll.u32 %s8087_s11, 4  ;;  %s302_s8 = sshll.u32 %s8088_s7, 4  ;;  %s277_s12 = int_to_ptr.vmem [resolvable:$true] %s276_s12  ;;  %s303_s8 = int_to_ptr.vmem [resolvable:$true] %s302_s8 }
  0x5e   : > { %s10193_s2 = sld [smem:[#allocation59_spill]] }
  0x64   : > { %s7849_s27 = scalar_lea.hbm %s10193_s2, 16384 }
  0x65   : > { %p7850_p1 = scmp.ne.s32.totalorder %s10193_s2, %s7849_s27  ;;  %p7856_p10 = scmp.lt.u32.totalorder %s7849_s27, %s10193_s2 }
  0x67   : > { %p7852_p4 = pnand %p7850_p1, %p8252_p2 }
  0x69   : > { %p7853_p6 = pneg %p7852_p4 }
  0x6b   : > { %p7858_p11 = pnand %p7856_p10, %p7853_p6 }
  0x6d   : > { %7861 = shalt.err (!%p7858_p11)
}
  0x6e   : > { %s7862_s19 = scalar_lea.vmem %s277_s12, 16384  ;;  %p7870_p7 = scmp.lt.s32.totalorder %s277_s12, %s277_s12 }
  0x6f   : > { %p7863_p0 = scmp.ne.s32.totalorder %s277_s12, %s7862_s19  ;;  %p7871_p8 = scmp.lt.s32.totalorder %s7862_s19, %s7862_s19 }
  0x71   : > { %p7865_p3 = pnand %p7863_p0, %p8252_p2  ;;  %p7872_p9 = por %p7871_p8, %p7870_p7 }
  0x73   : > { %p7866_p5 = pneg %p7865_p3 }
  0x75   : > { %p7873_p12 = pnand %p7872_p9, %p7866_p5 }
  0x77   : > { %7876 = shalt.err (!%p7873_p12)
}
  0x78   : > { %6942 = dma.hbm_to_vmem [thread:$0]  (!%p8238_p13), %s10193_s2, 16384, %s277_s12, [#allocation7], %s10144_s13, %s10144_s13, %s10145_s22  }
  0x79   : > { %s7877_s7 = scalar_lea.hbm %s10126_s4, 16384 }
  0x7a   : > { %p7878_p1 = scmp.ne.s32.totalorder %s10126_s4, %s7877_s7  ;;  %p7884_p10 = scmp.lt.u32.totalorder %s7877_s7, %s10126_s4 }
  0x7c   : > { %p7880_p4 = pnand %p7878_p1, %p8252_p2 }
  0x7e   : > { %p7881_p6 = pneg %p7880_p4 }
  0x80   : > { %p7886_p11 = pnand %p7884_p10, %p7881_p6 }
  0x82   : > { %7889 = shalt.err (!%p7886_p11)
}
  0x83   : > { %s7890_s5 = scalar_lea.vmem %s303_s8, 16384  ;;  %p7898_p7 = scmp.lt.s32.totalorder %s303_s8, %s303_s8 }
  0x84   : > { %p7891_p0 = scmp.ne.s32.totalorder %s303_s8, %s7890_s5  ;;  %p7899_p8 = scmp.lt.s32.totalorder %s7890_s5, %s7890_s5 }
  0x86   : > { %p7893_p3 = pnand %p7891_p0, %p8252_p2  ;;  %p7900_p9 = por %p7899_p8, %p7898_p7 }
  0x88   : > { %p7894_p5 = pneg %p7893_p3 }
  0x8a   : > { %p7901_p12 = pnand %p7900_p9, %p7894_p5 }
  0x8c   : > { %7904 = shalt.err (!%p7901_p12)
}
  0x8d   : > { %6948 = dma.hbm_to_vmem [thread:$0]  (!%p8238_p13), %s10126_s4, 16384, %s303_s8, [#allocation10], %s10144_s13, %s10144_s13, %s10145_s22  }
  0x8e   : > { %s38_s30 = sadd.s32 1, %s8069_s14  ;;  %s41_s25 = sadd.s32 1, %s8073_s15 }
  0x8f   : > { %p39_p2 = scmp.ge.s32.totalorder %s38_s30, 4  ;;  %s45_s1 = sadd.s32 1, %s8077_s16 }
  0x90   : > { %p59_p1 = scmp.ne.s32.totalorder %s8053_s10, %s8049_s9  ;;  %p60_p4 = scmp.eq.s32.totalorder %s8081_s17, 0 }
  0x91   : > { %s10300_s30 = smov (%p39_p2, %s38_s30), 0  ;;  %s10302_s25 = smov (!%p39_p2, %s41_s25), %s8073_s15 }
  0x92   : > { %p43_p6 = scmp.ge.s32.totalorder %s10302_s25, 2  ;;  %s52_s28 = sadd.s32 1, %s8053_s10 }
  0x93   : > { %p8349_p10 = por %p60_p4, %p59_p1  ;;  %s227_s8 = sadd.s32 1, %s8041_s29 }
  0x94   : > { %s10304_s25 = smov (%p43_p6, %s10302_s25), 0  ;;  %s10306_s1 = smov (!%p43_p6, %s45_s1), %s8077_s16 }
  0x95   : > { %p6961_p13 = scmp.lt.s32.totalorder %s8081_s17, 16  ;;  %s325_s11 = sand.u32 1, %s8053_s10  }
  0x96   : > { %p47_p11 = scmp.ge.s32.totalorder %s10306_s1, 2  ;;  %s223_s7 = ssub.s32 %s8073_s15, %s10304_s25 }
  0x97   : > { %s5936_s23 = sshll.u32 %s325_s11, 9  ;;  %s6301_s18 = sshll.u32 %s8077_s16, 13 }
  0x98   : > { %s10308_s1 = smov (%p47_p11, %s10306_s1), 0  ;;  %s8369_s12 = scalar_lea.hbm %s10122_s0, %s6301_s18 }
  0x99   : > { %s49_s27 = ssub.s32 %s8077_s16, %s10308_s1  ;;  %s329_s13 = scalar_lea.vmem [#allocation3], %s5936_s23 }
  0x9a   : > { %p50_p0 = scmp.eq.s32.totalorder %s49_s27, 0  ;;  %s224_s19 = sor.u32 %s223_s7, %s49_s27 }
  0x9b   : > { %p225_p3 = scmp.eq.s32.totalorder %s224_s19, 0  ;;  %s336_s22 = sshll.u32 %s329_s13, 4  ;;  %s8377_s22 = int_to_ptr.vmem [resolvable:$true] %s336_s22 }
  0x9c   : > { %s8372_s2 = scalar_select %p50_p0, %s8053_s10, %s52_s28  }
  0x9d   : > { %s8375_s3 = scalar_select %p225_p3, %s8041_s29, %s227_s8  }
  0x9e   : > { %p8383_p5 = pnand %p6961_p13, %p8349_p10  ;;  %s8387_s26 = scalar_lea.sflag [#allocation4], %s325_s11 }
  0x9f   : > { %s7905_s7 = scalar_lea.hbm %s8369_s12, 8192  ;;  %s7910_s6 = scalar_lea.hbm %s10122_s0, 16384 }
  0xa0   : > { %p7906_p7 = scmp.ne.s32.totalorder %s8369_s12, %s7905_s7  ;;  %p7907_p8 = pneg %p8383_p5 }
  0xa1   : > { %p7911_p2 = scmp.lt.u32.totalorder %s8369_s12, %s10122_s0  ;;  %p7912_p1 = scmp.lt.u32.totalorder %s7910_s6, %s7905_s7 }
  0xa2   : > { %p7908_p9 = pnand %p7907_p8, %p7906_p7  ;;  %p7914_p6 = scmp.lt.u32.totalorder %s7905_s7, %s8369_s12 }
  0xa3   : > { %p7913_p4 = por %p7912_p1, %p7911_p2 }
  0xa4   : > { %p7909_p12 = pneg %p7908_p9 }
  0xa5   : > { %p7915_p10 = por %p7914_p6, %p7913_p4 }
  0xa7   : > { %p7916_p13 = pnand %p7915_p10, %p7909_p12 }
  0xa9   : > { %7919 = shalt.err (!%p7916_p13)
}
  0xaa   : > { %s7920_s11 = scalar_lea.vmem %s8377_s22, 8192  ;;  %s8089_s27 = smov [#allocation3]  }
  0xab   : > { %p7921_p11 = scmp.ne.s32.totalorder %s8377_s22, %s7920_s11  ;;  %s7925_s5 = sshll.u32 %s8089_s27, 4  ;;  %s7926_s5 = int_to_ptr.vmem [resolvable:$false] %s7925_s5 }
  0xac   : > { %s7927_s19 = scalar_lea.vmem %s7926_s5, 16384  ;;  %p7928_p7 = scmp.lt.s32.totalorder %s8377_s22, %s7926_s5 }
  0xad   : > { %p7923_p0 = pnand %p7921_p11, %p7907_p8  ;;  %p7929_p9 = scmp.lt.s32.totalorder %s7927_s19, %s7920_s11 }
  0xaf   : > { %p7924_p3 = pneg %p7923_p0  ;;  %p7930_p2 = por %p7929_p9, %p7928_p7 }
  0xb1   : > { %p7931_p1 = pnand %p7930_p2, %p7924_p3 }
  0xb3   : > { %7934 = shalt.err (!%p7931_p1)
}
  0xb4   : > { %s10196_s7 = smov 16   ;;  %s10197_s13 = smov 256  }
  0xb5   : > { %6952 = dma.hbm_to_vmem [thread:$0]  (!%p8383_p5), %s8369_s12, 8192, %s8377_s22, %s8387_s26, %s10197_s13, %s10197_s13, %s10196_s7  }
  0xb6   : > { %p10198_p8 = scmp.ne.s32.totalorder %s10188_s24, 0 }
  0xb8   : > { %348 = sbr.rel (%p10198_p8) target bundleno = 2362 (0x93a), region = 52 }
  0xbf   : > { %s350_s28 = sand.u32 1, %s8049_s9   ;;  %p10199_p12 = scmp.ne.s32.totalorder %s10183_s21, 0 }
  0xc0   : > { %s5940_s6 = sshll.u32 %s350_s28, 9  ;;  %s351_s8 = scalar_lea.sflag [#allocation4], %s350_s28 }
  0xc1   : > { %s8421_s23 = scalar_lea.vmem [#allocation3], %s5940_s6 }
  0xc2   : > { %8016 = dma.done.wait (%p10199_p12), %s351_s8, 8192  }
  0xc3   : > { %8018 = vsyncadd (%p10199_p12), %s351_s8, 4294959104  ;;  %p10200_p4 = scmp.ne.s32.totalorder %s10182_s20, 0 }
  0xc5   : > { %8020 = dma.done.wait (%p10200_p4), [#allocation7], 32768  }
  0xc6   : > { %8022 = vsyncadd (%p10200_p4), [#allocation7], 4294934528 }
  0xc7   : > { %8024 = dma.done.wait (%p10200_p4), [#allocation10], 32768  }
  0xc8   : > { %8026 = vsyncadd (%p10200_p4), [#allocation10], 4294934528  ;;  %s10201_s24 = sld [smem:[#allocation18_spill]]  ;;  %s10202_s22 = sld [smem:[#allocation19_spill]]  ;;  %v8471_v17 = vld [vmem:[%s8421_s23 + $0x4] ss:$16 sps:$4 sm:$0xff]  }
  0xc9   : > { %s10203_s11 = sld [smem:[#allocation20_spill]]  ;;  %1644 = vmatprep.mubr.bf16.mxu1 %v8471_v17  ;;  %v8497_v37 = vld [vmem:[%s8421_s23] ss:$16 sps:$4 sm:$0xff]   ;;  %v8502_v40 = vld [vmem:[%s8421_s23 + $0x24] ss:$16 sps:$4 sm:$0xff]   ;;  %s10204_s8 = sld [smem:[#allocation61_spill]] }
  0xca   : > { %v8512_v46 = vld [vmem:[%s8421_s23 + $0x20] ss:$16 sps:$4 sm:$0xff]   ;;  %v8516_v48 = vld [vmem:[%s8421_s23 + $0x44] ss:$16 sps:$4 sm:$0xff]   ;;  %vm2464_vm0 = vcmask 523264  }
  0xcb   : > { %v8526_v54 = vld [vmem:[%s8421_s23 + $0x40] ss:$16 sps:$4 sm:$0xff]   ;;  %v8530_v56 = vld [vmem:[%s8421_s23 + $0x64] ss:$16 sps:$4 sm:$0xff]  }
  0xcc   : > { %v8540_v62 = vld [vmem:[%s8421_s23 + $0x60] ss:$16 sps:$4 sm:$0xff]  }
  0xce   : > { %s400_s12 = sand.u32 1, %s10201_s24   ;;  %s8441_s21 = sshll.u32 %s10202_s22, 8 }
  0xcf   : > { %s8438_s18 = sshll.u32 %s400_s12, 9  ;;  %s8444_s26 = scalar_lea.vmem [#allocation6], %s8441_s21 }
  0xd0   : > { %v7121_v0 = vld [vmem:[%s8444_s26 + $0x4] ss:$16 sps:$4 sm:$0xff]   ;;  %s8448_s20 = scalar_lea.vmem [#allocation8], %s8441_s21  ;;  %v7125_v2 = vld [vmem:[%s8444_s26] ss:$16 sps:$4 sm:$0xff]   ;;  %s5946_s27 = sshll.u32 %s10203_s11, 7 }
  0xd1   : > { %v7123_v1 = vld [vmem:[%s8448_s20 + $0x4] ss:$16 sps:$4 sm:$0xff]   ;;  %938 = vmatprep.subr.bf16.mxu0 %v7121_v0  ;;  %v7126_v3 = vld [vmem:[%s8448_s20] ss:$16 sps:$4 sm:$0xff]   ;;  %s406_s5 = sshra.s32 %s5946_s27, 3  ;;  %s8493_s13 = scalar_lea.vmem [#allocation9], %s8441_s21 }
  0xd2   : > { %1612 = vmatprep.subr.bf16.mxu1 %v7123_v1  ;;  %v7127_v4 = vld [vmem:[%s8444_s26 + $0x24] ss:$16 sps:$4 sm:$0xff]   ;;  %939 = vmatpush1.bf16.xpose.msra.mxu0 %v7125_v2  ;;  %v7131_v6 = vld [vmem:[%s8444_s26 + $0x20] ss:$16 sps:$4 sm:$0xff]   ;;  %s6302_s19 = sshll.u32 %s406_s5, 4  ;;  %s610_s24 = scalar_lea.vmem %s10204_s8, %s10202_s22 }
  0xd3   : > { %1613 = vmatpush1.bf16.xpose.msra.mxu1 %v7126_v3  ;;  %v7129_v5 = vld [vmem:[%s8448_s20 + $0x24] ss:$16 sps:$4 sm:$0xff]   ;;  %940 = vmatprep.subr.bf16.mxu0 %v7127_v4  ;;  %v7132_v7 = vld [vmem:[%s8448_s20 + $0x20] ss:$16 sps:$4 sm:$0xff]   ;;  %s8465_s7 = scalar_lea.vmem %s8421_s23, %s6302_s19 [#allocation3]  ;;  %v7177_v34 = vld [vmem:[%s8444_s26 + $0xc] ss:$16 sps:$4 sm:$0xff]  }
  0xd4   : > { %1614 = vmatprep.subr.bf16.mxu1 %v7129_v5  ;;  %v7133_v8 = vld [vmem:[%s8444_s26 + $0x44] ss:$16 sps:$4 sm:$0xff]   ;;  %v7137_v10 = vld [vmem:[%s8444_s26 + $0x40] ss:$16 sps:$4 sm:$0xff]   ;;  %v7249_v35 = vld [vmem:[%s8448_s20 + $0xc] ss:$16 sps:$4 sm:$0xff]  }
  0xd5   : > { %v7135_v9 = vld [vmem:[%s8448_s20 + $0x44] ss:$16 sps:$4 sm:$0xff]   ;;  %v7138_v11 = vld [vmem:[%s8448_s20 + $0x40] ss:$16 sps:$4 sm:$0xff]   ;;  %v7175_v38 = vld [vmem:[%s8444_s26 + $0x8] ss:$16 sps:$4 sm:$0xff]  }
  0xd6   : > { %v7139_v12 = vld [vmem:[%s8444_s26 + $0x64] ss:$16 sps:$4 sm:$0xff]   ;;  %v7143_v14 = vld [vmem:[%s8444_s26 + $0x60] ss:$16 sps:$4 sm:$0xff]   ;;  %v7185_v41 = vld [vmem:[%s8444_s26 + $0x2c] ss:$16 sps:$4 sm:$0xff]  }
  0xd7   : > { %v7141_v13 = vld [vmem:[%s8448_s20 + $0x64] ss:$16 sps:$4 sm:$0xff]   ;;  %v7144_v16 = vld [vmem:[%s8448_s20 + $0x60] ss:$16 sps:$4 sm:$0xff]   ;;  %v7247_v42 = vld [vmem:[%s8448_s20 + $0x8] ss:$16 sps:$4 sm:$0xff]  }
  0xd8   : > { %v7171_v15 = vld [vmem:[%s8465_s7 + $0x4] ss:$16 sps:$4 sm:$0xff]   ;;  %v7149_v20 = vld [vmem:[%s8444_s26 + $0x80] ss:$16 sps:$4 sm:$0xff]   ;;  %v7261_v43 = vld [vmem:[%s8448_s20 + $0x2c] ss:$16 sps:$4 sm:$0xff]  }
  0xd9   : > { %v7145_v18 = vld [vmem:[%s8444_s26 + $0x84] ss:$16 sps:$4 sm:$0xff]   ;;  %970 = vmatprep.mubr.bf16.mxu0 %v7171_v15  ;;  %v7150_v21 = vld [vmem:[%s8448_s20 + $0x80] ss:$16 sps:$4 sm:$0xff]   ;;  %v7183_v45 = vld [vmem:[%s8444_s26 + $0x28] ss:$16 sps:$4 sm:$0xff]  }
  0xda   : > { %941 = vmatpush1.bf16.xpose.msra.mxu0 %v7131_v6  ;;  %v7147_v19 = vld [vmem:[%s8448_s20 + $0x84] ss:$16 sps:$4 sm:$0xff]   ;;  %v7155_v24 = vld [vmem:[%s8444_s26 + $0xa0] ss:$16 sps:$4 sm:$0xff]   ;;  %v7194_v49 = vld [vmem:[%s8444_s26 + $0x4c] ss:$16 sps:$4 sm:$0xff]  }
  0xdb   : > { %1615 = vmatpush1.bf16.xpose.msra.mxu1 %v7132_v7  ;;  %942 = vmatprep.subr.bf16.mxu0 %v7133_v8  ;;  %v7151_v22 = vld [vmem:[%s8444_s26 + $0xa4] ss:$16 sps:$4 sm:$0xff]   ;;  %v7156_v25 = vld [vmem:[%s8448_s20 + $0xa0] ss:$16 sps:$4 sm:$0xff]   ;;  %v7259_v50 = vld [vmem:[%s8448_s20 + $0x28] ss:$16 sps:$4 sm:$0xff]  }
  0xdc   : > { %1616 = vmatprep.subr.bf16.mxu1 %v7135_v9  ;;  %v7153_v23 = vld [vmem:[%s8448_s20 + $0xa4] ss:$16 sps:$4 sm:$0xff]   ;;  %v7161_v28 = vld [vmem:[%s8444_s26 + $0xc0] ss:$16 sps:$4 sm:$0xff]   ;;  %v7273_v51 = vld [vmem:[%s8448_s20 + $0x4c] ss:$16 sps:$4 sm:$0xff]  }
  0xdd   : > { %v7157_v26 = vld [vmem:[%s8444_s26 + $0xc4] ss:$16 sps:$4 sm:$0xff]   ;;  %v7162_v29 = vld [vmem:[%s8448_s20 + $0xc0] ss:$16 sps:$4 sm:$0xff]   ;;  %v7192_v53 = vld [vmem:[%s8444_s26 + $0x48] ss:$16 sps:$4 sm:$0xff]  }
  0xde   : > { %v7159_v27 = vld [vmem:[%s8448_s20 + $0xc4] ss:$16 sps:$4 sm:$0xff]   ;;  %v7167_v32 = vld [vmem:[%s8444_s26 + $0xe0] ss:$16 sps:$4 sm:$0xff]   ;;  %v7203_v57 = vld [vmem:[%s8444_s26 + $0x6c] ss:$16 sps:$4 sm:$0xff]  }
  0xdf   : > { %v7163_v30 = vld [vmem:[%s8444_s26 + $0xe4] ss:$16 sps:$4 sm:$0xff]   ;;  %v7168_v33 = vld [vmem:[%s8448_s20 + $0xe0] ss:$16 sps:$4 sm:$0xff]   ;;  %v7271_v58 = vld [vmem:[%s8448_s20 + $0x48] ss:$16 sps:$4 sm:$0xff]  }
  0xe0   : > { %v7165_v31 = vld [vmem:[%s8448_s20 + $0xe4] ss:$16 sps:$4 sm:$0xff]   ;;  %v7169_v36 = vld [vmem:[%s8465_s7] ss:$16 sps:$4 sm:$0xff]   ;;  %v7285_v59 = vld [vmem:[%s8448_s20 + $0x6c] ss:$16 sps:$4 sm:$0xff]  }
  0xe1   : > { %v7178_v39 = vld [vmem:[%s8465_s7 + $0x24] ss:$16 sps:$4 sm:$0xff]   ;;  %v7182_v44 = vld [vmem:[%s8465_s7 + $0x20] ss:$16 sps:$4 sm:$0xff]   ;;  %v7201_v61 = vld [vmem:[%s8444_s26 + $0x68] ss:$16 sps:$4 sm:$0xff]  }
  0xe2   : > { %943 = vmatpush1.bf16.xpose.msra.mxu0 %v7137_v10  ;;  %v7187_v47 = vld [vmem:[%s8465_s7 + $0x44] ss:$16 sps:$4 sm:$0xff]   ;;  %v7191_v52 = vld [vmem:[%s8465_s7 + $0x40] ss:$16 sps:$4 sm:$0xff]   ;;  %v7212_v1 = vld [vmem:[%s8444_s26 + $0x8c] ss:$16 sps:$4 sm:$0xff]  }
  0xe3   : > { %1617 = vmatpush1.bf16.xpose.msra.mxu1 %v7138_v11  ;;  %944 = vmatprep.subr.bf16.mxu0 %v7139_v12  ;;  %v7196_v55 = vld [vmem:[%s8465_s7 + $0x64] ss:$16 sps:$4 sm:$0xff]   ;;  %v7200_v60 = vld [vmem:[%s8465_s7 + $0x60] ss:$16 sps:$4 sm:$0xff]   ;;  %v7283_v2 = vld [vmem:[%s8448_s20 + $0x68] ss:$16 sps:$4 sm:$0xff]  }
  0xe4   : > { %1618 = vmatprep.subr.bf16.mxu1 %v7141_v13  ;;  %v7205_v63 = vld [vmem:[%s8465_s7 + $0x84] ss:$16 sps:$4 sm:$0xff]   ;;  %v7297_v3 = vld [vmem:[%s8448_s20 + $0x8c] ss:$16 sps:$4 sm:$0xff]   ;;  %v7209_v4 = vld [vmem:[%s8465_s7 + $0x80] ss:$16 sps:$4 sm:$0xff]  }
  0xe5   : > { %v8544_v0 = vld [vmem:[%s8421_s23 + $0x84] ss:$16 sps:$4 sm:$0xff]   ;;  %v7210_v5 = vld [vmem:[%s8444_s26 + $0x88] ss:$16 sps:$4 sm:$0xff]   ;;  %v8554_v6 = vld [vmem:[%s8421_s23 + $0x80] ss:$16 sps:$4 sm:$0xff]  }
  0xe6   : > { %v7214_v7 = vld [vmem:[%s8465_s7 + $0xa4] ss:$16 sps:$4 sm:$0xff]   ;;  %v7221_v9 = vld [vmem:[%s8444_s26 + $0xac] ss:$16 sps:$4 sm:$0xff]   ;;  %v7295_v10 = vld [vmem:[%s8448_s20 + $0x88] ss:$16 sps:$4 sm:$0xff]  }
  0xe7   : > { %v8558_v8 = vld [vmem:[%s8421_s23 + $0xa4] ss:$16 sps:$4 sm:$0xff]   ;;  %v7309_v11 = vld [vmem:[%s8448_s20 + $0xac] ss:$16 sps:$4 sm:$0xff]   ;;  %v7218_v12 = vld [vmem:[%s8465_s7 + $0xa0] ss:$16 sps:$4 sm:$0xff]  }
  0xe8   : > { %v7219_v13 = vld [vmem:[%s8444_s26 + $0xa8] ss:$16 sps:$4 sm:$0xff]   ;;  %v7223_v15 = vld [vmem:[%s8465_s7 + $0xc4] ss:$16 sps:$4 sm:$0xff]   ;;  %s6306_s27 = sshll.u32 %s10202_s22, 6  ;;  %s9831_s19 = scalar_lea.vmem [#allocation12], %s8438_s18 }
  0xe9   : > { %s9792_s5 = scalar_lea.vmem [#allocation2], %s6306_s27  ;;  %p6165_p5 = scmp.ne.s32.totalorder %s10202_s22, 3 }
  0xea   : > { %945 = vmatpush1.bf16.xpose.msra.mxu0 %v7143_v14  ;;  %v8568_v14 = vld [vmem:[%s8421_s23 + $0xa0] ss:$16 sps:$4 sm:$0xff]  }
  0xeb   : > { %1619 = vmatpush1.bf16.xpose.msra.mxu1 %v7144_v16  ;;  %946 = vmatprep.subr.bf16.mxu0 %v7145_v18  ;;  %v8572_v16 = vld [vmem:[%s8421_s23 + $0xc4] ss:$16 sps:$4 sm:$0xff]   ;;  %v7230_v18 = vld [vmem:[%s8444_s26 + $0xcc] ss:$16 sps:$4 sm:$0xff]  }
  0xec   : > { %1620 = vmatprep.subr.bf16.mxu1 %v7147_v19  ;;  %v7307_v19 = vld [vmem:[%s8448_s20 + $0xa8] ss:$16 sps:$4 sm:$0xff]  }
  0xf2   : > { %947 = vmatpush1.bf16.xpose.msra.mxu0 %v7149_v20  ;;  %v7321_v20 = vld [vmem:[%s8448_s20 + $0xcc] ss:$16 sps:$4 sm:$0xff]  }
  0xf3   : > { %1621 = vmatpush1.bf16.xpose.msra.mxu1 %v7150_v21  ;;  %948 = vmatprep.subr.bf16.mxu0 %v7151_v22  ;;  %v7227_v21 = vld [vmem:[%s8465_s7 + $0xc0] ss:$16 sps:$4 sm:$0xff]  }
  0xf4   : > { %1622 = vmatprep.subr.bf16.mxu1 %v7153_v23  ;;  %v8581_v22 = vld [vmem:[%s8421_s23 + $0xc0] ss:$16 sps:$4 sm:$0xff]   ;;  %v7228_v23 = vld [vmem:[%s8444_s26 + $0xc8] ss:$16 sps:$4 sm:$0xff]  }
  0xfa   : > { %949 = vmatpush1.bf16.xpose.msra.mxu0 %v7155_v24  ;;  %v7232_v24 = vld [vmem:[%s8465_s7 + $0xe4] ss:$16 sps:$4 sm:$0xff]  }
  0xfb   : > { %1623 = vmatpush1.bf16.xpose.msra.mxu1 %v7156_v25  ;;  %950 = vmatprep.subr.bf16.mxu0 %v7157_v26  ;;  %v8586_v25 = vld [vmem:[%s8421_s23 + $0xe4] ss:$16 sps:$4 sm:$0xff]   ;;  %v7239_v26 = vld [vmem:[%s8444_s26 + $0xec] ss:$16 sps:$4 sm:$0xff]  }
  0xfc   : > { %1624 = vmatprep.subr.bf16.mxu1 %v7159_v27  ;;  %v7319_v27 = vld [vmem:[%s8448_s20 + $0xc8] ss:$16 sps:$4 sm:$0xff]  }
 0x102   : > { %951 = vmatpush1.bf16.xpose.msra.mxu0 %v7161_v28  ;;  %v7333_v28 = vld [vmem:[%s8448_s20 + $0xec] ss:$16 sps:$4 sm:$0xff]  }
 0x103   : > { %1625 = vmatpush1.bf16.xpose.msra.mxu1 %v7162_v29  ;;  %952 = vmatprep.subr.bf16.mxu0 %v7163_v30  ;;  %v7236_v29 = vld [vmem:[%s8465_s7 + $0xe0] ss:$16 sps:$4 sm:$0xff]  }
 0x104   : > { %1626 = vmatprep.subr.bf16.mxu1 %v7165_v31  ;;  %v8595_v30 = vld [vmem:[%s8421_s23 + $0xe0] ss:$16 sps:$4 sm:$0xff]   ;;  %v7237_v31 = vld [vmem:[%s8444_s26 + $0xe8] ss:$16 sps:$4 sm:$0xff]  }
 0x10a   : > { %953 = vmatpush1.bf16.xpose.msra.mxu0 %v7167_v32  ;;  %v7243_v32 = vld [vmem:[%s8465_s7 + $0xc] ss:$16 sps:$4 sm:$0xff]  }
 0x10b   : > { %1627 = vmatpush1.bf16.xpose.msra.mxu1 %v7168_v33  ;;  %1035 = vmatprep.subr.bf16.mxu0 %v7177_v34  ;;  %v8600_v33 = vld [vmem:[%s8421_s23 + $0x104] ss:$16 sps:$4 sm:$0xff]  }
 0x10c   : > { %1773 = vmatprep.subr.bf16.mxu1 %v7249_v35  ;;  %v7252_v34 = vld [vmem:[%s8493_s13 + $0x4] ss:$16 sps:$4 sm:$0xff]   ;;  %v7331_v35 = vld [vmem:[%s8448_s20 + $0xe8] ss:$16 sps:$4 sm:$0xff]   ;;  %s10205_s20 = sld [smem:[#allocation62_spill]] }
 0x111   : > { %971 = vmatmul.mubr.bf16.vlgmr.msra.gmra.mrb[0].mxu0 %v7169_v36  ;;  %v7241_v36 = vld [vmem:[%s8465_s7 + $0x8] ss:$16 sps:$4 sm:$0xff]  }
 0x112   : > { %1645 = vmatmul.mubr.bf16.vlgmr.msra.gmra.mrb[0].mxu1 %v8497_v37  ;;  %1036 = vmatpush1.bf16.xpose.msra.mxu0 %v7175_v38  ;;  %v8608_v38 = vld [vmem:[%s8421_s23 + $0x100] ss:$16 sps:$4 sm:$0xff]   ;;  %s1934_s11 = scalar_lea.vmem %s10205_s20, %s10202_s22 }
 0x113   : > { %978 = vmatprep.mubr.bf16.mxu0 %v7178_v39  ;;  %1652 = vmatprep.mubr.bf16.mxu1 %v8502_v40  ;;  %v7250_v39 = vld [vmem:[%s8493_s13] ss:$16 sps:$4 sm:$0xff]  }
 0x114   : > { %1037 = vmatprep.subr.bf16.mxu0 %v7185_v41  ;;  %1774 = vmatpush1.bf16.xpose.msra.mxu1 %v7247_v42  ;;  %v7253_v41 = vld [vmem:[%s8465_s7 + $0x2c] ss:$16 sps:$4 sm:$0xff]   ;;  %v8613_v42 = vld [vmem:[%s8421_s23 + $0x124] ss:$16 sps:$4 sm:$0xff]  }
 0x115   : > { %1775 = vmatprep.subr.bf16.mxu1 %v7261_v43  ;;  %v7264_v43 = vld [vmem:[%s8493_s13 + $0x24] ss:$16 sps:$4 sm:$0xff]  }
 0x119   : > { %979 = vmatmul.mubr.bf16.gmra.mrb[4].mxu0 %v7182_v44  ;;  %v7257_v44 = vld [vmem:[%s8465_s7 + $0x28] ss:$16 sps:$4 sm:$0xff]  }
 0x11a   : > { %1653 = vmatmul.mubr.bf16.gmra.mrb[4].mxu1 %v8512_v46  ;;  %1038 = vmatpush1.bf16.xpose.msra.mxu0 %v7183_v45  ;;  %v8620_v45 = vld [vmem:[%s8421_s23 + $0x120] ss:$16 sps:$4 sm:$0xff]  }
 0x11b   : > { %986 = vmatprep.mubr.bf16.mxu0 %v7187_v47  ;;  %1660 = vmatprep.mubr.bf16.mxu1 %v8516_v48  ;;  %v7262_v47 = vld [vmem:[%s8493_s13 + $0x20] ss:$16 sps:$4 sm:$0xff]  }
 0x11c   : > { %1039 = vmatprep.subr.bf16.mxu0 %v7194_v49  ;;  %1776 = vmatpush1.bf16.xpose.msra.mxu1 %v7259_v50  ;;  %v7265_v49 = vld [vmem:[%s8465_s7 + $0x4c] ss:$16 sps:$4 sm:$0xff]   ;;  %v8625_v50 = vld [vmem:[%s8421_s23 + $0x144] ss:$16 sps:$4 sm:$0xff]  }
 0x11d   : > { %1777 = vmatprep.subr.bf16.mxu1 %v7273_v51  ;;  %v7276_v51 = vld [vmem:[%s8493_s13 + $0x44] ss:$16 sps:$4 sm:$0xff]  }
 0x121   : > { %987 = vmatmul.mubr.bf16.gmra.mrb[8].mxu0 %v7191_v52  ;;  %v7269_v52 = vld [vmem:[%s8465_s7 + $0x48] ss:$16 sps:$4 sm:$0xff]  }
 0x122   : > { %1661 = vmatmul.mubr.bf16.gmra.mrb[8].mxu1 %v8526_v54  ;;  %1040 = vmatpush1.bf16.xpose.msra.mxu0 %v7192_v53  ;;  %v8632_v53 = vld [vmem:[%s8421_s23 + $0x140] ss:$16 sps:$4 sm:$0xff]  }
 0x123   : > { %994 = vmatprep.mubr.bf16.mxu0 %v7196_v55  ;;  %1668 = vmatprep.mubr.bf16.mxu1 %v8530_v56  ;;  %v7274_v55 = vld [vmem:[%s8493_s13 + $0x40] ss:$16 sps:$4 sm:$0xff]  }
 0x124   : > { %1041 = vmatprep.subr.bf16.mxu0 %v7203_v57  ;;  %1778 = vmatpush1.bf16.xpose.msra.mxu1 %v7271_v58  ;;  %v7277_v57 = vld [vmem:[%s8465_s7 + $0x6c] ss:$16 sps:$4 sm:$0xff]   ;;  %v8637_v58 = vld [vmem:[%s8421_s23 + $0x164] ss:$16 sps:$4 sm:$0xff]  }
 0x125   : > { %1779 = vmatprep.subr.bf16.mxu1 %v7285_v59  ;;  %v7288_v59 = vld [vmem:[%s8493_s13 + $0x64] ss:$16 sps:$4 sm:$0xff]  }
 0x129   : > { %995 = vmatmul.mubr.bf16.gmra.mrb[12].mxu0 %v7200_v60  ;;  %v7281_v60 = vld [vmem:[%s8465_s7 + $0x68] ss:$16 sps:$4 sm:$0xff]  }
 0x12a   : > { %1669 = vmatmul.mubr.bf16.gmra.mrb[12].mxu1 %v8540_v62  ;;  %1042 = vmatpush1.bf16.xpose.msra.mxu0 %v7201_v61  ;;  %v8644_v61 = vld [vmem:[%s8421_s23 + $0x160] ss:$16 sps:$4 sm:$0xff]  }
 0x12b   : > { %1002 = vmatprep.mubr.bf16.mxu0 %v7205_v63  ;;  %1676 = vmatprep.mubr.bf16.mxu1 %v8544_v0  ;;  %v7286_v63 = vld [vmem:[%s8493_s13 + $0x60] ss:$16 sps:$4 sm:$0xff]  }
 0x12c   : > { %1043 = vmatprep.subr.bf16.mxu0 %v7212_v1  ;;  %1780 = vmatpush1.bf16.xpose.msra.mxu1 %v7283_v2  ;;  %v7289_v1 = vld [vmem:[%s8465_s7 + $0x8c] ss:$16 sps:$4 sm:$0xff]   ;;  %v8649_v2 = vld [vmem:[%s8421_s23 + $0x184] ss:$16 sps:$4 sm:$0xff]  }
 0x12d   : > { %1781 = vmatprep.subr.bf16.mxu1 %v7297_v3  ;;  %v7300_v3 = vld [vmem:[%s8493_s13 + $0x84] ss:$16 sps:$4 sm:$0xff]  }
 0x131   : > { %1003 = vmatmul.mubr.bf16.gmra.mrb[16].mxu0 %v7209_v4  ;;  %v7293_v4 = vld [vmem:[%s8465_s7 + $0x88] ss:$16 sps:$4 sm:$0xff]  }
 0x132   : > { %1677 = vmatmul.mubr.bf16.gmra.mrb[16].mxu1 %v8554_v6  ;;  %1044 = vmatpush1.bf16.xpose.msra.mxu0 %v7210_v5  ;;  %v8656_v5 = vld [vmem:[%s8421_s23 + $0x180] ss:$16 sps:$4 sm:$0xff]  }
 0x133   : > { %1010 = vmatprep.mubr.bf16.mxu0 %v7214_v7  ;;  %1684 = vmatprep.mubr.bf16.mxu1 %v8558_v8  ;;  %v7298_v7 = vld [vmem:[%s8493_s13 + $0x80] ss:$16 sps:$4 sm:$0xff]  }
 0x134   : > { %1045 = vmatprep.subr.bf16.mxu0 %v7221_v9  ;;  %1782 = vmatpush1.bf16.xpose.msra.mxu1 %v7295_v10  ;;  %v7301_v9 = vld [vmem:[%s8465_s7 + $0xac] ss:$16 sps:$4 sm:$0xff]   ;;  %v8661_v10 = vld [vmem:[%s8421_s23 + $0x1a4] ss:$16 sps:$4 sm:$0xff]  }
 0x135   : > { %1783 = vmatprep.subr.bf16.mxu1 %v7309_v11  ;;  %v7312_v11 = vld [vmem:[%s8493_s13 + $0xa4] ss:$16 sps:$4 sm:$0xff]  }
 0x139   : > { %1011 = vmatmul.mubr.bf16.gmra.mrb[20].mxu0 %v7218_v12  ;;  %v7305_v12 = vld [vmem:[%s8465_s7 + $0xa8] ss:$16 sps:$4 sm:$0xff]  }
 0x13a   : > { %1685 = vmatmul.mubr.bf16.gmra.mrb[20].mxu1 %v8568_v14  ;;  %1046 = vmatpush1.bf16.xpose.msra.mxu0 %v7219_v13  ;;  %v8668_v13 = vld [vmem:[%s8421_s23 + $0x1a0] ss:$16 sps:$4 sm:$0xff]  }
 0x13b   : > { %1018 = vmatprep.mubr.bf16.mxu0 %v7223_v15  ;;  %1692 = vmatprep.mubr.bf16.mxu1 %v8572_v16  ;;  %v7310_v15 = vld [vmem:[%s8493_s13 + $0xa0] ss:$16 sps:$4 sm:$0xff]  }
 0x13c   : > { %1047 = vmatprep.subr.bf16.mxu0 %v7230_v18  ;;  %1784 = vmatpush1.bf16.xpose.msra.mxu1 %v7307_v19  ;;  %v7313_v18 = vld [vmem:[%s8465_s7 + $0xcc] ss:$16 sps:$4 sm:$0xff]   ;;  %v8673_v19 = vld [vmem:[%s8421_s23 + $0x1c4] ss:$16 sps:$4 sm:$0xff]  }
 0x13d   : > { %1785 = vmatprep.subr.bf16.mxu1 %v7321_v20  ;;  %v7324_v20 = vld [vmem:[%s8493_s13 + $0xc4] ss:$16 sps:$4 sm:$0xff]  }
 0x141   : > { %1019 = vmatmul.mubr.bf16.gmra.mrb[24].mxu0 %v7227_v21  ;;  %v7317_v21 = vld [vmem:[%s8465_s7 + $0xc8] ss:$16 sps:$4 sm:$0xff]  }
 0x142   : > { %1693 = vmatmul.mubr.bf16.gmra.mrb[24].mxu1 %v8581_v22  ;;  %1048 = vmatpush1.bf16.xpose.msra.mxu0 %v7228_v23  ;;  %v8680_v23 = vld [vmem:[%s8421_s23 + $0x1c0] ss:$16 sps:$4 sm:$0xff]  }
 0x143   : > { %1026 = vmatprep.mubr.bf16.mxu0 %v7232_v24  ;;  %1700 = vmatprep.mubr.bf16.mxu1 %v8586_v25  ;;  %v7322_v24 = vld [vmem:[%s8493_s13 + $0xc0] ss:$16 sps:$4 sm:$0xff]  }
 0x144   : > { %1049 = vmatprep.subr.bf16.mxu0 %v7239_v26  ;;  %1786 = vmatpush1.bf16.xpose.msra.mxu1 %v7319_v27  ;;  %v7325_v26 = vld [vmem:[%s8465_s7 + $0xec] ss:$16 sps:$4 sm:$0xff]   ;;  %v8685_v27 = vld [vmem:[%s8421_s23 + $0x1e4] ss:$16 sps:$4 sm:$0xff]  }
 0x145   : > { %1787 = vmatprep.subr.bf16.mxu1 %v7333_v28  ;;  %v7336_v28 = vld [vmem:[%s8493_s13 + $0xe4] ss:$16 sps:$4 sm:$0xff]  }
 0x149   : > { %1027 = vmatmul.mubr.bf16.gmra.mrb[28].mxu0 %v7236_v29  ;;  %v7329_v29 = vld [vmem:[%s8465_s7 + $0xe8] ss:$16 sps:$4 sm:$0xff]   ;;  %s10274_s7 = sld [smem:[#allocation63_spill]] (!%p6165_p5) }
 0x14a   : > { %1701 = vmatmul.mubr.bf16.gmra.mrb[28].mxu1 %v8595_v30  ;;  %1050 = vmatpush1.bf16.xpose.msra.mxu0 %v7237_v31  ;;  %v8692_v31 = vld [vmem:[%s8421_s23 + $0x1e0] ss:$16 sps:$4 sm:$0xff]  }
 0x14b   : > { %1067 = vmatprep.mubr.bf16.mxu0 %v7243_v32  ;;  %1708 = vmatprep.mubr.bf16.mxu1 %v8600_v33  ;;  %v7334_v32 = vld [vmem:[%s8493_s13 + $0xe0] ss:$16 sps:$4 sm:$0xff]  }
 0x14c   : > { %2102 = vmatprep.subr.bf16.mxu0 %v7252_v34  ;;  %1788 = vmatpush1.bf16.xpose.msra.mxu1 %v7331_v35  ;;  %v8696_v34 = vld [vmem:[%s8421_s23 + $0xc] ss:$16 sps:$4 sm:$0xff]  }
 0x14d   : > { %v7366_v35 = vld [vmem:[%s8493_s13 + $0xc] ss:$16 sps:$4 sm:$0xff]  }
 0x151   : > { %1068 = vmatmul.mubr.bf16.vlgmr.msra.gmra.mrb[0].mxu0 %v7241_v36  ;;  %v8703_v36 = vld [vmem:[%s8421_s23 + $0x8] ss:$16 sps:$4 sm:$0xff]  }
 0x152   : > { %1709 = vmatmul.mubr.bf16.gmra.mrb[32].mxu1 %v8608_v38  ;;  %2103 = vmatpush1.bf16.xpose.msra.mxu0 %v7250_v39  ;;  %v8706_v39 = vld [vmem:[%s8421_s23 + $0x2c] ss:$16 sps:$4 sm:$0xff]  }
 0x153   : > { %1075 = vmatprep.mubr.bf16.mxu0 %v7253_v41  ;;  %1716 = vmatprep.mubr.bf16.mxu1 %v8613_v42  ;;  %v7364_v41 = vld [vmem:[%s8493_s13 + $0x8] ss:$16 sps:$4 sm:$0xff]  }
 0x154   : > { %2104 = vmatprep.subr.bf16.mxu0 %v7264_v43  ;;  %v7372_v43 = vld [vmem:[%s8493_s13 + $0x2c] ss:$16 sps:$4 sm:$0xff]  }
 0x159   : > { %1076 = vmatmul.mubr.bf16.gmra.mrb[4].mxu0 %v7257_v44  ;;  %v8718_v44 = vld [vmem:[%s8421_s23 + $0x4c] ss:$16 sps:$4 sm:$0xff]  }
 0x15a   : > { %1717 = vmatmul.mubr.bf16.gmra.mrb[36].mxu1 %v8620_v45  ;;  %2105 = vmatpush1.bf16.xpose.msra.mxu0 %v7262_v47  ;;  %v7370_v47 = vld [vmem:[%s8493_s13 + $0x28] ss:$16 sps:$4 sm:$0xff]  }
 0x15b   : > { %1083 = vmatprep.mubr.bf16.mxu0 %v7265_v49  ;;  %1724 = vmatprep.mubr.bf16.mxu1 %v8625_v50  ;;  %v7378_v49 = vld [vmem:[%s8493_s13 + $0x4c] ss:$16 sps:$4 sm:$0xff]  }
 0x15c   : > { %2106 = vmatprep.subr.bf16.mxu0 %v7276_v51  ;;  %v7376_v51 = vld [vmem:[%s8493_s13 + $0x48] ss:$16 sps:$4 sm:$0xff]  }
 0x161   : > { %1084 = vmatmul.mubr.bf16.gmra.mrb[8].mxu0 %v7269_v52  ;;  %v7384_v52 = vld [vmem:[%s8493_s13 + $0x6c] ss:$16 sps:$4 sm:$0xff]  }
 0x162   : > { %1725 = vmatmul.mubr.bf16.gmra.mrb[40].mxu1 %v8632_v53  ;;  %2107 = vmatpush1.bf16.xpose.msra.mxu0 %v7274_v55  ;;  %v7382_v55 = vld [vmem:[%s8493_s13 + $0x68] ss:$16 sps:$4 sm:$0xff]  }
 0x163   : > { %1091 = vmatprep.mubr.bf16.mxu0 %v7277_v57  ;;  %1732 = vmatprep.mubr.bf16.mxu1 %v8637_v58  ;;  %v7390_v57 = vld [vmem:[%s8493_s13 + $0x8c] ss:$16 sps:$4 sm:$0xff]  }
 0x164   : > { %2108 = vmatprep.subr.bf16.mxu0 %v7288_v59  ;;  %v7388_v59 = vld [vmem:[%s8493_s13 + $0x88] ss:$16 sps:$4 sm:$0xff]  }
 0x169   : > { %1092 = vmatmul.mubr.bf16.gmra.mrb[12].mxu0 %v7281_v60  ;;  %v7396_v60 = vld [vmem:[%s8493_s13 + $0xac] ss:$16 sps:$4 sm:$0xff]  }
 0x16a   : > { %1733 = vmatmul.mubr.bf16.gmra.mrb[44].mxu1 %v8644_v61  ;;  %2109 = vmatpush1.bf16.xpose.msra.mxu0 %v7286_v63  ;;  %v7394_v63 = vld [vmem:[%s8493_s13 + $0xa8] ss:$16 sps:$4 sm:$0xff]  }
 0x16b   : > { %1099 = vmatprep.mubr.bf16.mxu0 %v7289_v1  ;;  %1740 = vmatprep.mubr.bf16.mxu1 %v8649_v2  ;;  %v7402_v1 = vld [vmem:[%s8493_s13 + $0xcc] ss:$16 sps:$4 sm:$0xff]  }
 0x16c   : > { %2110 = vmatprep.subr.bf16.mxu0 %v7300_v3  ;;  %v7400_v3 = vld [vmem:[%s8493_s13 + $0xc8] ss:$16 sps:$4 sm:$0xff]  }
 0x171   : > { %1100 = vmatmul.mubr.bf16.gmra.mrb[16].mxu0 %v7293_v4  ;;  %v7408_v4 = vld [vmem:[%s8493_s13 + $0xec] ss:$16 sps:$4 sm:$0xff]  }
 0x172   : > { %1741 = vmatmul.mubr.bf16.gmra.mrb[48].mxu1 %v8656_v5  ;;  %2111 = vmatpush1.bf16.xpose.msra.mxu0 %v7298_v7  ;;  %v7406_v7 = vld [vmem:[%s8493_s13 + $0xe8] ss:$16 sps:$4 sm:$0xff]  }
 0x173   : > { %1107 = vmatprep.mubr.bf16.mxu0 %v7301_v9  ;;  %1748 = vmatprep.mubr.bf16.mxu1 %v8661_v10  ;;  %v8811_v9 = vld [vmem:[%s8421_s23 + $0x14c] ss:$16 sps:$4 sm:$0xff]  }
 0x174   : > { %2112 = vmatprep.subr.bf16.mxu0 %v7312_v11  ;;  %v8883_v11 = vld [vmem:[%s610_s24] ss:$0 sm:$0xff] }
 0x179   : > { %1108 = vmatmul.mubr.bf16.gmra.mrb[20].mxu0 %v7305_v12 }
 0x17a   : > { %1749 = vmatmul.mubr.bf16.gmra.mrb[52].mxu1 %v8668_v13  ;;  %2113 = vmatpush1.bf16.xpose.msra.mxu0 %v7310_v15 }
 0x17b   : > { %1115 = vmatprep.mubr.bf16.mxu0 %v7313_v18  ;;  %1756 = vmatprep.mubr.bf16.mxu1 %v8673_v19 }
 0x17c   : > { %2114 = vmatprep.subr.bf16.mxu0 %v7324_v20 }
 0x181   : > { %1116 = vmatmul.mubr.bf16.gmra.mrb[24].mxu0 %v7317_v21 }
 0x182   : > { %1757 = vmatmul.mubr.bf16.gmra.mrb[56].mxu1 %v8680_v23  ;;  %2115 = vmatpush1.bf16.xpose.msra.mxu0 %v7322_v24 }
 0x183   : > { %1123 = vmatprep.mubr.bf16.mxu0 %v7325_v26  ;;  %1764 = vmatprep.mubr.bf16.mxu1 %v8685_v27 }
 0x184   : > { %2116 = vmatprep.subr.bf16.mxu0 %v7336_v28 }
 0x189   : > { %1124 = vmatmul.mubr.bf16.gmra.mrb[28].mxu0 %v7329_v29 }
 0x18a   : > { %1765 = vmatmul.mubr.bf16.gmra.mrb[60].mxu1 %v8692_v31  ;;  %2117 = vmatpush1.bf16.xpose.msra.mxu0 %v7334_v32 }
 0x18b   : > { %1805 = vmatprep.mubr.bf16.mxu1 %v8696_v34  ;;  %2134 = vmatprep.mubr.bf16.mxu0 %v8471_v17  ;;  %v8715_v17 = vld [vmem:[%s8421_s23 + $0x28] ss:$16 sps:$4 sm:$0xff]  }
 0x18c   : > { %2263 = vmatprep.subr.bf16.mxu0 %v7366_v35 }
 0x191   : > { %2135 = vmatmul.mubr.bf16.vlgmr.msra.gmra.mrb[32].mxu0 %v8497_v37  ;;  %v8727_v37 = vld [vmem:[%s8421_s23 + $0x48] ss:$16 sps:$4 sm:$0xff]  }
 0x192   : > { %1806 = vmatmul.mubr.bf16.vlgmr.msra.gmra.mrb[0].mxu1 %v8703_v36  ;;  %2142 = vmatprep.mubr.bf16.mxu0 %v8502_v40  ;;  %v8730_v40 = vld [vmem:[%s8421_s23 + $0x6c] ss:$16 sps:$4 sm:$0xff]  }
 0x193   : > { %1813 = vmatprep.mubr.bf16.mxu1 %v8706_v39  ;;  %2264 = vmatpush1.bf16.xpose.msra.mxu0 %v7364_v41 }
 0x194   : > { %2265 = vmatprep.subr.bf16.mxu0 %v7372_v43 }
 0x199   : > { %2143 = vmatmul.mubr.bf16.gmra.mrb[36].mxu0 %v8512_v46  ;;  %v8739_v46 = vld [vmem:[%s8421_s23 + $0x68] ss:$16 sps:$4 sm:$0xff]  }
 0x19a   : > { %1814 = vmatmul.mubr.bf16.gmra.mrb[4].mxu1 %v8715_v17  ;;  %2150 = vmatprep.mubr.bf16.mxu0 %v8516_v48  ;;  %v8742_v48 = vld [vmem:[%s8421_s23 + $0x8c] ss:$16 sps:$4 sm:$0xff]  }
 0x19b   : > { %1821 = vmatprep.mubr.bf16.mxu1 %v8718_v44  ;;  %2266 = vmatpush1.bf16.xpose.msra.mxu0 %v7370_v47 }
 0x19c   : > { %2267 = vmatprep.subr.bf16.mxu0 %v7378_v49 }
 0x1a1   : > { %2151 = vmatmul.mubr.bf16.gmra.mrb[40].mxu0 %v8526_v54  ;;  %v8751_v54 = vld [vmem:[%s8421_s23 + $0x88] ss:$16 sps:$4 sm:$0xff]  }
 0x1a2   : > { %1822 = vmatmul.mubr.bf16.gmra.mrb[8].mxu1 %v8727_v37  ;;  %2158 = vmatprep.mubr.bf16.mxu0 %v8530_v56  ;;  %v8754_v56 = vld [vmem:[%s8421_s23 + $0xac] ss:$16 sps:$4 sm:$0xff]  }
 0x1a3   : > { %1829 = vmatprep.mubr.bf16.mxu1 %v8730_v40  ;;  %2268 = vmatpush1.bf16.xpose.msra.mxu0 %v7376_v51 }
 0x1a4   : > { %2269 = vmatprep.subr.bf16.mxu0 %v7384_v52 }
 0x1a9   : > { %2159 = vmatmul.mubr.bf16.gmra.mrb[44].mxu0 %v8540_v62  ;;  %v8763_v62 = vld [vmem:[%s8421_s23 + $0xa8] ss:$16 sps:$4 sm:$0xff]  }
 0x1aa   : > { %1830 = vmatmul.mubr.bf16.gmra.mrb[12].mxu1 %v8739_v46  ;;  %2166 = vmatprep.mubr.bf16.mxu0 %v8544_v0  ;;  %v8766_v0 = vld [vmem:[%s8421_s23 + $0xcc] ss:$16 sps:$4 sm:$0xff]  }
 0x1ab   : > { %1837 = vmatprep.mubr.bf16.mxu1 %v8742_v48  ;;  %2270 = vmatpush1.bf16.xpose.msra.mxu0 %v7382_v55 }
 0x1ac   : > { %2271 = vmatprep.subr.bf16.mxu0 %v7390_v57 }
 0x1b1   : > { %2167 = vmatmul.mubr.bf16.gmra.mrb[48].mxu0 %v8554_v6  ;;  %v8775_v6 = vld [vmem:[%s8421_s23 + $0xc8] ss:$16 sps:$4 sm:$0xff]  }
 0x1b2   : > { %1838 = vmatmul.mubr.bf16.gmra.mrb[16].mxu1 %v8751_v54  ;;  %2174 = vmatprep.mubr.bf16.mxu0 %v8558_v8  ;;  %v8778_v8 = vld [vmem:[%s8421_s23 + $0xec] ss:$16 sps:$4 sm:$0xff]  }
 0x1b3   : > { %1845 = vmatprep.mubr.bf16.mxu1 %v8754_v56  ;;  %2272 = vmatpush1.bf16.xpose.msra.mxu0 %v7388_v59 }
 0x1b4   : > { %2273 = vmatprep.subr.bf16.mxu0 %v7396_v60 }
 0x1b9   : > { %2175 = vmatmul.mubr.bf16.gmra.mrb[52].mxu0 %v8568_v14  ;;  %v8787_v14 = vld [vmem:[%s8421_s23 + $0xe8] ss:$16 sps:$4 sm:$0xff]  }
 0x1ba   : > { %1846 = vmatmul.mubr.bf16.gmra.mrb[20].mxu1 %v8763_v62  ;;  %2182 = vmatprep.mubr.bf16.mxu0 %v8572_v16  ;;  %v8790_v16 = vld [vmem:[%s8421_s23 + $0x10c] ss:$16 sps:$4 sm:$0xff]  }
 0x1bb   : > { %1853 = vmatprep.mubr.bf16.mxu1 %v8766_v0  ;;  %2274 = vmatpush1.bf16.xpose.msra.mxu0 %v7394_v63 }
 0x1bc   : > { %2275 = vmatprep.subr.bf16.mxu0 %v7402_v1 }
 0x1c1   : > { %2183 = vmatmul.mubr.bf16.gmra.mrb[56].mxu0 %v8581_v22  ;;  %v8798_v22 = vld [vmem:[%s8421_s23 + $0x108] ss:$16 sps:$4 sm:$0xff]  }
 0x1c2   : > { %1854 = vmatmul.mubr.bf16.gmra.mrb[24].mxu1 %v8775_v6  ;;  %2190 = vmatprep.mubr.bf16.mxu0 %v8586_v25  ;;  %v8801_v25 = vld [vmem:[%s8421_s23 + $0x12c] ss:$16 sps:$4 sm:$0xff]  }
 0x1c3   : > { %1861 = vmatprep.mubr.bf16.mxu1 %v8778_v8  ;;  %2276 = vmatpush1.bf16.xpose.msra.mxu0 %v7400_v3 }
 0x1c4   : > { %2277 = vmatprep.subr.bf16.mxu0 %v7408_v4 }
 0x1c9   : > { %2191 = vmatmul.mubr.bf16.gmra.mrb[60].mxu0 %v8595_v30  ;;  %v8808_v30 = vld [vmem:[%s8421_s23 + $0x128] ss:$16 sps:$4 sm:$0xff]  }
 0x1ca   : > { %1862 = vmatmul.mubr.bf16.gmra.mrb[28].mxu1 %v8787_v14  ;;  %2198 = vmatprep.mubr.bf16.mxu0 %v8600_v33  ;;  %v8818_v33 = vld [vmem:[%s8421_s23 + $0x148] ss:$16 sps:$4 sm:$0xff]  }
 0x1cb   : > { %1869 = vmatprep.mubr.bf16.mxu1 %v8790_v16  ;;  %2278 = vmatpush1.bf16.xpose.msra.mxu0 %v7406_v7 }
 0x1d1   : > { %2199 = vmatmul.mubr.bf16.gmra.mrb[64].mxu0 %v8608_v38  ;;  %v8821_v38 = vld [vmem:[%s8421_s23 + $0x16c] ss:$16 sps:$4 sm:$0xff]  }
 0x1d2   : > { %1870 = vmatmul.mubr.bf16.gmra.mrb[32].mxu1 %v8798_v22  ;;  %2206 = vmatprep.mubr.bf16.mxu0 %v8613_v42  ;;  %v8828_v42 = vld [vmem:[%s8421_s23 + $0x168] ss:$16 sps:$4 sm:$0xff]  }
 0x1d3   : > { %1877 = vmatprep.mubr.bf16.mxu1 %v8801_v25 }
 0x1d9   : > { %2207 = vmatmul.mubr.bf16.gmra.mrb[68].mxu0 %v8620_v45  ;;  %v8831_v45 = vld [vmem:[%s8421_s23 + $0x18c] ss:$16 sps:$4 sm:$0xff]  }
 0x1da   : > { %1878 = vmatmul.mubr.bf16.gmra.mrb[36].mxu1 %v8808_v30  ;;  %2214 = vmatprep.mubr.bf16.mxu0 %v8625_v50  ;;  %v8838_v50 = vld [vmem:[%s8421_s23 + $0x188] ss:$16 sps:$4 sm:$0xff]  }
 0x1db   : > { %1885 = vmatprep.mubr.bf16.mxu1 %v8811_v9 }
 0x1e1   : > { %2215 = vmatmul.mubr.bf16.gmra.mrb[72].mxu0 %v8632_v53  ;;  %v8841_v53 = vld [vmem:[%s8421_s23 + $0x1ac] ss:$16 sps:$4 sm:$0xff]  }
 0x1e2   : > { %1886 = vmatmul.mubr.bf16.gmra.mrb[40].mxu1 %v8818_v33  ;;  %2222 = vmatprep.mubr.bf16.mxu0 %v8637_v58  ;;  %v8848_v58 = vld [vmem:[%s8421_s23 + $0x1a8] ss:$16 sps:$4 sm:$0xff]  }
 0x1e3   : > { %1893 = vmatprep.mubr.bf16.mxu1 %v8821_v38 }
 0x1e9   : > { %2223 = vmatmul.mubr.bf16.gmra.mrb[76].mxu0 %v8644_v61  ;;  %v8851_v61 = vld [vmem:[%s8421_s23 + $0x1cc] ss:$16 sps:$4 sm:$0xff]  }
 0x1ea   : > { %1894 = vmatmul.mubr.bf16.gmra.mrb[44].mxu1 %v8828_v42  ;;  %2230 = vmatprep.mubr.bf16.mxu0 %v8649_v2  ;;  %v8858_v2 = vld [vmem:[%s8421_s23 + $0x1c8] ss:$16 sps:$4 sm:$0xff]  }
 0x1eb   : > { %1901 = vmatprep.mubr.bf16.mxu1 %v8831_v45 }
 0x1f1   : > { %2231 = vmatmul.mubr.bf16.gmra.mrb[80].mxu0 %v8656_v5  ;;  %v8861_v5 = vld [vmem:[%s8421_s23 + $0x1ec] ss:$16 sps:$4 sm:$0xff]  }
 0x1f2   : > { %1902 = vmatmul.mubr.bf16.gmra.mrb[48].mxu1 %v8838_v50  ;;  %2238 = vmatprep.mubr.bf16.mxu0 %v8661_v10  ;;  %v8868_v10 = vld [vmem:[%s8421_s23 + $0x1e8] ss:$16 sps:$4 sm:$0xff]   ;;  %s8090_s23 = smov 64  }
 0x1f3   : > { %1909 = vmatprep.mubr.bf16.mxu1 %v8841_v53 }
 0x1f9   : > { %2239 = vmatmul.mubr.bf16.gmra.mrb[84].mxu0 %v8668_v13 }
 0x1fa   : > { %1910 = vmatmul.mubr.bf16.gmra.mrb[52].mxu1 %v8848_v58  ;;  %2246 = vmatprep.mubr.bf16.mxu0 %v8673_v19 }
 0x1fb   : > { %1917 = vmatprep.mubr.bf16.mxu1 %v8851_v61 }
 0x201   : > { %2247 = vmatmul.mubr.bf16.gmra.mrb[88].mxu0 %v8680_v23 }
 0x202   : > { %1918 = vmatmul.mubr.bf16.gmra.mrb[56].mxu1 %v8858_v2  ;;  %2254 = vmatprep.mubr.bf16.mxu0 %v8685_v27 }
 0x203   : > { %1925 = vmatprep.mubr.bf16.mxu1 %v8861_v5 }
 0x209   : > { %2255 = vmatmul.mubr.bf16.gmra.mrb[92].mxu0 %v8692_v31 }
 0x20a   : > { %1926 = vmatmul.mubr.bf16.gmra.mrb[60].mxu1 %v8868_v10  ;;  %2295 = vmatprep.mubr.bf16.mxu0 %v8696_v34 }
 0x211   : > { %2296 = vmatmul.mubr.bf16.vlgmr.msra.gmra.mrb[32].mxu0 %v8703_v36 }
 0x212   : > { %2303 = vmatprep.mubr.bf16.mxu0 %v8706_v39 }
 0x219   : > { %2304 = vmatmul.mubr.bf16.gmra.mrb[36].mxu0 %v8715_v17 }
 0x21a   : > { %2311 = vmatprep.mubr.bf16.mxu0 %v8718_v44 }
 0x221   : > { %2312 = vmatmul.mubr.bf16.gmra.mrb[40].mxu0 %v8727_v37 }
 0x222   : > { %2319 = vmatprep.mubr.bf16.mxu0 %v8730_v40 }
 0x224   : > { %v1069_v12 = vpop.f32.mrb[0].mxu0 }
 0x225   : > { %v6500_v13 = vadd.f32 %v8883_v11, %v1069_v12  ;;  %v1071_v15 = vpop.f32.mrb[1].mxu0 }
 0x226   : > { %v1072_v18 = vpop.f32.mrb[2].mxu0 }
 0x227   : > { %v6501_v19 = vadd.f32 %v8883_v11, %v1072_v18  ;;  %v1074_v20 = vpop.f32.mrb[3].mxu0 }
 0x229   : > { %2320 = vmatmul.mubr.bf16.gmra.mrb[44].mxu0 %v8739_v46  ;;  %v8888_v21 = vpack.c.bf16 %v6501_v19, %v6500_v13 }
 0x22a   : > { %2327 = vmatprep.mubr.bf16.mxu0 %v8742_v48 }
 0x22b   : > { %6324 = vmatprep.mubr.msk.bf16.mxu1 %vm2464_vm0, %v8888_v21 }
 0x22c   : > { %v1077_v23 = vpop.f32.mrb[4].mxu0 }
 0x22d   : > { %v6502_v24 = vadd.f32 %v8883_v11, %v1077_v23  ;;  %v1079_v26 = vpop.f32.mrb[5].mxu0 }
 0x22e   : > { %v1080_v27 = vpop.f32.mrb[6].mxu0 }
 0x22f   : > { %v6503_v28 = vadd.f32 %v8883_v11, %v1080_v27  ;;  %v1082_v29 = vpop.f32.mrb[7].mxu0 }
 0x231   : > { %2328 = vmatmul.mubr.bf16.gmra.mrb[48].mxu0 %v8751_v54  ;;  %v8896_v31 = vpack.c.bf16 %v6503_v28, %v6502_v24 }
 0x232   : > { %2335 = vmatprep.mubr.bf16.mxu0 %v8754_v56 }
 0x234   : > { %v1085_v32 = vpop.f32.mrb[8].mxu0 }
 0x235   : > { %v6504_v34 = vadd.f32 %v8883_v11, %v1085_v32  ;;  %v1087_v35 = vpop.f32.mrb[9].mxu0 }
 0x236   : > { %v1088_v36 = vpop.f32.mrb[10].mxu0 }
 0x237   : > { %v6505_v39 = vadd.f32 %v8883_v11, %v1088_v36  ;;  %v1090_v41 = vpop.f32.mrb[11].mxu0 }
 0x239   : > { %2336 = vmatmul.mubr.bf16.gmra.mrb[52].mxu0 %v8763_v62  ;;  %v8902_v43 = vpack.c.bf16 %v6505_v39, %v6504_v34 }
 0x23a   : > { %2343 = vmatprep.mubr.bf16.mxu0 %v8766_v0 }
 0x23c   : > { %v1093_v17 = vpop.f32.mrb[12].mxu0 }
 0x23d   : > { %v6506_v44 = vadd.f32 %v8883_v11, %v1093_v17  ;;  %v1095_v47 = vpop.f32.mrb[13].mxu0 }
 0x23e   : > { %v1096_v49 = vpop.f32.mrb[14].mxu0 }
 0x23f   : > { %v6507_v37 = vadd.f32 %v8883_v11, %v1096_v49  ;;  %v1098_v40 = vpop.f32.mrb[15].mxu0 }
 0x241   : > { %2344 = vmatmul.mubr.bf16.gmra.mrb[56].mxu0 %v8775_v6  ;;  %v8908_v51 = vpack.c.bf16 %v6507_v37, %v6506_v44 }
 0x242   : > { %2351 = vmatprep.mubr.bf16.mxu0 %v8778_v8 }
 0x244   : > { %v1101_v52 = vpop.f32.mrb[16].mxu0 }
 0x245   : > { %v6508_v46 = vadd.f32 %v8883_v11, %v1101_v52  ;;  %v1103_v48 = vpop.f32.mrb[17].mxu0 }
 0x246   : > { %v1104_v55 = vpop.f32.mrb[18].mxu0 }
 0x247   : > { %v6509_v57 = vadd.f32 %v8883_v11, %v1104_v55  ;;  %v1106_v54 = vpop.f32.mrb[19].mxu0 }
 0x249   : > { %2352 = vmatmul.mubr.bf16.gmra.mrb[60].mxu0 %v8787_v14  ;;  %v8914_v56 = vpack.c.bf16 %v6509_v57, %v6508_v46 }
 0x24a   : > { %2359 = vmatprep.mubr.bf16.mxu0 %v8790_v16 }
 0x24c   : > { %v1109_v59 = vpop.f32.mrb[20].mxu0 }
 0x24d   : > { %v6510_v60 = vadd.f32 %v8883_v11, %v1109_v59  ;;  %v1111_v62 = vpop.f32.mrb[21].mxu0 }
 0x24e   : > { %v1112_v0 = vpop.f32.mrb[22].mxu0 }
 0x24f   : > { %v6511_v63 = vadd.f32 %v8883_v11, %v1112_v0  ;;  %v1114_v1 = vpop.f32.mrb[23].mxu0 }
 0x251   : > { %2360 = vmatmul.mubr.bf16.gmra.mrb[64].mxu0 %v8798_v22  ;;  %v8920_v6 = vpack.c.bf16 %v6511_v63, %v6510_v60 }
 0x252   : > { %2367 = vmatprep.mubr.bf16.mxu0 %v8801_v25 }
 0x254   : > { %v1117_v8 = vpop.f32.mrb[24].mxu0 }
 0x255   : > { %v6512_v3 = vadd.f32 %v8883_v11, %v1117_v8  ;;  %v1119_v4 = vpop.f32.mrb[25].mxu0 }
 0x256   : > { %v1120_v14 = vpop.f32.mrb[26].mxu0 }
 0x257   : > { %v6513_v16 = vadd.f32 %v8883_v11, %v1120_v14  ;;  %v1122_v7 = vpop.f32.mrb[27].mxu0 }
 0x259   : > { %2368 = vmatmul.mubr.bf16.gmra.mrb[68].mxu0 %v8808_v30  ;;  %v8926_v12 = vpack.c.bf16 %v6513_v16, %v6512_v3 }
 0x25a   : > { %2375 = vmatprep.mubr.bf16.mxu0 %v8811_v9 }
 0x25c   : > { %v1125_v13 = vpop.f32.mrb[28].mxu0 }
 0x25d   : > { %v6514_v22 = vadd.f32 %v8883_v11, %v1125_v13  ;;  %v1127_v15 = vpop.f32.mrb[29].mxu0 }
 0x25e   : > { %v1128_v18 = vpop.f32.mrb[30].mxu0 }
 0x25f   : > { %v6515_v25 = vadd.f32 %v8883_v11, %v1128_v18  ;;  %v1130_v19 = vpop.f32.mrb[31].mxu0 }
 0x261   : > { %2376 = vmatmul.mubr.bf16.gmra.mrb[72].mxu0 %v8818_v33  ;;  %v8932_v20 = vpack.c.bf16 %v6515_v25, %v6514_v22 }
 0x262   : > { %2383 = vmatprep.mubr.bf16.mxu0 %v8821_v38 }
 0x265   : > { %v1807_v23 = vpop.f32.mrb[0].mxu1 }
 0x266   : > { %v1809_v30 = vpop.f32.mrb[1].mxu1 }
 0x267   : > { %v1810_v24 = vpop.f32.mrb[2].mxu1 }
 0x268   : > { %v2432_v26 = vpack.c.bf16 %v1810_v24, %v1807_v23  ;;  %v1812_v27 = vpop.f32.mrb[3].mxu1 }
 0x269   : > { %2384 = vmatmul.mubr.bf16.gmra.mrb[76].mxu0 %v8828_v42 }
 0x26a   : > { %3043 = vrot.lane.b32.xlu0 %v2432_v26, %s8090_s23  ;;  %2391 = vmatprep.mubr.bf16.mxu0 %v8831_v45  ;;  %v2490_v3 = vsel %vm2464_vm0, %v2432_v26, 0 }
 0x26d   : > { %v1815_v9 = vpop.f32.mrb[4].mxu1 }
 0x26e   : > { %v1817_v11 = vpop.f32.mrb[5].mxu1 }
 0x26f   : > { %v1818_v28 = vpop.f32.mrb[6].mxu1 }
 0x270   : > { %v2433_v33 = vpack.c.bf16 %v1818_v28, %v1815_v9  ;;  %v1820_v29 = vpop.f32.mrb[7].mxu1 }
 0x271   : > { %2392 = vmatmul.mubr.bf16.gmra.mrb[80].mxu0 %v8838_v50 }
 0x272   : > { %3045 = vrot.lane.b32.xlu1 %v2433_v33, %s8090_s23  ;;  %2399 = vmatprep.mubr.bf16.mxu0 %v8841_v53  ;;  %v2493_v22 = vsel %vm2464_vm0, %v2433_v33, 0 }
 0x275   : > { %v1823_v38 = vpop.f32.mrb[8].mxu1 }
 0x276   : > { %v1825_v32 = vpop.f32.mrb[9].mxu1 }
 0x277   : > { %v1826_v34 = vpop.f32.mrb[10].mxu1 }
 0x278   : > { %v2434_v35 = vpack.c.bf16 %v1826_v34, %v1823_v38  ;;  %v1828_v36 = vpop.f32.mrb[11].mxu1 }
 0x279   : > { %2400 = vmatmul.mubr.bf16.gmra.mrb[84].mxu0 %v8848_v58 }
 0x27a   : > { %2407 = vmatprep.mubr.bf16.mxu0 %v8851_v61  ;;  %v2496_v30 = vsel %vm2464_vm0, %v2434_v35, 0 }
 0x27d   : > { %v1831_v42 = vpop.f32.mrb[12].mxu1 }
 0x27e   : > { %v1833_v45 = vpop.f32.mrb[13].mxu1 }
 0x27f   : > { %v1834_v39 = vpop.f32.mrb[14].mxu1 }
 0x280   : > { %v8943_v41 = vpack.c.bf16 %v1834_v39, %v1831_v42  ;;  %v1836_v17 = vpop.f32.mrb[15].mxu1 }
 0x281   : > { %2408 = vmatmul.mubr.bf16.gmra.mrb[88].mxu0 %v8858_v2 }
 0x282   : > { %2415 = vmatprep.mubr.bf16.mxu0 %v8861_v5  ;;  %v2499_v28 = vsel %vm2464_vm0, %v8943_v41, 0 }
 0x285   : > { %v1839_v50 = vpop.f32.mrb[16].mxu1 }
 0x286   : > { %v1841_v53 = vpop.f32.mrb[17].mxu1 }
 0x287   : > { %v1842_v44 = vpop.f32.mrb[18].mxu1 }
 0x288   : > { %v8947_v47 = vpack.c.bf16 %v1842_v44, %v1839_v50  ;;  %v1844_v49 = vpop.f32.mrb[19].mxu1 }
 0x289   : > { %2416 = vmatmul.mubr.bf16.gmra.mrb[92].mxu0 %v8868_v10 }
 0x28d   : > { %v1847_v58 = vpop.f32.mrb[20].mxu1 }
 0x28e   : > { %v1849_v61 = vpop.f32.mrb[21].mxu1 }
 0x28f   : > { %v1850_v37 = vpop.f32.mrb[22].mxu1 }
 0x290   : > { %v8950_v40 = vpack.c.bf16 %v1850_v37, %v1847_v58  ;;  %v1852_v52 = vpop.f32.mrb[23].mxu1 }
 0x292   : > { %v2505_v17 = vsel %vm2464_vm0, %v8950_v40, 0 }
 0x295   : > { %v1855_v46 = vpop.f32.mrb[24].mxu1 }
 0x296   : > { %v1857_v48 = vpop.f32.mrb[25].mxu1 }
 0x297   : > { %v1858_v55 = vpop.f32.mrb[26].mxu1 }
 0x298   : > { %v8952_v2 = vpack.c.bf16 %v1858_v55, %v1855_v46  ;;  %v1860_v5 = vpop.f32.mrb[27].mxu1  ;;  %v9008_v55 = vld [vmem:[%s1934_s11] ss:$0 sm:$0xff] }
 0x29a   : > { %v2508_v58 = vsel %vm2464_vm0, %v8952_v2, 0 }
 0x29d   : > { %v1863_v57 = vpop.f32.mrb[28].mxu1 }
 0x29e   : > { %v1865_v54 = vpop.f32.mrb[29].mxu1 }
 0x29f   : > { %v1866_v59 = vpop.f32.mrb[30].mxu1 }
 0x2a0   : > { %v8954_v60 = vpack.c.bf16 %v1866_v59, %v1863_v57  ;;  %v1868_v62 = vpop.f32.mrb[31].mxu1 }
 0x2a2   : > { %v2511_v48 = vsel %vm2464_vm0, %v8954_v60, 0 }
 0x2a5   : > { %v1871_v0 = vpop.f32.mrb[32].mxu1 }
 0x2a6   : > { %v1873_v10 = vpop.f32.mrb[33].mxu1 }
 0x2a7   : > { %v1874_v63 = vpop.f32.mrb[34].mxu1 }
 0x2a8   : > { %v2440_v1 = vpack.c.bf16 %v1874_v63, %v1871_v0  ;;  %v1876_v8 = vpop.f32.mrb[35].mxu1 }
 0x2aa   : > { %3059 = vrot.lane.b32.xlu0 %v2440_v1, %s8090_s23  ;;  %6900 = vmatprep.subr.msk.bf16.mxu1 %vm2464_vm0, %v2440_v1 }
 0x2ab   : > { %6309 = vmatpush3.bf16.xpose.msra.mxu1 %v2490_v3 }
 0x2ad   : > { %v1879_v4 = vpop.f32.mrb[36].mxu1 }
 0x2ae   : > { %3047 = vrot.lane.b32.xlu0 %v2434_v35, %s8090_s23  ;;  %v1881_v14 = vpop.f32.mrb[37].mxu1  ;;  %v2502_v35 = vsel %vm2464_vm0, %v8947_v47, 0 }
 0x2af   : > { %v1882_v16 = vpop.f32.mrb[38].mxu1 }
 0x2b0   : > { %v2441_v7 = vpack.c.bf16 %v1882_v16, %v1879_v4  ;;  %v1884_v13 = vpop.f32.mrb[39].mxu1 }
 0x2b2   : > { %3049 = vrot.lane.b32.xlu0 %v8943_v41, %s8090_s23  ;;  %3061 = vrot.lane.b32.xlu1 %v2441_v7, %s8090_s23 }
 0x2b3   : > { %6901 = vmatprep.subr.msk.bf16.mxu1 %vm2464_vm0, %v2441_v7 }
 0x2b4   : > { %6311 = vmatpush3.bf16.xpose.msra.mxu1 %v2493_v22 }
 0x2b5   : > { %v1887_v15 = vpop.f32.mrb[40].mxu1 }
 0x2b6   : > { %3051 = vrot.lane.b32.xlu0 %v8947_v47, %s8090_s23  ;;  %v1889_v18 = vpop.f32.mrb[41].mxu1 }
 0x2b7   : > { %v1890_v25 = vpop.f32.mrb[42].mxu1 }
 0x2b8   : > { %v2442_v19 = vpack.c.bf16 %v1890_v25, %v1887_v15  ;;  %v1892_v23 = vpop.f32.mrb[43].mxu1 }
 0x2ba   : > { %3053 = vrot.lane.b32.xlu0 %v8950_v40, %s8090_s23  ;;  %3063 = vrot.lane.b32.xlu1 %v2442_v19, %s8090_s23 }
 0x2bb   : > { %6902 = vmatprep.subr.msk.bf16.mxu1 %vm2464_vm0, %v2442_v19 }
 0x2bc   : > { %6313 = vmatpush3.bf16.xpose.msra.mxu1 %v2496_v30 }
 0x2bd   : > { %v1895_v24 = vpop.f32.mrb[44].mxu1 }
 0x2be   : > { %3055 = vrot.lane.b32.xlu0 %v8952_v2, %s8090_s23  ;;  %v1897_v26 = vpop.f32.mrb[45].mxu1 }
 0x2bf   : > { %v1898_v27 = vpop.f32.mrb[46].mxu1 }
 0x2c0   : > { %v2443_v9 = vpack.c.bf16 %v1898_v27, %v1895_v24  ;;  %v1900_v11 = vpop.f32.mrb[47].mxu1 }
 0x2c2   : > { %3057 = vrot.lane.b32.xlu0 %v8954_v60, %s8090_s23  ;;  %3065 = vrot.lane.b32.xlu1 %v2443_v9, %s8090_s23 }
 0x2c3   : > { %6903 = vmatprep.subr.msk.bf16.mxu1 %vm2464_vm0, %v2443_v9 }
 0x2c4   : > { %6315 = vmatpush3.bf16.xpose.msra.mxu1 %v2499_v28 }
 0x2c5   : > { %v1903_v33 = vpop.f32.mrb[48].mxu1 }
 0x2c6   : > { %v1905_v29 = vpop.f32.mrb[49].mxu1  ;;  %3011 = vrot.lane.b32.xlu0 %v8888_v21, %s8090_s23 }
 0x2c7   : > { %v1906_v38 = vpop.f32.mrb[50].mxu1 }
 0x2c8   : > { %v2444_v32 = vpack.c.bf16 %v1906_v38, %v1903_v33  ;;  %v1908_v34 = vpop.f32.mrb[51].mxu1 }
 0x2ca   : > { %3067 = vrot.lane.b32.xlu1 %v2444_v32, %s8090_s23  ;;  %6904 = vmatprep.subr.msk.bf16.mxu1 %vm2464_vm0, %v2444_v32 }
 0x2cb   : > { %3015 = vrot.lane.b32.xlu0 %v8902_v43, %s8090_s23 }
 0x2cc   : > { %6317 = vmatpush3.bf16.xpose.msra.mxu1 %v2502_v35 }
 0x2cd   : > { %v1911_v36 = vpop.f32.mrb[52].mxu1 }
 0x2ce   : > { %v1913_v42 = vpop.f32.mrb[53].mxu1 }
 0x2cf   : > { %3019 = vrot.lane.b32.xlu0 %v8914_v56, %s8090_s23  ;;  %v1914_v45 = vpop.f32.mrb[54].mxu1 }
 0x2d0   : > { %v2445_v39 = vpack.c.bf16 %v1914_v45, %v1911_v36  ;;  %v1916_v41 = vpop.f32.mrb[55].mxu1 }
 0x2d2   : > { %3069 = vrot.lane.b32.xlu1 %v2445_v39, %s8090_s23  ;;  %6905 = vmatprep.subr.msk.bf16.mxu1 %vm2464_vm0, %v2445_v39 }
 0x2d3   : > { %3023 = vrot.lane.b32.xlu0 %v8926_v12, %s8090_s23 }
 0x2d4   : > { %6319 = vmatpush3.bf16.xpose.msra.mxu1 %v2505_v17 }
 0x2d5   : > { %v1919_v50 = vpop.f32.mrb[56].mxu1 }
 0x2d6   : > { %v1921_v53 = vpop.f32.mrb[57].mxu1 }
 0x2d7   : > { %v1922_v44 = vpop.f32.mrb[58].mxu1 }
 0x2d8   : > { %v2446_v47 = vpack.c.bf16 %v1922_v44, %v1919_v50  ;;  %v1924_v49 = vpop.f32.mrb[59].mxu1 }
 0x2da   : > { %3071 = vrot.lane.b32.xlu1 %v2446_v47, %s8090_s23  ;;  %6906 = vmatprep.subr.msk.bf16.mxu1 %vm2464_vm0, %v2446_v47 }
 0x2dc   : > { %6321 = vmatpush3.bf16.xpose.msra.mxu1 %v2508_v58  ;;  %v3044_v39 = vpop.permute.xlu0 %3043 }
 0x2dd   : > { %v1927_v61 = vpop.f32.mrb[60].mxu1  ;;  %v3100_v44 = vsel %vm2464_vm0, %v3044_v39, 0 }
 0x2de   : > { %v1929_v37 = vpop.f32.mrb[61].mxu1 }
 0x2df   : > { %v1930_v40 = vpop.f32.mrb[62].mxu1 }
 0x2e0   : > { %v2447_v52 = vpack.c.bf16 %v1930_v40, %v1927_v61  ;;  %v1932_v46 = vpop.f32.mrb[63].mxu1 }
 0x2e2   : > { %3073 = vrot.lane.b32.xlu1 %v2447_v52, %s8090_s23  ;;  %6907 = vmatprep.subr.msk.bf16.mxu1 %vm2464_vm0, %v2447_v52 }
 0x2e4   : > { %6323 = vmatpush3.bf16.xpose.msra.mxu1 %v2511_v48  ;;  %v2297_v2 = vpop.f32.mrb[32].mxu0  ;;  %v3046_v58 = vpop.permute.xlu1 %3045 }
 0x2e5   : > { %v2299_v5 = vpop.f32.mrb[33].mxu0  ;;  %v6516_v54 = vadd.f32 %v9008_v55, %v2297_v2 }
 0x2e6   : > { %3013 = vrot.lane.b32.xlu1 %v8896_v31, %s8090_s23  ;;  %v2300_v57 = vpop.f32.mrb[34].mxu0  ;;  %v3103_v5 = vsel %vm2464_vm0, %v3046_v58, 0 }
 0x2e7   : > { %v6517_v59 = vadd.f32 %v9008_v55, %v2300_v57  ;;  %v2302_v62 = vpop.f32.mrb[35].mxu0 }
 0x2e9   : > { %v9016_v0 = vpack.c.bf16 %v6517_v59, %v6516_v54 }
 0x2ea   : > { %3017 = vrot.lane.b32.xlu1 %v8908_v51, %s8090_s23 }
 0x2eb   : > { %6325 = vmatmul.mubr.msk.bf16.vlgmr.msra.gmra.mrb[64].mxu1 %vm2464_vm0, %v8888_v21  ;;  %3532 = vrot.lane.b32.xlu0 %v9016_v0, %s8090_s23 }
 0x2ec   : > { %6326 = vmatprep.mubr.msk.bf16.mxu1 %vm2464_vm0, %v8896_v31  ;;  %v2305_v60 = vpop.f32.mrb[36].mxu0 }
 0x2ed   : > { %v2307_v10 = vpop.f32.mrb[37].mxu0  ;;  %v6518_v1 = vadd.f32 %v9008_v55, %v2305_v60 }
 0x2ee   : > { %3021 = vrot.lane.b32.xlu1 %v8920_v6, %s8090_s23  ;;  %v2308_v63 = vpop.f32.mrb[38].mxu0 }
 0x2ef   : > { %v6519_v8 = vadd.f32 %v9008_v55, %v2308_v63  ;;  %v2310_v3 = vpop.f32.mrb[39].mxu0 }
 0x2f1   : > { %v9030_v21 = vpack.c.bf16 %v6519_v8, %v6518_v1 }
 0x2f2   : > { %3025 = vrot.lane.b32.xlu1 %v8932_v20, %s8090_s23 }
 0x2f3   : > { %6327 = vmatmul.mubr.msk.bf16.gmra.mrb[68].mxu1 %vm2464_vm0, %v8896_v31  ;;  %3534 = vrot.lane.b32.xlu0 %v9030_v21, %s8090_s23 }
 0x2f4   : > { %6328 = vmatprep.mubr.msk.bf16.mxu1 %vm2464_vm0, %v8902_v43  ;;  %v2313_v4 = vpop.f32.mrb[40].mxu0 }
 0x2f5   : > { %v2315_v14 = vpop.f32.mrb[41].mxu0  ;;  %v6520_v7 = vadd.f32 %v9008_v55, %v2313_v4 }
 0x2f6   : > { %v2316_v16 = vpop.f32.mrb[42].mxu0 }
 0x2f7   : > { %v6521_v13 = vadd.f32 %v9008_v55, %v2316_v16  ;;  %v2318_v22 = vpop.f32.mrb[43].mxu0 }
 0x2f9   : > { %v9040_v15 = vpack.c.bf16 %v6521_v13, %v6520_v7 }
 0x2fb   : > { %6329 = vmatmul.mubr.msk.bf16.gmra.mrb[72].mxu1 %vm2464_vm0, %v8902_v43  ;;  %3536 = vrot.lane.b32.xlu1 %v9040_v15, %s8090_s23 }
 0x2fc   : > { %6330 = vmatprep.mubr.msk.bf16.mxu1 %vm2464_vm0, %v8908_v51  ;;  %v2321_v31 = vpop.f32.mrb[44].mxu0 }
 0x2fd   : > { %v2323_v18 = vpop.f32.mrb[45].mxu0  ;;  %v6522_v19 = vadd.f32 %v9008_v55, %v2321_v31 }
 0x2fe   : > { %v2324_v25 = vpop.f32.mrb[46].mxu0 }
 0x2ff   : > { %v6523_v23 = vadd.f32 %v9008_v55, %v2324_v25  ;;  %v2326_v30 = vpop.f32.mrb[47].mxu0 }
 0x301   : > { %v9050_v24 = vpack.c.bf16 %v6523_v23, %v6522_v19 }
 0x303   : > { %6331 = vmatmul.mubr.msk.bf16.gmra.mrb[76].mxu1 %vm2464_vm0, %v8908_v51  ;;  %3538 = vrot.lane.b32.xlu1 %v9050_v24, %s8090_s23 }
 0x304   : > { %6332 = vmatprep.mubr.msk.bf16.mxu1 %vm2464_vm0, %v8914_v56  ;;  %v2329_v43 = vpop.f32.mrb[48].mxu0 }
 0x305   : > { %v2331_v26 = vpop.f32.mrb[49].mxu0  ;;  %v6524_v9 = vadd.f32 %v9008_v55, %v2329_v43 }
 0x306   : > { %v2332_v27 = vpop.f32.mrb[50].mxu0 }
 0x307   : > { %v6525_v11 = vadd.f32 %v9008_v55, %v2332_v27  ;;  %v2334_v28 = vpop.f32.mrb[51].mxu0 }
 0x309   : > { %v9060_v33 = vpack.c.bf16 %v6525_v11, %v6524_v9 }
 0x30b   : > { %6333 = vmatmul.mubr.msk.bf16.gmra.mrb[80].mxu1 %vm2464_vm0, %v8914_v56  ;;  %3540 = vrot.lane.b32.xlu1 %v9060_v33, %s8090_s23 }
 0x30c   : > { %6334 = vmatprep.mubr.msk.bf16.mxu1 %vm2464_vm0, %v8920_v6  ;;  %v2337_v51 = vpop.f32.mrb[52].mxu0 }
 0x30d   : > { %v2339_v29 = vpop.f32.mrb[53].mxu0  ;;  %v6526_v32 = vadd.f32 %v9008_v55, %v2337_v51 }
 0x30e   : > { %v2340_v38 = vpop.f32.mrb[54].mxu0 }
 0x30f   : > { %v6527_v34 = vadd.f32 %v9008_v55, %v2340_v38  ;;  %v2342_v35 = vpop.f32.mrb[55].mxu0 }
 0x311   : > { %v9070_v36 = vpack.c.bf16 %v6527_v34, %v6526_v32 }
 0x313   : > { %6335 = vmatmul.mubr.msk.bf16.gmra.mrb[84].mxu1 %vm2464_vm0, %v8920_v6  ;;  %3542 = vrot.lane.b32.xlu1 %v9070_v36, %s8090_s23 }
 0x314   : > { %6336 = vmatprep.mubr.msk.bf16.mxu1 %vm2464_vm0, %v8926_v12  ;;  %v2345_v56 = vpop.f32.mrb[56].mxu0 }
 0x315   : > { %v2347_v42 = vpop.f32.mrb[57].mxu0  ;;  %v6528_v41 = vadd.f32 %v9008_v55, %v2345_v56 }
 0x316   : > { %v2348_v45 = vpop.f32.mrb[58].mxu0 }
 0x317   : > { %v6529_v17 = vadd.f32 %v9008_v55, %v2348_v45  ;;  %v2350_v50 = vpop.f32.mrb[59].mxu0 }
 0x319   : > { %v9080_v53 = vpack.c.bf16 %v6529_v17, %v6528_v41 }
 0x31b   : > { %6337 = vmatmul.mubr.msk.bf16.gmra.mrb[88].mxu1 %vm2464_vm0, %v8926_v12 }
 0x31c   : > { %6338 = vmatprep.mubr.msk.bf16.mxu1 %vm2464_vm0, %v8932_v20  ;;  %v3060_v6 = vpop.permute.xlu0 %3059  ;;  %v2353_v47 = vpop.f32.mrb[60].mxu0 }
 0x31d   : > { %6908 = vmatprep.subr.msk.bf16.mxu0 %vm2464_vm0, %v3060_v6  ;;  %v2355_v49 = vpop.f32.mrb[61].mxu0  ;;  %v6530_v40 = vadd.f32 %v9008_v55, %v2353_v47 }
 0x31e   : > { %6405 = vmatpush3.bf16.xpose.msra.mxu0 %v3100_v44  ;;  %v2356_v61 = vpop.f32.mrb[62].mxu0 }
 0x31f   : > { %v6531_v52 = vadd.f32 %v9008_v55, %v2356_v61  ;;  %v2358_v46 = vpop.f32.mrb[63].mxu0 }
 0x320   : > { %v3048_v37 = vpop.permute.xlu0 %3047 }
 0x321   : > { %v9090_v12 = vpack.c.bf16 %v6531_v52, %v6530_v40 }
 0x323   : > { %6339 = vmatmul.mubr.msk.bf16.gmra.mrb[92].mxu1 %vm2464_vm0, %v8932_v20  ;;  %v3106_v20 = vsel %vm2464_vm0, %v3048_v37, 0 }
 0x324   : > { %v3050_v48 = vpop.permute.xlu0 %3049  ;;  %v3062_v2 = vpop.permute.xlu1 %3061 }
 0x325   : > { %v2361_v57 = vpop.f32.mrb[64].mxu0  ;;  %6909 = vmatprep.subr.msk.bf16.mxu0 %vm2464_vm0, %v3062_v2  ;;  %v3109_v23 = vsel %vm2464_vm0, %v3050_v48, 0 }
 0x326   : > { %v2363_v54 = vpop.f32.mrb[65].mxu0  ;;  %6407 = vmatpush3.bf16.xpose.msra.mxu0 %v3103_v5  ;;  %v6532_v62 = vadd.f32 %v9008_v55, %v2361_v57 }
 0x327   : > { %v2364_v59 = vpop.f32.mrb[66].mxu0 }
 0x328   : > { %v6533_v60 = vadd.f32 %v9008_v55, %v2364_v59  ;;  %v3052_v10 = vpop.permute.xlu0 %3051  ;;  %v2366_v63 = vpop.f32.mrb[67].mxu0 }
 0x32a   : > { %v2456_v1 = vpack.c.bf16 %v6533_v60, %v6532_v62 }
 0x32c   : > { %v3054_v8 = vpop.permute.xlu0 %3053  ;;  %v3064_v3 = vpop.permute.xlu1 %3063  ;;  %6340 = vmatprep.subr.bf16.mxu1 %v2456_v1  ;;  %3548 = vrot.lane.b32.xlu1 %v2456_v1, %s8090_s23 }
 0x32d   : > { %v2369_v4 = vpop.f32.mrb[68].mxu0  ;;  %6910 = vmatprep.subr.msk.bf16.mxu0 %vm2464_vm0, %v3064_v3  ;;  %6341 = vmatpush3.bf16.msra.mxu1 %v9016_v0  ;;  %v3115_v39 = vsel %vm2464_vm0, %v3054_v8, 0 }
 0x32e   : > { %v2371_v14 = vpop.f32.mrb[69].mxu0  ;;  %6409 = vmatpush3.bf16.xpose.msra.mxu0 %v3106_v20  ;;  %v6534_v7 = vadd.f32 %v9008_v55, %v2369_v4 }
 0x32f   : > { %v2372_v16 = vpop.f32.mrb[70].mxu0 }
 0x330   : > { %v6535_v13 = vadd.f32 %v9008_v55, %v2372_v16  ;;  %v3056_v22 = vpop.permute.xlu0 %3055  ;;  %v2374_v31 = vpop.f32.mrb[71].mxu0 }
 0x331   : > { %v3118_v58 = vsel %vm2464_vm0, %v3056_v22, 0 }
 0x332   : > { %v2457_v18 = vpack.c.bf16 %v6535_v13, %v6534_v7 }
 0x334   : > { %v3058_v25 = vpop.permute.xlu0 %3057  ;;  %v3066_v19 = vpop.permute.xlu1 %3065  ;;  %6342 = vmatprep.subr.bf16.mxu1 %v2457_v18  ;;  %3550 = vrot.lane.b32.xlu1 %v2457_v18, %s8090_s23 }
 0x335   : > { %v2377_v30 = vpop.f32.mrb[72].mxu0  ;;  %6911 = vmatprep.subr.msk.bf16.mxu0 %vm2464_vm0, %v3066_v19  ;;  %6343 = vmatpush3.bf16.msra.mxu1 %v9030_v21  ;;  %v3112_v21 = vsel %vm2464_vm0, %v3052_v10, 0  ;;  %v3121_v5 = vsel %vm2464_vm0, %v3058_v25, 0 }
 0x336   : > { %v2379_v0 = vpop.f32.mrb[73].mxu0  ;;  %6411 = vmatpush3.bf16.xpose.msra.mxu0 %v3109_v23  ;;  %v6536_v26 = vadd.f32 %v9008_v55, %v2377_v30 }
 0x337   : > { %v2380_v43 = vpop.f32.mrb[74].mxu0 }
 0x338   : > { %v6537_v27 = vadd.f32 %v9008_v55, %v2380_v43  ;;  %v9110_v9 = vpop.permute.xlu0 %3011  ;;  %v2382_v11 = vpop.f32.mrb[75].mxu0 }
 0x339   : > { %6420 = vmatprep.mubr.msk.bf16.mxu0 %vm2464_vm0, %v9110_v9 }
 0x33a   : > { %v2458_v28 = vpack.c.bf16 %v6537_v27, %v6536_v26 }
 0x33c   : > { %v3068_v51 = vpop.permute.xlu1 %3067  ;;  %6344 = vmatprep.subr.bf16.mxu1 %v2458_v28  ;;  %3552 = vrot.lane.b32.xlu1 %v2458_v28, %s8090_s23  ;;  %v2385_v29 = vpop.f32.mrb[76].mxu0 }
 0x33d   : > { %6912 = vmatprep.subr.msk.bf16.mxu0 %vm2464_vm0, %v3068_v51  ;;  %6345 = vmatpush3.bf16.msra.mxu1 %v9040_v15  ;;  %v2387_v38 = vpop.f32.mrb[77].mxu0  ;;  %v6538_v34 = vadd.f32 %v9008_v55, %v2385_v29  ;;  %v3016_v16 = vpop.permute.xlu0 %3015 }
 0x33e   : > { %6413 = vmatpush3.bf16.xpose.msra.mxu0 %v3112_v21  ;;  %v2388_v32 = vpop.f32.mrb[78].mxu0 }
 0x33f   : > { %v6539_v35 = vadd.f32 %v9008_v55, %v2388_v32  ;;  %v2390_v56 = vpop.f32.mrb[79].mxu0 }
 0x341   : > { %v2459_v42 = vpack.c.bf16 %v6539_v35, %v6538_v34  ;;  %v3020_v13 = vpop.permute.xlu0 %3019 }
 0x343   : > { %6346 = vmatprep.subr.bf16.mxu1 %v2459_v42  ;;  %3554 = vrot.lane.b32.xlu0 %v2459_v42, %s8090_s23 }
 0x344   : > { %v3070_v45 = vpop.permute.xlu1 %3069  ;;  %v2393_v41 = vpop.f32.mrb[80].mxu0  ;;  %6347 = vmatpush3.bf16.msra.mxu1 %v9050_v24 }
 0x345   : > { %6913 = vmatprep.subr.msk.bf16.mxu0 %vm2464_vm0, %v3070_v45  ;;  %v2395_v15 = vpop.f32.mrb[81].mxu0  ;;  %v6540_v50 = vadd.f32 %v9008_v55, %v2393_v41  ;;  %v3024_v22 = vpop.permute.xlu0 %3023 }
 0x346   : > { %6415 = vmatpush3.bf16.xpose.msra.mxu0 %v3115_v39  ;;  %v2396_v17 = vpop.f32.mrb[82].mxu0 }
 0x347   : > { %v6541_v6 = vadd.f32 %v9008_v55, %v2396_v17  ;;  %v2398_v44 = vpop.f32.mrb[83].mxu0 }
 0x349   : > { %v2460_v47 = vpack.c.bf16 %v6541_v6, %v6540_v50 }
 0x34b   : > { %6348 = vmatprep.subr.bf16.mxu1 %v2460_v47  ;;  %3556 = vrot.lane.b32.xlu0 %v2460_v47, %s8090_s23 }
 0x34c   : > { %v3072_v49 = vpop.permute.xlu1 %3071  ;;  %v2401_v61 = vpop.f32.mrb[84].mxu0  ;;  %6349 = vmatpush3.bf16.msra.mxu1 %v9060_v33 }
 0x34d   : > { %6914 = vmatprep.subr.msk.bf16.mxu0 %vm2464_vm0, %v3072_v49  ;;  %v2403_v24 = vpop.f32.mrb[85].mxu0  ;;  %v6542_v40 = vadd.f32 %v9008_v55, %v2401_v61 }
 0x34e   : > { %6417 = vmatpush3.bf16.xpose.msra.mxu0 %v3118_v58  ;;  %v2404_v37 = vpop.f32.mrb[86].mxu0 }
 0x34f   : > { %v6543_v52 = vadd.f32 %v9008_v55, %v2404_v37  ;;  %v2406_v46 = vpop.f32.mrb[87].mxu0 }
 0x351   : > { %v2461_v48 = vpack.c.bf16 %v6543_v52, %v6542_v40 }
 0x353   : > { %6350 = vmatprep.subr.bf16.mxu1 %v2461_v48  ;;  %3558 = vrot.lane.b32.xlu0 %v2461_v48, %s8090_s23 }
 0x354   : > { %v3074_v2 = vpop.permute.xlu1 %3073  ;;  %v2409_v57 = vpop.f32.mrb[88].mxu0  ;;  %6351 = vmatpush3.bf16.msra.mxu1 %v9070_v36 }
 0x355   : > { %6915 = vmatprep.subr.msk.bf16.mxu0 %vm2464_vm0, %v3074_v2  ;;  %v2411_v33 = vpop.f32.mrb[89].mxu0  ;;  %v6544_v59 = vadd.f32 %v9008_v55, %v2409_v57 }
 0x356   : > { %6419 = vmatpush3.bf16.xpose.msra.mxu0 %v3121_v5  ;;  %v2412_v54 = vpop.f32.mrb[90].mxu0 }
 0x357   : > { %v6545_v62 = vadd.f32 %v9008_v55, %v2412_v54  ;;  %v2414_v60 = vpop.f32.mrb[91].mxu0 }
 0x358   : > { %v3014_v63 = vpop.permute.xlu1 %3013 }
 0x359   : > { %v9138_v10 = vpack.c.bf16 %v6545_v62, %v6544_v59 }
 0x35b   : > { %6352 = vmatprep.subr.bf16.mxu1 %v9138_v10 }
 0x35c   : > { %v2417_v1 = vpop.f32.mrb[92].mxu0  ;;  %6353 = vmatpush3.bf16.msra.mxu1 %v9080_v53  ;;  %v3018_v7 = vpop.permute.xlu1 %3017 }
 0x35d   : > { %6421 = vmatmul.mubr.msk.bf16.vlgmr.msra.gmra.mrb[96].mxu0 %vm2464_vm0, %v9110_v9  ;;  %v2419_v36 = vpop.f32.mrb[93].mxu0  ;;  %v6546_v3 = vadd.f32 %v9008_v55, %v2417_v1 }
 0x35e   : > { %6422 = vmatprep.mubr.msk.bf16.mxu0 %vm2464_vm0, %v3014_v63  ;;  %v2420_v8 = vpop.f32.mrb[94].mxu0 }
 0x35f   : > { %v6547_v20 = vadd.f32 %v9008_v55, %v2420_v8  ;;  %v2422_v4 = vpop.f32.mrb[95].mxu0 }
 0x360   : > { %v3022_v55 = vpop.permute.xlu1 %3021 }
 0x361   : > { %v9147_v14 = vpack.c.bf16 %v6547_v20, %v6546_v3 }
 0x363   : > { %6354 = vmatprep.subr.bf16.mxu1 %v9147_v14 }
 0x364   : > { %6355 = vmatpush3.bf16.msra.mxu1 %v9090_v12  ;;  %v3026_v31 = vpop.permute.xlu1 %3025 }
 0x365   : > { %6423 = vmatmul.mubr.msk.bf16.gmra.mrb[100].mxu0 %vm2464_vm0, %v3014_v63 }
 0x366   : > { %6424 = vmatprep.mubr.msk.bf16.mxu0 %vm2464_vm0, %v3016_v16 }
 0x36d   : > { %6425 = vmatmul.mubr.msk.bf16.gmra.mrb[104].mxu0 %vm2464_vm0, %v3016_v16  ;;  %v9163_v18 = vpop.permute.xlu1 %3536 }
 0x36e   : > { %6426 = vmatprep.mubr.msk.bf16.mxu0 %vm2464_vm0, %v3018_v7  ;;  %10206 = vst [vmem:[#allocation24_spill] sm:$0xff] %v9163_v18 }
 0x375   : > { %6427 = vmatmul.mubr.msk.bf16.gmra.mrb[108].mxu0 %vm2464_vm0, %v3018_v7  ;;  %v9165_v25 = vpop.permute.xlu1 %3538 }
 0x376   : > { %6428 = vmatprep.mubr.msk.bf16.mxu0 %vm2464_vm0, %v3020_v13  ;;  %10207 = vst [vmem:[#allocation25_spill] sm:$0xff] %v9165_v25 }
 0x37d   : > { %6429 = vmatmul.mubr.msk.bf16.gmra.mrb[112].mxu0 %vm2464_vm0, %v3020_v13  ;;  %v9168_v19 = vpop.permute.xlu1 %3540 }
 0x37e   : > { %6430 = vmatprep.mubr.msk.bf16.mxu0 %vm2464_vm0, %v3022_v55  ;;  %10208 = vst [vmem:[#allocation26_spill] sm:$0xff] %v9168_v19 }
 0x385   : > { %6431 = vmatmul.mubr.msk.bf16.gmra.mrb[116].mxu0 %vm2464_vm0, %v3022_v55  ;;  %v9170_v23 = vpop.permute.xlu1 %3542 }
 0x386   : > { %6432 = vmatprep.mubr.msk.bf16.mxu0 %vm2464_vm0, %v3024_v22  ;;  %10209 = vst [vmem:[#allocation27_spill] sm:$0xff] %v9170_v23 }
 0x38d   : > { %6433 = vmatmul.mubr.msk.bf16.gmra.mrb[120].mxu0 %vm2464_vm0, %v3024_v22 }
 0x38e   : > { %6434 = vmatprep.mubr.msk.bf16.mxu0 %vm2464_vm0, %v3026_v31 }
 0x395   : > { %6435 = vmatmul.mubr.msk.bf16.gmra.mrb[124].mxu0 %vm2464_vm0, %v3026_v31 }
 0x39e   : > { %v3549_v30 = vpop.permute.xlu1 %3548 }
 0x39f   : > { %6436 = vmatprep.subr.bf16.mxu1 %v3549_v30 }
 0x3be   : > { %v9172_v0 = vpop.f32.mrb[64].mxu1 }
 0x3bf   : > { %v9174_v43 = vpop.f32.mrb[65].mxu1 }
 0x3c0   : > { %v9176_v26 = vpop.f32.mrb[66].mxu1  ;;  %v2650_v27 = vmax.f32 %v9172_v0, %v9174_v43 }
 0x3c1   : > { %v9180_v9 = vpop.f32.mrb[67].mxu1 }
 0x3c2   : > { %2651 = vmax.xlane.f32.xlu0 %v2650_v27  ;;  %v2653_v11 = vmax.f32 %v9176_v26, %v9180_v9  ;;  %v9292_v27 = vpop.permute.xlu0 %3532 }
 0x3c4   : > { %2654 = vmax.xlane.f32.xlu1 %v2653_v11 }
 0x3c6   : > { %v9184_v28 = vpop.f32.mrb[68].mxu1 }
 0x3c7   : > { %v9186_v51 = vpop.f32.mrb[69].mxu1 }
 0x3c8   : > { %v9188_v21 = vpop.f32.mrb[70].mxu1  ;;  %v2656_v29 = vmax.f32 %v9184_v28, %v9186_v51 }
 0x3c9   : > { %v9192_v38 = vpop.f32.mrb[71].mxu1 }
 0x3ca   : > { %2657 = vmax.xlane.f32.xlu0 %v2656_v29  ;;  %v2659_v32 = vmax.f32 %v9188_v21, %v9192_v38 }
 0x3ce   : > { %2660 = vmax.xlane.f32.xlu0 %v2659_v32  ;;  %v9196_v34 = vpop.f32.mrb[72].mxu1  ;;  %v9298_v32 = vpop.permute.xlu0 %3534 }
 0x3cf   : > { %v9198_v35 = vpop.f32.mrb[73].mxu1  ;;  %10210 = vst [vmem:[#allocation28_spill] sm:$0xff] %v9298_v32 }
 0x3d0   : > { %v9200_v56 = vpop.f32.mrb[74].mxu1  ;;  %v2662_v42 = vmax.f32 %v9196_v34, %v9198_v35 }
 0x3d1   : > { %v9204_v45 = vpop.f32.mrb[75].mxu1 }
 0x3d2   : > { %2663 = vmax.xlane.f32.xlu1 %v2662_v42  ;;  %v2665_v39 = vmax.f32 %v9200_v56, %v9204_v45 }
 0x3d4   : > { %2666 = vmax.xlane.f32.xlu0 %v2665_v39 }
 0x3d6   : > { %v9208_v41 = vpop.f32.mrb[76].mxu1 }
 0x3d7   : > { %v9210_v15 = vpop.f32.mrb[77].mxu1 }
 0x3d8   : > { %v9212_v17 = vpop.f32.mrb[78].mxu1  ;;  %v2668_v50 = vmax.f32 %v9208_v41, %v9210_v15 }
 0x3d9   : > { %v9216_v6 = vpop.f32.mrb[79].mxu1 }
 0x3da   : > { %2669 = vmax.xlane.f32.xlu1 %v2668_v50  ;;  %v2671_v44 = vmax.f32 %v9212_v17, %v9216_v6 }
 0x3dc   : > { %2672 = vmax.xlane.f32.xlu0 %v2671_v44 }
 0x3de   : > { %v9220_v47 = vpop.f32.mrb[80].mxu1 }
 0x3df   : > { %v9222_v49 = vpop.f32.mrb[81].mxu1 }
 0x3e0   : > { %v9224_v58 = vpop.f32.mrb[82].mxu1  ;;  %v2674_v61 = vmax.f32 %v9220_v47, %v9222_v49 }
 0x3e1   : > { %v9228_v24 = vpop.f32.mrb[83].mxu1 }
 0x3e2   : > { %2675 = vmax.xlane.f32.xlu1 %v2674_v61  ;;  %v2677_v37 = vmax.f32 %v9224_v58, %v9228_v24  ;;  %v9308_v61 = vpop.permute.xlu0 %3554 }
 0x3e3   : > { %10211 = vst [vmem:[#allocation29_spill] sm:$0xff] %v9308_v61 }
 0x3e4   : > { %2678 = vmax.xlane.f32.xlu0 %v2677_v37 }
 0x3e6   : > { %v9232_v40 = vpop.f32.mrb[84].mxu1 }
 0x3e7   : > { %v9234_v52 = vpop.f32.mrb[85].mxu1 }
 0x3e8   : > { %v9236_v46 = vpop.f32.mrb[86].mxu1  ;;  %v2680_v48 = vmax.f32 %v9232_v40, %v9234_v52 }
 0x3e9   : > { %v9240_v2 = vpop.f32.mrb[87].mxu1 }
 0x3ea   : > { %2681 = vmax.xlane.f32.xlu1 %v2680_v48  ;;  %v2683_v5 = vmax.f32 %v9236_v46, %v9240_v2 }
 0x3ec   : > { %2684 = vmax.xlane.f32.xlu0 %v2683_v5  ;;  %v9314_v5 = vpop.permute.xlu0 %3556 }
 0x3ed   : > { %10212 = vst [vmem:[#allocation30_spill] sm:$0xff] %v9314_v5 }
 0x3ee   : > { %v9244_v57 = vpop.f32.mrb[88].mxu1 }
 0x3ef   : > { %v9246_v33 = vpop.f32.mrb[89].mxu1 }
 0x3f0   : > { %v9248_v54 = vpop.f32.mrb[90].mxu1  ;;  %v2686_v59 = vmax.f32 %v9244_v57, %v9246_v33 }
 0x3f1   : > { %v9252_v62 = vpop.f32.mrb[91].mxu1 }
 0x3f2   : > { %v2689_v60 = vmax.f32 %v9248_v54, %v9252_v62 }
 0x3f6   : > { %v9256_v63 = vpop.f32.mrb[92].mxu1 }
 0x3f7   : > { %v9258_v1 = vpop.f32.mrb[93].mxu1 }
 0x3f8   : > { %v9260_v36 = vpop.f32.mrb[94].mxu1  ;;  %v2692_v8 = vmax.f32 %v9256_v63, %v9258_v1 }
 0x3f9   : > { %v9264_v3 = vpop.f32.mrb[95].mxu1 }
 0x3fa   : > { %v2695_v20 = vmax.f32 %v9260_v36, %v9264_v3 }
 0x3fb   : > { %3544 = vrot.lane.b32.xlu1 %v9080_v53, %s8090_s23 }
 0x402   : > { %3560 = vrot.lane.b32.xlu0 %v9138_v10, %s8090_s23 }
 0x41f   : > { %2687 = vmax.xlane.f32.xlu1 %v2686_v59 }
 0x421   : > { %2690 = vmax.xlane.f32.xlu0 %v2689_v60  ;;  %v9318_v60 = vpop.permute.xlu1 %3550 }
 0x422   : > { %10213 = vst [vmem:[#allocation31_spill] sm:$0xff] %v9318_v60 }
 0x423   : > { %2693 = vmax.xlane.f32.xlu1 %v2692_v8 }
 0x425   : > { %2696 = vmax.xlane.f32.xlu0 %v2695_v20 }
 0x430   : > { %v9272_v4 = vpop.f32.mrb[96].mxu0 }
 0x431   : > { %v9274_v16 = vpop.f32.mrb[97].mxu0 }
 0x432   : > { %v9276_v7 = vpop.f32.mrb[98].mxu0  ;;  %v3260_v13 = vmax.f32 %v9272_v4, %v9274_v16 }
 0x433   : > { %v9280_v55 = vpop.f32.mrb[99].mxu0 }
 0x434   : > { %3261 = vmax.xlane.f32.xlu1 %v3260_v13  ;;  %v3263_v53 = vmax.f32 %v9276_v7, %v9280_v55 }
 0x436   : > { %3264 = vmax.xlane.f32.xlu0 %v3263_v53  ;;  %v9326_v53 = vpop.permute.xlu0 %3558 }
 0x437   : > { %10214 = vst [vmem:[#allocation32_spill] sm:$0xff] %v9326_v53 }
 0x438   : > { %v9284_v10 = vpop.f32.mrb[100].mxu0 }
 0x439   : > { %v9286_v22 = vpop.f32.mrb[101].mxu0 }
 0x43a   : > { %v9288_v31 = vpop.f32.mrb[102].mxu0  ;;  %v3266_v30 = vmax.f32 %v9284_v10, %v9286_v22 }
 0x43b   : > { %v9294_v11 = vpop.f32.mrb[103].mxu0 }
 0x43c   : > { %3267 = vmax.xlane.f32.xlu1 %v3266_v30  ;;  %v3269_v29 = vmax.f32 %v9288_v31, %v9294_v11 }
 0x43e   : > { %3270 = vmax.xlane.f32.xlu0 %v3269_v29 }
 0x440   : > { %v9300_v42 = vpop.f32.mrb[104].mxu0 }
 0x441   : > { %v9302_v39 = vpop.f32.mrb[105].mxu0 }
 0x442   : > { %v9304_v50 = vpop.f32.mrb[106].mxu0  ;;  %v3272_v44 = vmax.f32 %v9300_v42, %v9302_v39 }
 0x443   : > { %v9310_v37 = vpop.f32.mrb[107].mxu0 }
 0x444   : > { %3273 = vmax.xlane.f32.xlu1 %v3272_v44  ;;  %v3275_v48 = vmax.f32 %v9304_v50, %v9310_v37  ;;  %v9332_v44 = vpop.permute.xlu1 %3552 }
 0x445   : > { %10215 = vst [vmem:[#allocation33_spill] sm:$0xff] %v9332_v44 }
 0x446   : > { %3276 = vmax.xlane.f32.xlu0 %v3275_v48 }
 0x448   : > { %v9316_v59 = vpop.f32.mrb[108].mxu0 }
 0x449   : > { %v9320_v8 = vpop.f32.mrb[109].mxu0 }
 0x44a   : > { %v9322_v20 = vpop.f32.mrb[110].mxu0  ;;  %v3278_v13 = vmax.f32 %v9316_v59, %v9320_v8 }
 0x44b   : > { %v9328_v30 = vpop.f32.mrb[111].mxu0 }
 0x44c   : > { %3279 = vmax.xlane.f32.xlu1 %v3278_v13  ;;  %v3281_v29 = vmax.f32 %v9322_v20, %v9328_v30 }
 0x44e   : > { %3282 = vmax.xlane.f32.xlu0 %v3281_v29 }
 0x44f   : > { %v2652_v48 = vpop.xlane.xlu0 %2651 }
 0x450   : > { %v2698_v23 = vsub.f32 %v9172_v0, %v2652_v48  ;;  %v2699_v19 = vsub.f32 %v9174_v43, %v2652_v48  ;;  %v9336_v5 = vpop.f32.mrb[112].mxu0 }
 0x451   : > { %v2655_v25 = vpop.xlane.xlu1 %2654  ;;  %v9338_v61 = vpop.f32.mrb[113].mxu0 }
 0x452   : > { %v2730_v53 = vmul.f32 1.442695, %v2698_v23  ;;  %v2732_v18 = vmul.f32 1.442695, %v2699_v19  ;;  %v2700_v13 = vsub.f32 %v9176_v26, %v2655_v25  ;;  %v2701_v32 = vsub.f32 %v9180_v9, %v2655_v25  ;;  %v9342_v60 = vpop.f32.mrb[114].mxu0 }
 0x453   : > { %v9344_v44 = vpop.f32.mrb[115].mxu0  ;;  %v3284_v0 = vmax.f32 %v9336_v5, %v9338_v61 }
 0x454   : > { %10216 = vst [vmem:[#allocation34_spill] sm:$0xff] %v9344_v44  ;;  %7409 = vpow2.f32 %v2730_v53  ;;  %v2734_v43 = vmul.f32 1.442695, %v2700_v13  ;;  %v2736_v29 = vmul.f32 1.442695, %v2701_v32  ;;  %v3287_v48 = vmax.f32 %v9342_v60, %v9344_v44 }
 0x455   : > { %7411 = vpow2.f32 %v2732_v18  ;;  %3285 = vmax.xlane.f32.xlu1 %v3284_v0 }
 0x456   : > { %7413 = vpow2.f32 %v2734_v43  ;;  %3288 = vmax.xlane.f32.xlu0 %v3287_v48 }
 0x457   : > { %7415 = vpow2.f32 %v2736_v29  ;;  %v2658_v19 = vpop.xlane.xlu0 %2657 }
 0x458   : > { %v2702_v25 = vsub.f32 %v9184_v28, %v2658_v19  ;;  %v2703_v23 = vsub.f32 %v9186_v51, %v2658_v19  ;;  %v9352_v26 = vpop.f32.mrb[116].mxu0 }
 0x459   : > { %10217 = vst [vmem:[#allocation35_spill] sm:$0xff] %v9352_v26  ;;  %v9354_v9 = vpop.f32.mrb[117].mxu0 }
 0x45a   : > { %10218 = vst [vmem:[#allocation36_spill] sm:$0xff] %v9354_v9  ;;  %v2738_v53 = vmul.f32 1.442695, %v2702_v25  ;;  %v2740_v13 = vmul.f32 1.442695, %v2703_v23  ;;  %v9356_v32 = vpop.f32.mrb[118].mxu0  ;;  %v3290_v18 = vmax.f32 %v9352_v26, %v9354_v9 }
 0x45b   : > { %10219 = vst [vmem:[#allocation37_spill] sm:$0xff] %v9356_v32  ;;  %v2661_v0 = vpop.xlane.xlu0 %2660  ;;  %v9360_v43 = vpop.f32.mrb[119].mxu0 }
 0x45c   : > { %10220 = vst [vmem:[#allocation38_spill] sm:$0xff] %v9360_v43  ;;  %7417 = vpow2.f32 %v2738_v53  ;;  %v2704_v29 = vsub.f32 %v9188_v21, %v2661_v0  ;;  %v2705_v28 = vsub.f32 %v9192_v38, %v2661_v0  ;;  %3291 = vmax.xlane.f32.xlu1 %v3290_v18  ;;  %v3293_v51 = vmax.f32 %v9356_v32, %v9360_v43 }
 0x45d   : > { %7419 = vpow2.f32 %v2740_v13 }
 0x45e   : > { %v9366_v48 = vpop.eup %7409  ;;  %v2742_v19 = vmul.f32 1.442695, %v2704_v29  ;;  %v2744_v25 = vmul.f32 1.442695, %v2705_v28  ;;  %3294 = vmax.xlane.f32.xlu0 %v3293_v51 }
 0x45f   : > { %v9368_v23 = vpop.eup %7411  ;;  %v2664_v9 = vpop.xlane.xlu1 %2663 }
 0x460   : > { %v9370_v26 = vpop.eup %7413  ;;  %7421 = vpow2.f32 %v2742_v19  ;;  %v2706_v21 = vsub.f32 %v9196_v34, %v2664_v9  ;;  %v2707_v38 = vsub.f32 %v9198_v35, %v2664_v9  ;;  %v9374_v53 = vpop.f32.mrb[120].mxu0  ;;  %v2794_v13 = vadd.f32 %v9368_v23, %v9366_v48 }
 0x461   : > { %v9378_v18 = vpop.eup %7415  ;;  %7423 = vpow2.f32 %v2744_v25  ;;  %v2667_v0 = vpop.xlane.xlu0 %2666 }
 0x462   : > { %v9380_v29 = vpop.f32.mrb[121].mxu0  ;;  %v2746_v28 = vmul.f32 1.442695, %v2706_v21  ;;  %v2748_v51 = vmul.f32 1.442695, %v2707_v38  ;;  %v2708_v43 = vsub.f32 %v9200_v56, %v2667_v0  ;;  %v2709_v19 = vsub.f32 %v9204_v45, %v2667_v0  ;;  %2795 = vadd.xlane.f32.xlu1 %v2794_v13 }
 0x463   : > { %10221 = vst [vmem:[#allocation39_spill] sm:$0xff] %v9380_v29  ;;  %v9384_v34 = vpop.f32.mrb[122].mxu0  ;;  %v2797_v35 = vadd.f32 %v9378_v18, %v9370_v26  ;;  %v3296_v25 = vmax.f32 %v9374_v53, %v9380_v29 }
 0x464   : > { %10222 = vst [vmem:[#allocation40_spill] sm:$0xff] %v9384_v34  ;;  %v9388_v9 = vpop.f32.mrb[123].mxu0  ;;  %7425 = vpow2.f32 %v2746_v28  ;;  %v2750_v32 = vmul.f32 1.442695, %v2708_v43  ;;  %v2752_v44 = vmul.f32 1.442695, %v2709_v19 }
 0x465   : > { %10223 = vst [vmem:[#allocation41_spill] sm:$0xff] %v9388_v9  ;;  %v3299_v21 = vmax.f32 %v9384_v34, %v9388_v9  ;;  %7427 = vpow2.f32 %v2748_v51  ;;  %2798 = vadd.xlane.f32.xlu0 %v2797_v35 }
 0x466   : > { %v9394_v56 = vpop.eup %7417  ;;  %3297 = vmax.xlane.f32.xlu1 %v3296_v25  ;;  %7429 = vpow2.f32 %v2750_v32 }
 0x467   : > { %v9396_v45 = vpop.eup %7419  ;;  %v2670_v38 = vpop.xlane.xlu1 %2669  ;;  %7431 = vpow2.f32 %v2752_v44 }
 0x468   : > { %v2710_v13 = vsub.f32 %v9208_v41, %v2670_v38  ;;  %v2711_v0 = vsub.f32 %v9210_v15, %v2670_v38  ;;  %v9400_v28 = vpop.f32.mrb[124].mxu0  ;;  %v2800_v43 = vadd.f32 %v9396_v45, %v9394_v56 }
 0x469   : > { %3300 = vmax.xlane.f32.xlu0 %v3299_v21  ;;  %v2673_v51 = vpop.xlane.xlu0 %2672  ;;  %v9404_v19 = vpop.f32.mrb[125].mxu0 }
 0x46a   : > { %10224 = vst [vmem:[#allocation42_spill] sm:$0xff] %v9404_v19  ;;  %v9406_v35 = vpop.eup %7421  ;;  %v2754_v25 = vmul.f32 1.442695, %v2710_v13  ;;  %v2756_v9 = vmul.f32 1.442695, %v2711_v0  ;;  %v2712_v32 = vsub.f32 %v9212_v17, %v2673_v51  ;;  %v2713_v44 = vsub.f32 %v9216_v6, %v2673_v51  ;;  %2801 = vadd.xlane.f32.xlu1 %v2800_v43  ;;  %v9410_v41 = vpop.f32.mrb[126].mxu0 }
 0x46b   : > { %10225 = vst [vmem:[#allocation43_spill] sm:$0xff] %v9410_v41  ;;  %v9412_v15 = vpop.eup %7423  ;;  %v9414_v38 = vpop.f32.mrb[127].mxu0  ;;  %v3302_v21 = vmax.f32 %v9400_v28, %v9404_v19 }
 0x46c   : > { %10226 = vst [vmem:[#allocation44_spill] sm:$0xff] %v9414_v38  ;;  %7433 = vpow2.f32 %v2754_v25  ;;  %v2758_v34 = vmul.f32 1.442695, %v2712_v32  ;;  %v2760_v29 = vmul.f32 1.442695, %v2713_v44  ;;  %v3305_v13 = vmax.f32 %v9410_v41, %v9414_v38 }
 0x46d   : > { %7435 = vpow2.f32 %v2756_v9  ;;  %v2803_v17 = vadd.f32 %v9412_v15, %v9406_v35 }
 0x46e   : > { %v9422_v6 = vpop.eup %7425  ;;  %7437 = vpow2.f32 %v2758_v34  ;;  %3303 = vmax.xlane.f32.xlu1 %v3302_v21 }
 0x46f   : > { %v9424_v0 = vpop.eup %7427  ;;  %7439 = vpow2.f32 %v2760_v29  ;;  %2804 = vadd.xlane.f32.xlu0 %v2803_v17  ;;  %v2676_v43 = vpop.xlane.xlu1 %2675 }
 0x470   : > { %v2714_v51 = vsub.f32 %v9220_v47, %v2676_v43  ;;  %v2715_v25 = vsub.f32 %v9222_v49, %v2676_v43  ;;  %v2806_v32 = vadd.f32 %v9424_v0, %v9422_v6  ;;  %v9430_v9 = vpop.eup %7429 }
 0x471   : > { %v2679_v44 = vpop.xlane.xlu0 %2678  ;;  %v9432_v38 = vpop.eup %7431 }
 0x472   : > { %v2762_v41 = vmul.f32 1.442695, %v2714_v51  ;;  %v2764_v34 = vmul.f32 1.442695, %v2715_v25  ;;  %v2716_v21 = vsub.f32 %v9224_v58, %v2679_v44  ;;  %v2717_v29 = vsub.f32 %v9228_v24, %v2679_v44  ;;  %2807 = vadd.xlane.f32.xlu1 %v2806_v32 }
 0x473   : > { %3306 = vmax.xlane.f32.xlu0 %v3305_v13  ;;  %v2809_v49 = vadd.f32 %v9432_v38, %v9430_v9 }
 0x474   : > { %7441 = vpow2.f32 %v2762_v41  ;;  %v2766_v47 = vmul.f32 1.442695, %v2716_v21  ;;  %v2768_v17 = vmul.f32 1.442695, %v2717_v29 }
 0x475   : > { %7443 = vpow2.f32 %v2764_v34 }
 0x476   : > { %v9438_v43 = vpop.eup %7433  ;;  %7445 = vpow2.f32 %v2766_v47 }
 0x477   : > { %v9440_v19 = vpop.eup %7435  ;;  %7447 = vpow2.f32 %v2768_v17  ;;  %2810 = vadd.xlane.f32.xlu0 %v2809_v49  ;;  %v2682_v51 = vpop.xlane.xlu1 %2681 }
 0x478   : > { %v9442_v58 = vpop.eup %7437  ;;  %v2718_v24 = vsub.f32 %v9232_v40, %v2682_v51  ;;  %v2719_v41 = vsub.f32 %v9234_v52, %v2682_v51  ;;  %v2812_v13 = vadd.f32 %v9440_v19, %v9438_v43 }
 0x479   : > { %v9448_v25 = vpop.eup %7439  ;;  %v2685_v32 = vpop.xlane.xlu0 %2684 }
 0x47a   : > { %v2770_v44 = vmul.f32 1.442695, %v2718_v24  ;;  %v2772_v34 = vmul.f32 1.442695, %v2719_v41  ;;  %v2720_v21 = vsub.f32 %v9236_v46, %v2685_v32  ;;  %v2721_v29 = vsub.f32 %v9240_v2, %v2685_v32  ;;  %2813 = vadd.xlane.f32.xlu1 %v2812_v13 }
 0x47b   : > { %v2815_v47 = vadd.f32 %v9448_v25, %v9442_v58 }
 0x47c   : > { %7449 = vpow2.f32 %v2770_v44  ;;  %v2774_v40 = vmul.f32 1.442695, %v2720_v21  ;;  %v2776_v17 = vmul.f32 1.442695, %v2721_v29  ;;  %v9478_v29 = vpop.permute.xlu1 %3544 }
 0x47d   : > { %7451 = vpow2.f32 %v2772_v34  ;;  %2816 = vadd.xlane.f32.xlu0 %v2815_v47  ;;  %v9480_v47 = vpop.permute.xlu0 %3560 }
 0x47e   : > { %v9454_v52 = vpop.eup %7441  ;;  %7453 = vpow2.f32 %v2774_v40 }
 0x47f   : > { %10227 = vst [vmem:[#allocation45_spill] sm:$0xff] %v9454_v52  ;;  %v9456_v49 = vpop.eup %7443  ;;  %7455 = vpow2.f32 %v2776_v17 }
 0x480   : > { %10228 = vst [vmem:[#allocation46_spill] sm:$0xff] %v9456_v49  ;;  %v9458_v51 = vpop.eup %7445  ;;  %v2818_v46 = vadd.f32 %v9456_v49, %v9454_v52 }
 0x481   : > { %10229 = vst [vmem:[#allocation47_spill] sm:$0xff] %v9458_v51  ;;  %v9462_v2 = vpop.eup %7447 }
 0x482   : > { %10230 = vst [vmem:[#allocation48_spill] sm:$0xff] %v9462_v2  ;;  %2819 = vadd.xlane.f32.xlu1 %v2818_v46  ;;  %v2821_v24 = vadd.f32 %v9462_v2, %v9458_v51 }
 0x484   : > { %2822 = vadd.xlane.f32.xlu0 %v2821_v24 }
 0x486   : > { %v9466_v41 = vpop.eup %7449 }
 0x487   : > { %10231 = vst [vmem:[#allocation49_spill] sm:$0xff] %v9466_v41  ;;  %v9468_v13 = vpop.eup %7451 }
 0x488   : > { %10232 = vst [vmem:[#allocation50_spill] sm:$0xff] %v9468_v13  ;;  %v9470_v32 = vpop.eup %7453  ;;  %v2824_v44 = vadd.f32 %v9468_v13, %v9466_v41 }
 0x489   : > { %10233 = vst [vmem:[#allocation51_spill] sm:$0xff] %v9470_v32  ;;  %v9474_v34 = vpop.eup %7455 }
 0x48a   : > { %10234 = vst [vmem:[#allocation52_spill] sm:$0xff] %v9474_v34  ;;  %2825 = vadd.xlane.f32.xlu1 %v2824_v44  ;;  %v2827_v21 = vadd.f32 %v9474_v34, %v9470_v32 }
 0x48c   : > { %2828 = vadd.xlane.f32.xlu0 %v2827_v21 }
 0x4ac   : > { %v2688_v40 = vpop.xlane.xlu1 %2687 }
 0x4ad   : > { %v2722_v17 = vsub.f32 %v9244_v57, %v2688_v40  ;;  %v2723_v46 = vsub.f32 %v9246_v33, %v2688_v40 }
 0x4ae   : > { %v2691_v24 = vpop.xlane.xlu0 %2690 }
 0x4af   : > { %v2778_v52 = vmul.f32 1.442695, %v2722_v17  ;;  %v2780_v51 = vmul.f32 1.442695, %v2723_v46  ;;  %v2724_v41 = vsub.f32 %v9248_v54, %v2691_v24  ;;  %v2725_v44 = vsub.f32 %v9252_v62, %v2691_v24 }
 0x4b0   : > { %v2694_v13 = vpop.xlane.xlu1 %2693 }
 0x4b1   : > { %7457 = vpow2.f32 %v2778_v52  ;;  %v2782_v32 = vmul.f32 1.442695, %v2724_v41  ;;  %v2784_v21 = vmul.f32 1.442695, %v2725_v44  ;;  %v2726_v34 = vsub.f32 %v9256_v63, %v2694_v13 }
 0x4b2   : > { %7459 = vpow2.f32 %v2780_v51  ;;  %v2727_v2 = vsub.f32 %v9258_v1, %v2694_v13  ;;  %v2697_v49 = vpop.xlane.xlu0 %2696 }
 0x4b3   : > { %7461 = vpow2.f32 %v2782_v32  ;;  %v2786_v57 = vmul.f32 1.442695, %v2726_v34  ;;  %v2728_v33 = vsub.f32 %v9260_v36, %v2697_v49  ;;  %v2729_v40 = vsub.f32 %v9264_v3, %v2697_v49 }
 0x4b4   : > { %7463 = vpow2.f32 %v2784_v21  ;;  %v2788_v54 = vmul.f32 1.442695, %v2727_v2 }
 0x4b5   : > { %7465 = vpow2.f32 %v2786_v57  ;;  %v2790_v62 = vmul.f32 1.442695, %v2728_v33  ;;  %v2792_v17 = vmul.f32 1.442695, %v2729_v40 }
 0x4b6   : > { %7467 = vpow2.f32 %v2788_v54 }
 0x4b7   : > { %7469 = vpow2.f32 %v2790_v62 }
 0x4b8   : > { %7471 = vpow2.f32 %v2792_v17 }
 0x4bb   : > { %v9490_v52 = vpop.eup %7457 }
 0x4bc   : > { %v9492_v63 = vpop.eup %7459 }
 0x4bd   : > { %v9494_v1 = vpop.eup %7461  ;;  %v2830_v51 = vadd.f32 %v9492_v63, %v9490_v52 }
 0x4be   : > { %v9498_v36 = vpop.eup %7463 }
 0x4bf   : > { %v9500_v3 = vpop.eup %7465  ;;  %2831 = vadd.xlane.f32.xlu1 %v2830_v51  ;;  %v2833_v49 = vadd.f32 %v9498_v36, %v9494_v1 }
 0x4c0   : > { %v9504_v2 = vpop.eup %7467 }
 0x4c1   : > { %v9506_v41 = vpop.eup %7469  ;;  %2834 = vadd.xlane.f32.xlu0 %v2833_v49  ;;  %v2836_v13 = vadd.f32 %v9504_v2, %v9500_v3  ;;  %v3262_v32 = vpop.xlane.xlu1 %3261 }
 0x4c2   : > { %v9510_v34 = vpop.eup %7471  ;;  %v3308_v46 = vsub.f32 %v9272_v4, %v3262_v32  ;;  %v3309_v24 = vsub.f32 %v9274_v16, %v3262_v32 }
 0x4c3   : > { %2837 = vadd.xlane.f32.xlu1 %v2836_v13  ;;  %v2839_v44 = vadd.f32 %v9510_v34, %v9506_v41  ;;  %v3265_v21 = vpop.xlane.xlu0 %3264 }
 0x4c4   : > { %v3340_v57 = vmul.f32 1.442695, %v3308_v46  ;;  %v3342_v33 = vmul.f32 1.442695, %v3309_v24  ;;  %v3310_v40 = vsub.f32 %v9276_v7, %v3265_v21  ;;  %v3311_v54 = vsub.f32 %v9280_v55, %v3265_v21 }
 0x4c5   : > { %2840 = vadd.xlane.f32.xlu0 %v2839_v44 }
 0x4c6   : > { %7473 = vpow2.f32 %v3340_v57  ;;  %v3344_v62 = vmul.f32 1.442695, %v3310_v40  ;;  %v3346_v17 = vmul.f32 1.442695, %v3311_v54 }
 0x4c7   : > { %7475 = vpow2.f32 %v3342_v33 }
 0x4c8   : > { %7477 = vpow2.f32 %v3344_v62 }
 0x4c9   : > { %7479 = vpow2.f32 %v3346_v17  ;;  %v3268_v4 = vpop.xlane.xlu1 %3267 }
 0x4ca   : > { %v3312_v16 = vsub.f32 %v9284_v10, %v3268_v4  ;;  %v3313_v51 = vsub.f32 %v9286_v22, %v3268_v4 }
 0x4cb   : > { %v3271_v49 = vpop.xlane.xlu0 %3270 }
 0x4cc   : > { %v3348_v13 = vmul.f32 1.442695, %v3312_v16  ;;  %v3350_v32 = vmul.f32 1.442695, %v3313_v51  ;;  %v3314_v46 = vsub.f32 %v9288_v31, %v3271_v49  ;;  %v3315_v7 = vsub.f32 %v9294_v11, %v3271_v49 }
 0x4ce   : > { %7481 = vpow2.f32 %v3348_v13  ;;  %v3352_v55 = vmul.f32 1.442695, %v3314_v46  ;;  %v3354_v24 = vmul.f32 1.442695, %v3315_v7 }
 0x4cf   : > { %7483 = vpow2.f32 %v3350_v32 }
 0x4d0   : > { %v9522_v44 = vpop.eup %7473  ;;  %7485 = vpow2.f32 %v3352_v55 }
 0x4d1   : > { %v9524_v21 = vpop.eup %7475  ;;  %7487 = vpow2.f32 %v3354_v24  ;;  %v3274_v10 = vpop.xlane.xlu1 %3273 }
 0x4d2   : > { %v9526_v57 = vpop.eup %7477  ;;  %v3316_v22 = vsub.f32 %v9300_v42, %v3274_v10  ;;  %v3317_v33 = vsub.f32 %v9302_v39, %v3274_v10  ;;  %v3404_v31 = vadd.f32 %v9524_v21, %v9522_v44 }
 0x4d3   : > { %v9532_v11 = vpop.eup %7479  ;;  %v3277_v40 = vpop.xlane.xlu0 %3276 }
 0x4d4   : > { %v3356_v54 = vmul.f32 1.442695, %v3316_v22  ;;  %v3358_v62 = vmul.f32 1.442695, %v3317_v33  ;;  %3405 = vadd.xlane.f32.xlu1 %v3404_v31  ;;  %v3318_v17 = vsub.f32 %v9304_v50, %v3277_v40  ;;  %v3319_v4 = vsub.f32 %v9310_v37, %v3277_v40 }
 0x4d5   : > { %v3407_v16 = vadd.f32 %v9532_v11, %v9526_v57 }
 0x4d6   : > { %7489 = vpow2.f32 %v3356_v54  ;;  %v3360_v42 = vmul.f32 1.442695, %v3318_v17  ;;  %v3362_v51 = vmul.f32 1.442695, %v3319_v4 }
 0x4d7   : > { %7491 = vpow2.f32 %v3358_v62  ;;  %3408 = vadd.xlane.f32.xlu0 %v3407_v16 }
 0x4d8   : > { %v9538_v39 = vpop.eup %7481  ;;  %7493 = vpow2.f32 %v3360_v42 }
 0x4d9   : > { %v9540_v49 = vpop.eup %7483  ;;  %7495 = vpow2.f32 %v3362_v51  ;;  %v3280_v13 = vpop.xlane.xlu1 %3279 }
 0x4da   : > { %v9542_v32 = vpop.eup %7485  ;;  %v3320_v50 = vsub.f32 %v9316_v59, %v3280_v13  ;;  %v3321_v37 = vsub.f32 %v9320_v8, %v3280_v13  ;;  %v3410_v46 = vadd.f32 %v9540_v49, %v9538_v39 }
 0x4db   : > { %v9548_v7 = vpop.eup %7487  ;;  %v3283_v55 = vpop.xlane.xlu0 %3282 }
 0x4dc   : > { %v3364_v24 = vmul.f32 1.442695, %v3320_v50  ;;  %v3366_v10 = vmul.f32 1.442695, %v3321_v37  ;;  %3411 = vadd.xlane.f32.xlu0 %v3410_v46  ;;  %v3322_v22 = vsub.f32 %v9322_v20, %v3283_v55  ;;  %v3323_v33 = vsub.f32 %v9328_v30, %v3283_v55 }
 0x4dd   : > { %v3413_v31 = vadd.f32 %v9548_v7, %v9542_v32 }
 0x4de   : > { %7497 = vpow2.f32 %v3364_v24  ;;  %v3368_v59 = vmul.f32 1.442695, %v3322_v22  ;;  %v3370_v40 = vmul.f32 1.442695, %v3323_v33 }
 0x4df   : > { %7499 = vpow2.f32 %v3366_v10  ;;  %3414 = vadd.xlane.f32.xlu1 %v3413_v31 }
 0x4e0   : > { %v9554_v8 = vpop.eup %7489  ;;  %7501 = vpow2.f32 %v3368_v59 }
 0x4e1   : > { %10235 = vst [vmem:[#allocation53_spill] sm:$0xff] %v9554_v8  ;;  %v9556_v54 = vpop.eup %7491  ;;  %7503 = vpow2.f32 %v3370_v40 }
 0x4e2   : > { %v9558_v62 = vpop.eup %7493  ;;  %v3416_v20 = vadd.f32 %v9556_v54, %v9554_v8  ;;  %v3286_v4 = vpop.xlane.xlu1 %3285 }
 0x4e3   : > { %v9562_v30 = vpop.eup %7495  ;;  %v3289_v42 = vpop.xlane.xlu0 %3288 }
 0x4e4   : > { %3417 = vadd.xlane.f32.xlu0 %v3416_v20  ;;  %v3419_v17 = vadd.f32 %v9562_v30, %v9558_v62 }
 0x4e6   : > { %3420 = vadd.xlane.f32.xlu1 %v3419_v17 }
 0x4e8   : > { %v9566_v16 = vpop.eup %7497 }
 0x4e9   : > { %10236 = vst [vmem:[#allocation54_spill] sm:$0xff] %v9566_v16  ;;  %v9568_v51 = vpop.eup %7499  ;;  %v9570_v13 = vpop.xlane.xlu1 %3291 }
 0x4ea   : > { %10237 = vst [vmem:[#allocation55_spill] sm:$0xff] %v9568_v51  ;;  %v9572_v50 = vpop.eup %7501  ;;  %v3422_v37 = vadd.f32 %v9568_v51, %v9566_v16 }
 0x4eb   : > { %10238 = vst [vmem:[#allocation56_spill] sm:$0xff] %v9572_v50  ;;  %v9576_v46 = vpop.eup %7503  ;;  %v9578_v55 = vpop.xlane.xlu0 %3294 }
 0x4ec   : > { %10239 = vst [vmem:[#allocation57_spill] sm:$0xff] %v9576_v46  ;;  %3423 = vadd.xlane.f32.xlu0 %v3422_v37  ;;  %v3425_v24 = vadd.f32 %v9576_v46, %v9572_v50  ;;  %v3324_v46 = vsub.f32 %v9336_v5, %v3286_v4 }
 0x4ee   : > { %3426 = vadd.xlane.f32.xlu1 %v3425_v24 }
 0x4ef   : > { %v2796_v10 = vpop.xlane.xlu1 %2795 }
 0x4f0   : > { %7505 = vrcp.f32 %v2796_v10 }
 0x4f2   : > { %v2799_v22 = vpop.xlane.xlu0 %2798 }
 0x4f3   : > { %7507 = vrcp.f32 %v2799_v22  ;;  %v9582_v33 = vpop.xlane.xlu1 %3297 }
 0x4f6   : > { %v9584_v59 = vpop.xlane.xlu0 %3300 }
 0x4f7   : > { %v2802_v31 = vpop.xlane.xlu1 %2801 }
 0x4f8   : > { %7509 = vrcp.f32 %v2802_v31 }
 0x4fa   : > { %v7506_v20 = vpop.eup %7505 }
 0x4fb   : > { %v9586_v40 = vpop.xlane.xlu1 %3303  ;;  %v2858_v16 = vmul.f32 %v7506_v20, %v9366_v48  ;;  %v2859_v24 = vmul.f32 %v7506_v20, %v9368_v23 }
 0x4fc   : > { %v2805_v17 = vpop.xlane.xlu0 %2804 }
 0x4fd   : > { %v7508_v37 = vpop.eup %7507  ;;  %7511 = vrcp.f32 %v2805_v17 }
 0x4fe   : > { %v2860_v50 = vmul.f32 %v7508_v37, %v9370_v26  ;;  %v2861_v10 = vmul.f32 %v7508_v37, %v9378_v18  ;;  %v3325_v26 = vsub.f32 %v9338_v61, %v3286_v4  ;;  %v3326_v18 = vsub.f32 %v9342_v60, %v3289_v42  ;;  %v10242_v37 = vld [vmem:[#allocation35_spill] sm:$0xff]  ;;  %v10243_v4 = vld [vmem:[#allocation28_spill] sm:$0xff] }
 0x4ff   : > { %3546 = vrot.lane.b32.xlu1 %v9090_v12, %s8090_s23  ;;  %v2808_v8 = vpop.xlane.xlu1 %2807  ;;  %v10240_v12 = vld [vmem:[#allocation31_spill] sm:$0xff] }
 0x500   : > { %v9592_v22 = vpop.xlane.xlu0 %3306  ;;  %v2891_v31 = vpack.c.bf16 %v2861_v10, %v2859_v24  ;;  %v2890_v51 = vpack.c.bf16 %v2860_v50, %v2858_v16  ;;  %7513 = vrcp.f32 %v2808_v8  ;;  %v3372_v16 = vmul.f32 1.442695, %v3324_v46  ;;  %v10241_v50 = vld [vmem:[#allocation34_spill] sm:$0xff] }
 0x501   : > { %v3327_v20 = vsub.f32 %v10241_v50, %v3289_v42  ;;  %v3374_v17 = vmul.f32 1.442695, %v3325_v26  ;;  %v3376_v46 = vmul.f32 1.442695, %v3326_v18  ;;  %v10244_v42 = vld [vmem:[#allocation33_spill] sm:$0xff]  ;;  %v3332_v18 = vsub.f32 %v9374_v53, %v9582_v33  ;;  %v10252_v53 = vld [vmem:[#allocation40_spill] sm:$0xff] }
 0x502   : > { %2938 = vmatprep.mubr.bf16.mxu1 %v2891_v31  ;;  %3562 = vrot.lane.b32.xlu0 %v9147_v14, %s8090_s23  ;;  %v7510_v23 = vpop.eup %7509  ;;  %v3328_v14 = vsub.f32 %v10242_v37, %v9570_v13 }
 0x503   : > { %2939 = vmatmul.mubr.bf16.vlgmr.msra.gmra.mrb[96].mxu1 %v2890_v51  ;;  %v2862_v60 = vmul.f32 %v7510_v23, %v9394_v56  ;;  %v3378_v24 = vmul.f32 1.442695, %v3327_v20 }
 0x504   : > { %6437 = vmatpush3.bf16.msra.mxu1 %v9292_v27  ;;  %v2811_v48 = vpop.xlane.xlu0 %2810  ;;  %v2863_v27 = vmul.f32 %v7510_v23, %v9396_v45  ;;  %v3380_v50 = vmul.f32 1.442695, %v3328_v14  ;;  %v10246_v45 = vld [vmem:[#allocation37_spill] sm:$0xff] }
 0x505   : > { %6438 = vmatprep.subr.bf16.mxu1 %v10240_v12  ;;  %7515 = vrcp.f32 %v2811_v48  ;;  %v10245_v48 = vld [vmem:[#allocation36_spill] sm:$0xff]  ;;  %v3330_v56 = vsub.f32 %v10246_v45, %v9578_v55 }
 0x506   : > { %v3329_v12 = vsub.f32 %v10245_v48, %v9570_v13 }
 0x507   : > { %v7512_v5 = vpop.eup %7511  ;;  %v2814_v61 = vpop.xlane.xlu1 %2813  ;;  %v3384_v14 = vmul.f32 1.442695, %v3330_v56 }
 0x508   : > { %6439 = vmatpush3.bf16.msra.mxu1 %v10243_v4  ;;  %v2865_v8 = vmul.f32 %v7512_v5, %v9412_v15  ;;  %v2864_v51 = vmul.f32 %v7512_v5, %v9406_v35  ;;  %7517 = vrcp.f32 %v2814_v61  ;;  %v10247_v15 = vld [vmem:[#allocation24_spill] sm:$0xff]  ;;  %v10248_v35 = vld [vmem:[#allocation38_spill] sm:$0xff]  ;;  %v3382_v20 = vmul.f32 1.442695, %v3329_v12  ;;  %v10250_v5 = vld [vmem:[#allocation39_spill] sm:$0xff] }
 0x509   : > { %6440 = vmatprep.subr.bf16.mxu1 %v10244_v42  ;;  %7519 = vpow2.f32 %v3372_v16  ;;  %v3331_v23 = vsub.f32 %v10248_v35, %v9578_v55  ;;  %v10249_v16 = vld [vmem:[#allocation29_spill] sm:$0xff]  ;;  %v10254_v12 = vld [vmem:[#allocation42_spill] sm:$0xff] }
 0x50a   : > { %v2817_v10 = vpop.xlane.xlu0 %2816  ;;  %v2893_v31 = vpack.c.bf16 %v2865_v8, %v2863_v27  ;;  %v2892_v26 = vpack.c.bf16 %v2864_v51, %v2862_v60  ;;  %v7514_v13 = vpop.eup %7513  ;;  %v10251_v61 = vld [vmem:[#allocation25_spill] sm:$0xff]  ;;  %v3388_v27 = vmul.f32 1.442695, %v3332_v18  ;;  %v3334_v8 = vsub.f32 %v10252_v53, %v9584_v59  ;;  %v10253_v60 = vld [vmem:[#allocation30_spill] sm:$0xff] }
 0x50b   : > { %7521 = vrcp.f32 %v2817_v10  ;;  %v3386_v55 = vmul.f32 1.442695, %v3331_v23 }
 0x50c   : > { %7523 = vpow2.f32 %v3374_v17  ;;  %6441 = vmatpush3.bf16.msra.mxu1 %v10247_v15  ;;  %2946 = vmatprep.mubr.bf16.mxu1 %v2893_v31  ;;  %v3333_v17 = vsub.f32 %v10250_v5, %v9582_v33  ;;  %v2866_v33 = vmul.f32 %v7514_v13, %v9422_v6  ;;  %v3392_v6 = vmul.f32 1.442695, %v3334_v8 }
 0x50d   : > { %7525 = vpow2.f32 %v3376_v46  ;;  %6442 = vmatprep.subr.bf16.mxu1 %v10249_v16  ;;  %2947 = vmatmul.mubr.bf16.gmra.mrb[100].mxu1 %v2892_v26  ;;  %v2867_v46 = vmul.f32 %v7514_v13, %v9424_v0  ;;  %v3336_v26 = vsub.f32 %v9400_v28, %v9586_v40  ;;  %v10255_v0 = vld [vmem:[#allocation26_spill] sm:$0xff]  ;;  %v10257_v28 = vld [vmem:[#allocation41_spill] sm:$0xff] }
 0x50e   : > { %7527 = vpow2.f32 %v3378_v24  ;;  %v3390_v31 = vmul.f32 1.442695, %v3333_v17  ;;  %v3335_v35 = vsub.f32 %v10257_v28, %v9584_v59  ;;  %v10258_v17 = vld [vmem:[#allocation27_spill] sm:$0xff] }
 0x50f   : > { %7529 = vpow2.f32 %v3380_v50  ;;  %v2820_v37 = vpop.xlane.xlu1 %2819  ;;  %v7516_v4 = vpop.eup %7515  ;;  %v3337_v50 = vsub.f32 %v10254_v12, %v9586_v40  ;;  %v3396_v16 = vmul.f32 1.442695, %v3336_v26 }
 0x510   : > { %6443 = vmatpush3.bf16.msra.mxu1 %v10251_v61  ;;  %7531 = vrcp.f32 %v2820_v37  ;;  %v2869_v42 = vmul.f32 %v7516_v4, %v9432_v38  ;;  %v2868_v24 = vmul.f32 %v7516_v4, %v9430_v9  ;;  %v10256_v9 = vld [vmem:[#allocation32_spill] sm:$0xff] }
 0x511   : > { %6444 = vmatprep.subr.bf16.mxu1 %v10253_v60  ;;  %v2823_v51 = vpop.xlane.xlu0 %2822  ;;  %v3398_v5 = vmul.f32 1.442695, %v3337_v50  ;;  %v10263_v50 = vld [vmem:[#allocation47_spill] sm:$0xff] }
 0x512   : > { %7533 = vrcp.f32 %v2823_v51  ;;  %v7518_v10 = vpop.eup %7517  ;;  %v2895_v45 = vpack.c.bf16 %v2869_v42, %v2867_v46  ;;  %v2894_v38 = vpack.c.bf16 %v2868_v24, %v2866_v33  ;;  %v10261_v42 = vld [vmem:[#allocation46_spill] sm:$0xff]  ;;  %v10262_v33 = vld [vmem:[#allocation48_spill] sm:$0xff] }
 0x513   : > { %7535 = vpow2.f32 %v3382_v20  ;;  %v9634_v48 = vpop.eup %7519  ;;  %v2871_v23 = vmul.f32 %v7518_v10, %v9440_v19  ;;  %v10259_v19 = vld [vmem:[#allocation43_spill] sm:$0xff]  ;;  %v2870_v8 = vmul.f32 %v7518_v10, %v9438_v43 }
 0x514   : > { %7537 = vpow2.f32 %v3384_v14  ;;  %6445 = vmatpush3.bf16.msra.mxu1 %v10255_v0  ;;  %2954 = vmatprep.mubr.bf16.mxu1 %v2895_v45  ;;  %v3338_v59 = vsub.f32 %v10259_v19, %v9592_v22 }
 0x515   : > { %v7522_v56 = vpop.eup %7521  ;;  %7539 = vpow2.f32 %v3386_v55  ;;  %6446 = vmatprep.subr.bf16.mxu1 %v10256_v9  ;;  %2955 = vmatmul.mubr.bf16.gmra.mrb[104].mxu1 %v2894_v38  ;;  %v3394_v55 = vmul.f32 1.442695, %v3335_v35 }
 0x516   : > { %v9640_v15 = vpop.eup %7523  ;;  %7541 = vpow2.f32 %v3388_v27  ;;  %v2873_v40 = vmul.f32 %v7522_v56, %v9448_v25  ;;  %v2872_v61 = vmul.f32 %v7522_v56, %v9442_v58  ;;  %v10260_v27 = vld [vmem:[#allocation44_spill] sm:$0xff] }
 0x517   : > { %v9646_v18 = vpop.eup %7525  ;;  %7543 = vpow2.f32 %v3390_v31  ;;  %v2826_v13 = vpop.xlane.xlu1 %2825  ;;  %v3339_v53 = vsub.f32 %v10260_v27, %v9592_v22  ;;  %v3428_v10 = vadd.f32 %v9640_v15, %v9634_v48 }
 0x518   : > { %v9648_v20 = vpop.eup %7527  ;;  %6447 = vmatpush3.bf16.msra.mxu1 %v10258_v17  ;;  %7545 = vrcp.f32 %v2826_v13  ;;  %v2897_v37 = vpack.c.bf16 %v2873_v40, %v2871_v23  ;;  %v2896_v46 = vpack.c.bf16 %v2872_v61, %v2870_v8  ;;  %v10268_v8 = vld [vmem:[#allocation49_spill] sm:$0xff] }
 0x519   : > { %v9651_v14 = vpop.eup %7529  ;;  %7547 = vpow2.f32 %v3392_v6  ;;  %6448 = vmatprep.subr.bf16.mxu1 %v9480_v47  ;;  %v2829_v25 = vpop.xlane.xlu0 %2828  ;;  %v3400_v47 = vmul.f32 1.442695, %v3338_v59  ;;  %v3402_v22 = vmul.f32 1.442695, %v3339_v53  ;;  %v3431_v38 = vadd.f32 %v9648_v20, %v9646_v18  ;;  %v10264_v6 = vld [vmem:[#allocation45_spill] sm:$0xff] }
 0x51a   : > { %v7532_v4 = vpop.eup %7531  ;;  %2962 = vmatprep.mubr.bf16.mxu1 %v2897_v37  ;;  %7549 = vrcp.f32 %v2829_v25 }
 0x51b   : > { %7551 = vpow2.f32 %v3396_v16  ;;  %v2875_v58 = vmul.f32 %v7532_v4, %v10261_v42  ;;  %v2874_v9 = vmul.f32 %v7532_v4, %v10264_v6  ;;  %v10265_v16 = vld [vmem:[#allocation50_spill] sm:$0xff]  ;;  %v10267_v4 = vld [vmem:[#allocation51_spill] sm:$0xff] }
 0x51c   : > { %v7534_v60 = vpop.eup %7533  ;;  %7553 = vpow2.f32 %v3398_v5  ;;  %6449 = vmatpush3.bf16.msra.mxu1 %v9478_v29  ;;  %v10266_v5 = vld [vmem:[#allocation52_spill] sm:$0xff] }
 0x51d   : > { %v9661_v51 = vpop.eup %7535  ;;  %v2877_v24 = vmul.f32 %v7534_v60, %v10262_v33  ;;  %7555 = vpow2.f32 %v3394_v55  ;;  %2963 = vmatmul.mubr.bf16.gmra.mrb[108].mxu1 %v2896_v46  ;;  %v2876_v0 = vmul.f32 %v7534_v60, %v10263_v50 }
 0x51e   : > { %v9665_v31 = vpop.eup %7537  ;;  %7557 = vpow2.f32 %v3400_v47  ;;  %v3434_v28 = vadd.f32 %v9661_v51, %v9651_v14 }
 0x51f   : > { %v9667_v26 = vpop.eup %7539  ;;  %v2899_v43 = vpack.c.bf16 %v2877_v24, %v2875_v58  ;;  %7559 = vpow2.f32 %v3402_v22  ;;  %v2898_v40 = vpack.c.bf16 %v2876_v0, %v2874_v9 }
 0x520   : > { %v9671_v29 = vpop.eup %7541  ;;  %v3437_v25 = vadd.f32 %v9667_v26, %v9665_v31 }
 0x521   : > { %v9673_v12 = vpop.eup %7543  ;;  %2970 = vmatprep.mubr.bf16.mxu1 %v2899_v43  ;;  %3429 = vadd.xlane.f32.xlu0 %v3428_v10 }
 0x522   : > { %v7546_v45 = vpop.eup %7545  ;;  %v3440_v19 = vadd.f32 %v9673_v12, %v9671_v29 }
 0x523   : > { %v9678_v56 = vpop.eup %7547  ;;  %3432 = vadd.xlane.f32.xlu1 %v3431_v38  ;;  %v2879_v13 = vmul.f32 %v7546_v45, %v10265_v16  ;;  %v2878_v60 = vmul.f32 %v7546_v45, %v10268_v8 }
 0x524   : > { %v7550_v35 = vpop.eup %7549 }
 0x525   : > { %v9683_v23 = vpop.eup %7551  ;;  %3435 = vadd.xlane.f32.xlu0 %v3434_v28  ;;  %v2881_v17 = vmul.f32 %v7550_v35, %v10266_v5  ;;  %2971 = vmatmul.mubr.bf16.gmra.mrb[112].mxu1 %v2898_v40  ;;  %v2880_v55 = vmul.f32 %v7550_v35, %v10267_v4 }
 0x526   : > { %v9687_v37 = vpop.eup %7553 }
 0x527   : > { %v2901_v59 = vpack.c.bf16 %v2881_v17, %v2879_v13  ;;  %v9693_v61 = vpop.eup %7555  ;;  %3441 = vadd.xlane.f32.xlu1 %v3440_v19  ;;  %v3446_v27 = vadd.f32 %v9687_v37, %v9683_v23  ;;  %v2900_v42 = vpack.c.bf16 %v2880_v55, %v2878_v60 }
 0x528   : > { %v9698_v53 = vpop.eup %7557  ;;  %v3443_v47 = vadd.f32 %v9693_v61, %v9678_v56 }
 0x529   : > { %2978 = vmatprep.mubr.bf16.mxu1 %v2901_v59  ;;  %3438 = vadd.xlane.f32.xlu0 %v3437_v25  ;;  %v9703_v46 = vpop.eup %7559 }
 0x52a   : > { %v3449_v58 = vadd.f32 %v9703_v46, %v9698_v53 }
 0x52b   : > { %3447 = vadd.xlane.f32.xlu1 %v3446_v27 }
 0x52d   : > { %3444 = vadd.xlane.f32.xlu0 %v3443_v47  ;;  %2979 = vmatmul.mubr.bf16.gmra.mrb[116].mxu1 %v2900_v42 }
 0x531   : > { %3450 = vadd.xlane.f32.xlu0 %v3449_v58 }
 0x54c   : > { %v2832_v33 = vpop.xlane.xlu1 %2831 }
 0x54d   : > { %7561 = vrcp.f32 %v2832_v33 }
 0x54e   : > { %v2835_v24 = vpop.xlane.xlu0 %2834 }
 0x54f   : > { %7563 = vrcp.f32 %v2835_v24 }
 0x550   : > { %v2838_v22 = vpop.xlane.xlu1 %2837 }
 0x551   : > { %7565 = vrcp.f32 %v2838_v22 }
 0x552   : > { %v2841_v43 = vpop.xlane.xlu0 %2840 }
 0x553   : > { %7567 = vrcp.f32 %v2841_v43 }
 0x557   : > { %v7562_v10 = vpop.eup %7561 }
 0x558   : > { %v2883_v0 = vmul.f32 %v7562_v10, %v9492_v63  ;;  %v2882_v38 = vmul.f32 %v7562_v10, %v9490_v52 }
 0x559   : > { %v7564_v50 = vpop.eup %7563 }
 0x55a   : > { %v2885_v45 = vmul.f32 %v7564_v50, %v9498_v36  ;;  %v2884_v6 = vmul.f32 %v7564_v50, %v9494_v1 }
 0x55b   : > { %v7566_v9 = vpop.eup %7565 }
 0x55c   : > { %v2903_v28 = vpack.c.bf16 %v2885_v45, %v2883_v0  ;;  %v2902_v35 = vpack.c.bf16 %v2884_v6, %v2882_v38  ;;  %v2887_v16 = vmul.f32 %v7566_v9, %v9504_v2  ;;  %v2886_v52 = vmul.f32 %v7566_v9, %v9500_v3 }
 0x55d   : > { %v7568_v40 = vpop.eup %7567 }
 0x55e   : > { %2986 = vmatprep.mubr.bf16.mxu1 %v2903_v28  ;;  %v2889_v13 = vmul.f32 %v7568_v40, %v9510_v34  ;;  %v2888_v63 = vmul.f32 %v7568_v40, %v9506_v41  ;;  %v10269_v28 = vld [vmem:[#allocation57_spill] sm:$0xff] }
 0x55f   : > { %2987 = vmatmul.mubr.bf16.gmra.mrb[120].mxu1 %v2902_v35  ;;  %v10270_v40 = vld [vmem:[#allocation53_spill] sm:$0xff] }
 0x560   : > { %v2905_v5 = vpack.c.bf16 %v2889_v13, %v2887_v16  ;;  %v2904_v1 = vpack.c.bf16 %v2888_v63, %v2886_v52  ;;  %v10271_v13 = vld [vmem:[#allocation55_spill] sm:$0xff] }
 0x561   : > { %v3406_v17 = vpop.xlane.xlu1 %3405 }
 0x562   : > { %2994 = vmatprep.mubr.bf16.mxu1 %v2905_v5  ;;  %7569 = vrcp.f32 %v3406_v17  ;;  %v10273_v17 = vld [vmem:[#allocation54_spill] sm:$0xff] }
 0x564   : > { %v3409_v36 = vpop.xlane.xlu0 %3408 }
 0x565   : > { %7571 = vrcp.f32 %v3409_v36 }
 0x567   : > { %2995 = vmatmul.mubr.bf16.gmra.mrb[124].mxu1 %v2904_v1 }
 0x569   : > { %v3412_v4 = vpop.xlane.xlu0 %3411 }
 0x56c   : > { %v7570_v19 = vpop.eup %7569  ;;  %v3415_v25 = vpop.xlane.xlu1 %3414 }
 0x56d   : > { %v3469_v2 = vmul.f32 %v7570_v19, %v9524_v21  ;;  %7573 = vrcp.f32 %v3415_v25 }
 0x56e   : > { %7575 = vrcp.f32 %v3412_v4 }
 0x56f   : > { %v7572_v59 = vpop.eup %7571 }
 0x570   : > { %v3471_v34 = vmul.f32 %v7572_v59, %v9532_v11  ;;  %v3470_v58 = vmul.f32 %v7572_v59, %v9526_v57  ;;  %v3468_v11 = vmul.f32 %v7570_v19, %v9522_v44 }
 0x571   : > { %v3418_v41 = vpop.xlane.xlu0 %3417 }
 0x572   : > { %v3501_v55 = vpack.c.bf16 %v3471_v34, %v3469_v2  ;;  %v3500_v22 = vpack.c.bf16 %v3470_v58, %v3468_v11 }
 0x573   : > { %v3421_v27 = vpop.xlane.xlu1 %3420 }
 0x574   : > { %3612 = vmatprep.mubr.bf16.mxu1 %v3501_v55  ;;  %7577 = vrcp.f32 %v3421_v27 }
 0x575   : > { %7579 = vrcp.f32 %v3418_v41 }
 0x577   : > { %v7574_v3 = vpop.eup %7573 }
 0x578   : > { %v7576_v42 = vpop.eup %7575  ;;  %v3475_v21 = vmul.f32 %v7574_v3, %v9548_v7  ;;  %v3474_v0 = vmul.f32 %v7574_v3, %v9542_v32 }
 0x579   : > { %v3424_v8 = vpop.xlane.xlu0 %3423  ;;  %v3473_v24 = vmul.f32 %v7576_v42, %v9540_v49  ;;  %v3472_v7 = vmul.f32 %v7576_v42, %v9538_v39  ;;  %v10272_v39 = vld [vmem:[#allocation56_spill] sm:$0xff] }
 0x57b   : > { %v3427_v60 = vpop.xlane.xlu1 %3426  ;;  %v3503_v43 = vpack.c.bf16 %v3475_v21, %v3473_v24  ;;  %v3502_v45 = vpack.c.bf16 %v3474_v0, %v3472_v7 }
 0x57c   : > { %7581 = vrcp.f32 %v3427_v60 }
 0x57d   : > { %v3563_v47 = vpop.permute.xlu0 %3562  ;;  %7583 = vrcp.f32 %v3424_v8 }
 0x57e   : > { %6450 = vmatprep.subr.bf16.mxu1 %v3563_v47  ;;  %v7578_v10 = vpop.eup %7577 }
 0x57f   : > { %v3547_v33 = vpop.permute.xlu1 %3546  ;;  %v7580_v50 = vpop.eup %7579  ;;  %v3479_v57 = vmul.f32 %v7578_v10, %v9562_v30  ;;  %v3478_v9 = vmul.f32 %v7578_v10, %v9558_v62 }
 0x580   : > { %6451 = vmatpush3.bf16.msra.mxu1 %v3547_v33  ;;  %v3477_v44 = vmul.f32 %v7580_v50, %v9556_v54  ;;  %v3476_v16 = vmul.f32 %v7580_v50, %v10270_v40 }
 0x582   : > { %v3505_v38 = vpack.c.bf16 %v3479_v57, %v3477_v44  ;;  %v3504_v5 = vpack.c.bf16 %v3478_v9, %v3476_v16 }
 0x583   : > { %3613 = vmatmul.mubr.bf16.vlgmr.msra.gmra.mrb[128].mxu1 %v3500_v22 }
 0x584   : > { %3620 = vmatprep.mubr.bf16.mxu1 %v3503_v43 }
 0x586   : > { %v7582_v6 = vpop.eup %7581 }
 0x587   : > { %v7584_v49 = vpop.eup %7583  ;;  %v3483_v35 = vmul.f32 %v7582_v6, %v10269_v28  ;;  %v3482_v54 = vmul.f32 %v7582_v6, %v10272_v39 }
 0x588   : > { %v3481_v32 = vmul.f32 %v7584_v49, %v10271_v13  ;;  %v3480_v63 = vmul.f32 %v7584_v49, %v10273_v17 }
 0x58a   : > { %v3507_v30 = vpack.c.bf16 %v3483_v35, %v3481_v32  ;;  %v3506_v52 = vpack.c.bf16 %v3482_v54, %v3480_v63 }
 0x58b   : > { %3621 = vmatmul.mubr.bf16.gmra.mrb[132].mxu1 %v3502_v45 }
 0x58c   : > { %3628 = vmatprep.mubr.bf16.mxu1 %v3505_v38 }
 0x593   : > { %3629 = vmatmul.mubr.bf16.gmra.mrb[136].mxu1 %v3504_v5 }
 0x594   : > { %3636 = vmatprep.mubr.bf16.mxu1 %v3507_v30 }
 0x59b   : > { %3637 = vmatmul.mubr.bf16.gmra.mrb[140].mxu1 %v3506_v52 }
 0x5ae   : > { %v3430_v36 = vpop.xlane.xlu0 %3429 }
 0x5af   : > { %7585 = vrcp.f32 %v3430_v36 }
 0x5b0   : > { %v3433_v1 = vpop.xlane.xlu1 %3432 }
 0x5b1   : > { %7587 = vrcp.f32 %v3433_v1 }
 0x5b2   : > { %v3436_v62 = vpop.xlane.xlu0 %3435 }
 0x5b3   : > { %7589 = vrcp.f32 %v3436_v62 }
 0x5b4   : > { %v3442_v19 = vpop.xlane.xlu1 %3441 }
 0x5b6   : > { %v3439_v59 = vpop.xlane.xlu0 %3438 }
 0x5b7   : > { %7591 = vrcp.f32 %v3439_v59 }
 0x5b8   : > { %7593 = vrcp.f32 %v3442_v19  ;;  %v3448_v60 = vpop.xlane.xlu1 %3447 }
 0x5b9   : > { %v7586_v25 = vpop.eup %7585 }
 0x5ba   : > { %v3445_v2 = vpop.xlane.xlu0 %3444  ;;  %v3485_v4 = vmul.f32 %v7586_v25, %v9640_v15  ;;  %v3484_v41 = vmul.f32 %v7586_v25, %v9634_v48 }
 0x5bb   : > { %7595 = vrcp.f32 %v3445_v2  ;;  %v7588_v34 = vpop.eup %7587 }
 0x5bc   : > { %v3487_v55 = vmul.f32 %v7588_v34, %v9648_v20  ;;  %v3486_v27 = vmul.f32 %v7588_v34, %v9646_v18 }
 0x5bd   : > { %v7590_v3 = vpop.eup %7589 }
 0x5be   : > { %v3451_v8 = vpop.xlane.xlu0 %3450  ;;  %v3509_v47 = vpack.c.bf16 %v3487_v55, %v3485_v4  ;;  %v3508_v42 = vpack.c.bf16 %v3486_v27, %v3484_v41  ;;  %v3489_v21 = vmul.f32 %v7590_v3, %v9661_v51  ;;  %v3488_v18 = vmul.f32 %v7590_v3, %v9651_v14 }
 0x5bf   : > { %7597 = vrcp.f32 %v3451_v8 }
 0x5c0   : > { %3644 = vmatprep.mubr.bf16.mxu1 %v3509_v47  ;;  %7599 = vrcp.f32 %v3448_v60 }
 0x5c1   : > { %v7592_v58 = vpop.eup %7591  ;;  %3645 = vmatmul.mubr.bf16.gmra.mrb[144].mxu1 %v3508_v42 }
 0x5c2   : > { %v3491_v15 = vmul.f32 %v7592_v58, %v9667_v26  ;;  %v7594_v11 = vpop.eup %7593  ;;  %v3490_v48 = vmul.f32 %v7592_v58, %v9665_v31 }
 0x5c3   : > { %v3493_v24 = vmul.f32 %v7594_v11, %v9673_v12  ;;  %v3492_v31 = vmul.f32 %v7594_v11, %v9671_v29 }
 0x5c4   : > { %v3511_v20 = vpack.c.bf16 %v3491_v15, %v3489_v21  ;;  %v3510_v43 = vpack.c.bf16 %v3490_v48, %v3488_v18 }
 0x5c5   : > { %v7596_v33 = vpop.eup %7595 }
 0x5c6   : > { %3652 = vmatprep.mubr.bf16.mxu1 %v3511_v20  ;;  %v3495_v22 = vmul.f32 %v7596_v33, %v9693_v61  ;;  %v3494_v26 = vmul.f32 %v7596_v33, %v9678_v56 }
 0x5c8   : > { %v3513_v10 = vpack.c.bf16 %v3495_v22, %v3493_v24  ;;  %v3512_v7 = vpack.c.bf16 %v3494_v26, %v3492_v31 }
 0x5c9   : > { %v7598_v50 = vpop.eup %7597  ;;  %3653 = vmatmul.mubr.bf16.gmra.mrb[148].mxu1 %v3510_v43 }
 0x5ca   : > { %3660 = vmatprep.mubr.bf16.mxu1 %v3513_v10  ;;  %v7600_v51 = vpop.eup %7599  ;;  %v3499_v0 = vmul.f32 %v7598_v50, %v9703_v46  ;;  %v3498_v12 = vmul.f32 %v7598_v50, %v9698_v53 }
 0x5cb   : > { %v3497_v57 = vmul.f32 %v7600_v51, %v9687_v37  ;;  %v3496_v44 = vmul.f32 %v7600_v51, %v9683_v23 }
 0x5cd   : > { %v3515_v14 = vpack.c.bf16 %v3499_v0, %v3497_v57  ;;  %v3514_v56 = vpack.c.bf16 %v3498_v12, %v3496_v44 }
 0x5d1   : > { %3661 = vmatmul.mubr.bf16.gmra.mrb[152].mxu1 %v3512_v7 }
 0x5d2   : > { %3668 = vmatprep.mubr.bf16.mxu1 %v3515_v14 }
 0x5d6   : > { %v6356_v61 = vpop.f32.mrb[96].mxu1 }
 0x5d7   : > { %v6357_v45 = vpop.f32.mrb[97].mxu1 }
 0x5d8   : > { %v9747_v38 = vadd.f32 %v6357_v45, %v6356_v61  ;;  %v6359_v6 = vpop.f32.mrb[98].mxu1 }
 0x5d9   : > { %v6360_v49 = vpop.f32.mrb[99].mxu1  ;;  %3669 = vmatmul.mubr.bf16.gmra.mrb[156].mxu1 %v3514_v56 }
 0x5da   : > { %v9749_v46 = vadd.f32 %v6360_v49, %v6359_v6 }
 0x5e0   : > { %v6362_v29 = vpop.f32.mrb[100].mxu1 }
 0x5e1   : > { %v6363_v37 = vpop.f32.mrb[101].mxu1 }
 0x5e2   : > { %v9751_v9 = vadd.f32 %v6363_v37, %v6362_v29  ;;  %v6365_v28 = vpop.f32.mrb[102].mxu1 }
 0x5e3   : > { %v6366_v35 = vpop.f32.mrb[103].mxu1 }
 0x5e4   : > { %v9753_v40 = vadd.f32 %v6366_v35, %v6365_v28 }
 0x5e8   : > { %v6368_v53 = vpop.f32.mrb[104].mxu1 }
 0x5e9   : > { %v6369_v16 = vpop.f32.mrb[105].mxu1 }
 0x5ea   : > { %v9755_v23 = vadd.f32 %v6369_v16, %v6368_v53  ;;  %v6371_v13 = vpop.f32.mrb[106].mxu1 }
 0x5eb   : > { %v6372_v32 = vpop.f32.mrb[107].mxu1 }
 0x5ec   : > { %v9757_v5 = vadd.f32 %v6372_v32, %v6371_v13 }
 0x5f0   : > { %v6374_v30 = vpop.f32.mrb[108].mxu1 }
 0x5f1   : > { %v6375_v39 = vpop.f32.mrb[109].mxu1 }
 0x5f2   : > { %v9759_v54 = vadd.f32 %v6375_v39, %v6374_v30  ;;  %v6377_v17 = vpop.f32.mrb[110].mxu1 }
 0x5f3   : > { %v6378_v63 = vpop.f32.mrb[111].mxu1 }
 0x5f4   : > { %v9761_v52 = vadd.f32 %v6378_v63, %v6377_v17 }
 0x5f8   : > { %v6380_v36 = vpop.f32.mrb[112].mxu1 }
 0x5f9   : > { %v6381_v1 = vpop.f32.mrb[113].mxu1 }
 0x5fa   : > { %v9763_v62 = vadd.f32 %v6381_v1, %v6380_v36  ;;  %v6383_v19 = vpop.f32.mrb[114].mxu1 }
 0x5fb   : > { %v6384_v59 = vpop.f32.mrb[115].mxu1 }
 0x5fc   : > { %v9765_v25 = vadd.f32 %v6384_v59, %v6383_v19 }
 0x600   : > { %v6386_v2 = vpop.f32.mrb[116].mxu1 }
 0x601   : > { %v6387_v34 = vpop.f32.mrb[117].mxu1 }
 0x602   : > { %v9767_v4 = vadd.f32 %v6387_v34, %v6386_v2  ;;  %v6389_v55 = vpop.f32.mrb[118].mxu1 }
 0x603   : > { %v6390_v41 = vpop.f32.mrb[119].mxu1 }
 0x604   : > { %v9769_v27 = vadd.f32 %v6390_v41, %v6389_v55 }
 0x632   : > { %v6392_v8 = vpop.f32.mrb[120].mxu1 }
 0x633   : > { %v6393_v3 = vpop.f32.mrb[121].mxu1 }
 0x634   : > { %v9771_v60 = vadd.f32 %v6393_v3, %v6392_v8  ;;  %v6395_v47 = vpop.f32.mrb[122].mxu1 }
 0x635   : > { %v6396_v42 = vpop.f32.mrb[123].mxu1 }
 0x636   : > { %v9773_v58 = vadd.f32 %v6396_v42, %v6395_v47 }
 0x63a   : > { %v6398_v21 = vpop.f32.mrb[124].mxu1 }
 0x63b   : > { %v6399_v15 = vpop.f32.mrb[125].mxu1 }
 0x63c   : > { %v9775_v11 = vadd.f32 %v6399_v15, %v6398_v21  ;;  %v6401_v20 = vpop.f32.mrb[126].mxu1 }
 0x63d   : > { %v6402_v48 = vpop.f32.mrb[127].mxu1 }
 0x63e   : > { %v9777_v33 = vadd.f32 %v6402_v48, %v6401_v20 }
 0x656   : > { %v6452_v18 = vpop.f32.mrb[128].mxu1 }
 0x657   : > { %v6453_v24 = vpop.f32.mrb[129].mxu1 }
 0x658   : > { %v6454_v22 = vadd.f32 %v6453_v24, %v6452_v18  ;;  %v6455_v43 = vpop.f32.mrb[130].mxu1 }
 0x659   : > { %v6456_v10 = vpop.f32.mrb[131].mxu1 }
 0x65a   : > { %v6457_v50 = vadd.f32 %v6456_v10, %v6455_v43 }
 0x65c   : > { %v7081_v51 = vpack.i.bf16 %v6457_v50, %v6454_v22 }
 0x65e   : > { %v6458_v26 = vpop.f32.mrb[132].mxu1  ;;  %7082 = vrot.lane.b32.xlu1 %v7081_v51, %s8090_s23 }
 0x65f   : > { %v6459_v0 = vpop.f32.mrb[133].mxu1 }
 0x660   : > { %v6460_v31 = vadd.f32 %v6459_v0, %v6458_v26  ;;  %v6461_v57 = vpop.f32.mrb[134].mxu1 }
 0x661   : > { %v6462_v7 = vpop.f32.mrb[135].mxu1 }
 0x662   : > { %v6463_v14 = vadd.f32 %v6462_v7, %v6461_v57 }
 0x664   : > { %v7086_v12 = vpack.i.bf16 %v6463_v14, %v6460_v31 }
 0x666   : > { %v6464_v61 = vpop.f32.mrb[136].mxu1  ;;  %7087 = vrot.lane.b32.xlu0 %v7086_v12, %s8090_s23 }
 0x667   : > { %v6465_v44 = vpop.f32.mrb[137].mxu1 }
 0x668   : > { %v6466_v45 = vadd.f32 %v6465_v44, %v6464_v61  ;;  %v6467_v6 = vpop.f32.mrb[138].mxu1 }
 0x669   : > { %v6468_v56 = vpop.f32.mrb[139].mxu1 }
 0x66a   : > { %v6469_v49 = vadd.f32 %v6468_v56, %v6467_v6 }
 0x66c   : > { %v7091_v29 = vpack.i.bf16 %v6469_v49, %v6466_v45 }
 0x66e   : > { %v6470_v37 = vpop.f32.mrb[140].mxu1  ;;  %7092 = vrot.lane.b32.xlu1 %v7091_v29, %s8090_s23 }
 0x66f   : > { %v6471_v28 = vpop.f32.mrb[141].mxu1 }
 0x670   : > { %v6472_v35 = vadd.f32 %v6471_v28, %v6470_v37  ;;  %v6473_v53 = vpop.f32.mrb[142].mxu1 }
 0x671   : > { %v6474_v16 = vpop.f32.mrb[143].mxu1 }
 0x672   : > { %v6475_v13 = vadd.f32 %v6474_v16, %v6473_v53 }
 0x674   : > { %v7096_v32 = vpack.i.bf16 %v6475_v13, %v6472_v35 }
 0x676   : > { %7097 = vrot.lane.b32.xlu1 %v7096_v32, %s8090_s23 }
 0x694   : > { %v6476_v30 = vpop.f32.mrb[144].mxu1 }
 0x695   : > { %v6477_v39 = vpop.f32.mrb[145].mxu1 }
 0x696   : > { %v6478_v17 = vadd.f32 %v6477_v39, %v6476_v30  ;;  %v6479_v63 = vpop.f32.mrb[146].mxu1 }
 0x697   : > { %v6480_v36 = vpop.f32.mrb[147].mxu1 }
 0x698   : > { %v6481_v1 = vadd.f32 %v6480_v36, %v6479_v63 }
 0x69a   : > { %v7101_v19 = vpack.i.bf16 %v6481_v1, %v6478_v17 }
 0x69c   : > { %7102 = vrot.lane.b32.xlu0 %v7101_v19, %s8090_s23  ;;  %v6482_v59 = vpop.f32.mrb[148].mxu1 }
 0x69d   : > { %v6483_v2 = vpop.f32.mrb[149].mxu1 }
 0x69e   : > { %v6484_v34 = vadd.f32 %v6483_v2, %v6482_v59  ;;  %v6485_v55 = vpop.f32.mrb[150].mxu1 }
 0x69f   : > { %v6486_v41 = vpop.f32.mrb[151].mxu1 }
 0x6a0   : > { %v6487_v8 = vadd.f32 %v6486_v41, %v6485_v55 }
 0x6a2   : > { %v7106_v3 = vpack.i.bf16 %v6487_v8, %v6484_v34 }
 0x6a4   : > { %7107 = vrot.lane.b32.xlu1 %v7106_v3, %s8090_s23  ;;  %v6488_v47 = vpop.f32.mrb[152].mxu1 }
 0x6a5   : > { %v6489_v42 = vpop.f32.mrb[153].mxu1 }
 0x6a6   : > { %v6490_v21 = vadd.f32 %v6489_v42, %v6488_v47  ;;  %v6491_v15 = vpop.f32.mrb[154].mxu1 }
 0x6a7   : > { %v6492_v20 = vpop.f32.mrb[155].mxu1 }
 0x6a8   : > { %v6493_v48 = vadd.f32 %v6492_v20, %v6491_v15  ;;  %v7605_v15 = vld [vmem:[#allocation11 + $0x100] ss:$16 sps:$4 sm:$0xff] (!%p6165_p5)   ;;  %v7607_v20 = vld [vmem:[#allocation11 + $0x124] ss:$16 sps:$4 sm:$0xff] (!%p6165_p5)  }
 0x6aa   : > { %v7111_v18 = vpack.i.bf16 %v6493_v48, %v6490_v21  ;;  %v8091_v21 = vmov (!%p6165_p5), 0   ;;  %v7611_v48 = vld [vmem:[#allocation11 + $0x120] ss:$16 sps:$4 sm:$0xff] (!%p6165_p5)  }
 0x6ab   : > { %4054 = vmatprep.mubr.bf16.mxu0 (!%p6165_p5), %v8091_v21  ;;  %4167 = vmatprep.mubr.bf16.mxu1 (!%p6165_p5), %v8091_v21 }
 0x6ac   : > { %7112 = vrot.lane.b32.xlu0 %v7111_v18, %s8090_s23  ;;  %v6494_v24 = vpop.f32.mrb[156].mxu1  ;;  %v7612_v18 = vld [vmem:[#allocation11 + $0x128] ss:$16 sps:$4 sm:$0xff] (!%p6165_p5)  }
 0x6ad   : > { %v6495_v22 = vpop.f32.mrb[157].mxu1 }
 0x6ae   : > { %v6496_v43 = vadd.f32 %v6495_v22, %v6494_v24  ;;  %v6497_v10 = vpop.f32.mrb[158].mxu1  ;;  %v7613_v24 = vld [vmem:[#allocation11 + $0x144] ss:$16 sps:$4 sm:$0xff] (!%p6165_p5)   ;;  %v7615_v22 = vld [vmem:[#allocation11 + $0x14c] ss:$16 sps:$4 sm:$0xff] (!%p6165_p5)  }
 0x6af   : > { %v6498_v50 = vpop.f32.mrb[159].mxu1 }
 0x6b0   : > { %v6499_v51 = vadd.f32 %v6498_v50, %v6497_v10  ;;  %v7618_v10 = vld [vmem:[#allocation11 + $0x148] ss:$16 sps:$4 sm:$0xff] (!%p6165_p5)   ;;  %v7619_v50 = vld [vmem:[#allocation11 + $0x164] ss:$16 sps:$4 sm:$0xff] (!%p6165_p5)  }
 0x6b2   : > { %v7116_v26 = vpack.i.bf16 %v6499_v51, %v6496_v43  ;;  %v7617_v43 = vld [vmem:[#allocation11 + $0x140] ss:$16 sps:$4 sm:$0xff] (!%p6165_p5)   ;;  %v7621_v51 = vld [vmem:[#allocation11 + $0x16c] ss:$16 sps:$4 sm:$0xff] (!%p6165_p5)  }
 0x6b4   : > { %7117 = vrot.lane.b32.xlu1 %v7116_v26, %s8090_s23  ;;  %v7623_v26 = vld [vmem:[#allocation11 + $0x160] ss:$16 sps:$4 sm:$0xff] (!%p6165_p5)  }
 0x6d0   : > { %v7083_v0 = vpop.permute.xlu1 %7082 }
 0x6d1   : > { %v7085_v31 = vunpack.i.h.bf16 %v7083_v0  ;;  %v7084_v57 = vunpack.i.l.bf16 %v7083_v0  ;;  %v7624_v0 = vld [vmem:[#allocation11 + $0x168] ss:$16 sps:$4 sm:$0xff] (!%p6165_p5)  }
 0x6d3   : > { %v3742_v7 = vsel %vm2464_vm0, %v9749_v46, %v7085_v31  ;;  %v3741_v14 = vsel %vm2464_vm0, %v9747_v38, %v7084_v57  ;;  %v7625_v31 = vld [vmem:[#allocation11 + $0x184] ss:$16 sps:$4 sm:$0xff] (!%p6165_p5)   ;;  %v7627_v57 = vld [vmem:[#allocation11 + $0x18c] ss:$16 sps:$4 sm:$0xff] (!%p6165_p5)  }
 0x6d4   : > { %v3757_v12 = vpack.c.bf16 %v3742_v7, %v3741_v14  ;;  %v7629_v7 = vld [vmem:[#allocation11 + $0x180] ss:$16 sps:$4 sm:$0xff] (!%p6165_p5)   ;;  %v7630_v14 = vld [vmem:[#allocation11 + $0x188] ss:$16 sps:$4 sm:$0xff] (!%p6165_p5)  }
 0x6d6   : > { %3768 = vst [vmem:[%s9792_s5] sm:$0xff] %v3757_v12  ;;  %v7631_v12 = vld [vmem:[#allocation11 + $0x1a4] ss:$16 sps:$4 sm:$0xff] (!%p6165_p5)  }
 0x6d8   : > { %v7088_v61 = vpop.permute.xlu0 %7087 }
 0x6d9   : > { %v7090_v44 = vunpack.i.h.bf16 %v7088_v61  ;;  %v7089_v45 = vunpack.i.l.bf16 %v7088_v61  ;;  %v7633_v61 = vld [vmem:[#allocation11 + $0x1ac] ss:$16 sps:$4 sm:$0xff] (!%p6165_p5)  }
 0x6db   : > { %v3744_v6 = vsel %vm2464_vm0, %v9753_v40, %v7090_v44  ;;  %v3743_v56 = vsel %vm2464_vm0, %v9751_v9, %v7089_v45  ;;  %v7635_v44 = vld [vmem:[#allocation11 + $0x1a0] ss:$16 sps:$4 sm:$0xff] (!%p6165_p5)   ;;  %v7636_v45 = vld [vmem:[#allocation11 + $0x1a8] ss:$16 sps:$4 sm:$0xff] (!%p6165_p5)  }
 0x6dc   : > { %v3758_v46 = vpack.c.bf16 %v3744_v6, %v3743_v56  ;;  %v7637_v6 = vld [vmem:[#allocation11 + $0x1c4] ss:$16 sps:$4 sm:$0xff] (!%p6165_p5)   ;;  %v7639_v56 = vld [vmem:[#allocation11 + $0x1cc] ss:$16 sps:$4 sm:$0xff] (!%p6165_p5)  }
 0x6de   : > { %3769 = vst [vmem:[%s9792_s5 + $0x8] sm:$0xff] %v3758_v46  ;;  %v7641_v46 = vld [vmem:[#allocation11 + $0x1c0] ss:$16 sps:$4 sm:$0xff] (!%p6165_p5)  }
 0x6e0   : > { %v7093_v38 = vpop.permute.xlu1 %7092 }
 0x6e1   : > { %v7095_v49 = vunpack.i.h.bf16 %v7093_v38  ;;  %v7094_v29 = vunpack.i.l.bf16 %v7093_v38  ;;  %v7642_v38 = vld [vmem:[#allocation11 + $0x1c8] ss:$16 sps:$4 sm:$0xff] (!%p6165_p5)  }
 0x6e3   : > { %v3746_v37 = vsel %vm2464_vm0, %v9757_v5, %v7095_v49  ;;  %v3745_v28 = vsel %vm2464_vm0, %v9755_v23, %v7094_v29  ;;  %v7643_v49 = vld [vmem:[#allocation11 + $0x1e4] ss:$16 sps:$4 sm:$0xff] (!%p6165_p5)   ;;  %v7645_v29 = vld [vmem:[#allocation11 + $0x1ec] ss:$16 sps:$4 sm:$0xff] (!%p6165_p5)  }
 0x6e4   : > { %v3759_v35 = vpack.c.bf16 %v3746_v37, %v3745_v28  ;;  %v7647_v37 = vld [vmem:[#allocation11 + $0x1e0] ss:$16 sps:$4 sm:$0xff] (!%p6165_p5)   ;;  %v7648_v28 = vld [vmem:[#allocation11 + $0x1e8] ss:$16 sps:$4 sm:$0xff] (!%p6165_p5)  }
 0x6e6   : > { %3770 = vst [vmem:[%s9792_s5 + $0x10] sm:$0xff] %v3759_v35  ;;  %v7651_v35 = vld [vmem:[#allocation11 + $0x4] ss:$16 sps:$4 sm:$0xff] (!%p6165_p5)  }
 0x6e8   : > { %v7098_v53 = vpop.permute.xlu1 %7097 }
 0x6e9   : > { %v7100_v40 = vunpack.i.h.bf16 %v7098_v53  ;;  %v7099_v16 = vunpack.i.l.bf16 %v7098_v53  ;;  %v7654_v53 = vld [vmem:[#allocation11 + $0xc] ss:$16 sps:$4 sm:$0xff] (!%p6165_p5)  }
 0x6eb   : > { %v3748_v9 = vsel %vm2464_vm0, %v9761_v52, %v7100_v40  ;;  %v3747_v13 = vsel %vm2464_vm0, %v9759_v54, %v7099_v16  ;;  %v7649_v16 = vld [vmem:[#allocation11] ss:$16 sps:$4 sm:$0xff] (!%p6165_p5)  }
 0x6ec   : > { %v3760_v32 = vpack.c.bf16 %v3748_v9, %v3747_v13  ;;  %v7652_v9 = vld [vmem:[#allocation11 + $0x8] ss:$16 sps:$4 sm:$0xff] (!%p6165_p5)   ;;  %v7657_v13 = vld [vmem:[#allocation11 + $0x24] ss:$16 sps:$4 sm:$0xff] (!%p6165_p5)  }
 0x6ee   : > { %3771 = vst [vmem:[%s9792_s5 + $0x18] sm:$0xff] %v3760_v32  ;;  %v7660_v32 = vld [vmem:[#allocation11 + $0x2c] ss:$16 sps:$4 sm:$0xff] (!%p6165_p5)  }
 0x70e   : > { %v7103_v30 = vpop.permute.xlu0 %7102 }
 0x70f   : > { %v7105_v5 = vunpack.i.h.bf16 %v7103_v30  ;;  %v7104_v39 = vunpack.i.l.bf16 %v7103_v30  ;;  %v7655_v30 = vld [vmem:[#allocation11 + $0x20] ss:$16 sps:$4 sm:$0xff] (!%p6165_p5)  }
 0x711   : > { %v3750_v23 = vsel %vm2464_vm0, %v9765_v25, %v7105_v5  ;;  %v3749_v17 = vsel %vm2464_vm0, %v9763_v62, %v7104_v39  ;;  %v7658_v5 = vld [vmem:[#allocation11 + $0x28] ss:$16 sps:$4 sm:$0xff] (!%p6165_p5)   ;;  %v7663_v39 = vld [vmem:[#allocation11 + $0x44] ss:$16 sps:$4 sm:$0xff] (!%p6165_p5)  }
 0x712   : > { %v3761_v63 = vpack.c.bf16 %v3750_v23, %v3749_v17  ;;  %v7666_v23 = vld [vmem:[#allocation11 + $0x4c] ss:$16 sps:$4 sm:$0xff] (!%p6165_p5)  }
 0x714   : > { %3772 = vst [vmem:[%s9792_s5 + $0x20] sm:$0xff] %v3761_v63  ;;  %v7661_v63 = vld [vmem:[#allocation11 + $0x40] ss:$16 sps:$4 sm:$0xff] (!%p6165_p5)  }
 0x716   : > { %v7108_v36 = vpop.permute.xlu1 %7107 }
 0x717   : > { %v7110_v52 = vunpack.i.h.bf16 %v7108_v36  ;;  %v7109_v1 = vunpack.i.l.bf16 %v7108_v36  ;;  %v7664_v36 = vld [vmem:[#allocation11 + $0x48] ss:$16 sps:$4 sm:$0xff] (!%p6165_p5)  }
 0x719   : > { %v3752_v54 = vsel %vm2464_vm0, %v9769_v27, %v7110_v52  ;;  %v3751_v19 = vsel %vm2464_vm0, %v9767_v4, %v7109_v1  ;;  %v7669_v52 = vld [vmem:[#allocation11 + $0x64] ss:$16 sps:$4 sm:$0xff] (!%p6165_p5)   ;;  %v7672_v1 = vld [vmem:[#allocation11 + $0x6c] ss:$16 sps:$4 sm:$0xff] (!%p6165_p5)  }
 0x71a   : > { %v3762_v59 = vpack.c.bf16 %v3752_v54, %v3751_v19  ;;  %v7667_v54 = vld [vmem:[#allocation11 + $0x60] ss:$16 sps:$4 sm:$0xff] (!%p6165_p5)   ;;  %v7670_v19 = vld [vmem:[#allocation11 + $0x68] ss:$16 sps:$4 sm:$0xff] (!%p6165_p5)  }
 0x71c   : > { %3773 = vst [vmem:[%s9792_s5 + $0x28] sm:$0xff] %v3762_v59  ;;  %v7675_v59 = vld [vmem:[#allocation11 + $0x84] ss:$16 sps:$4 sm:$0xff] (!%p6165_p5)  }
 0x71e   : > { %v7113_v25 = vpop.permute.xlu0 %7112 }
 0x71f   : > { %v7115_v2 = vunpack.i.h.bf16 %v7113_v25  ;;  %v7114_v34 = vunpack.i.l.bf16 %v7113_v25  ;;  %v7678_v25 = vld [vmem:[#allocation11 + $0x8c] ss:$16 sps:$4 sm:$0xff] (!%p6165_p5)  }
 0x721   : > { %v3754_v62 = vsel %vm2464_vm0, %v9773_v58, %v7115_v2  ;;  %v3753_v55 = vsel %vm2464_vm0, %v9771_v60, %v7114_v34  ;;  %v7601_v58 = vld [vmem:[#allocation11 + $0x104] ss:$16 sps:$4 sm:$0xff] (!%p6165_p5)   ;;  %v7603_v60 = vld [vmem:[#allocation11 + $0x10c] ss:$16 sps:$4 sm:$0xff] (!%p6165_p5)   ;;  %v7673_v34 = vld [vmem:[#allocation11 + $0x80] ss:$16 sps:$4 sm:$0xff] (!%p6165_p5)  }
 0x722   : > { %v3763_v41 = vpack.c.bf16 %v3754_v62, %v3753_v55  ;;  %4022 = vmatprep.subr.bf16.mxu0 (!%p6165_p5), %v7601_v58  ;;  %4135 = vmatprep.subr.bf16.mxu1 (!%p6165_p5), %v7603_v60  ;;  %v7676_v62 = vld [vmem:[#allocation11 + $0x88] ss:$16 sps:$4 sm:$0xff] (!%p6165_p5)   ;;  %v7681_v55 = vld [vmem:[#allocation11 + $0xa4] ss:$16 sps:$4 sm:$0xff] (!%p6165_p5)  }
 0x723   : > { %4023 = vmatpush1.bf16.msra.mxu0 (!%p6165_p5), %v7605_v15  ;;  %v7688_v58 = vld [vmem:[#allocation11 + $0xc8] ss:$16 sps:$4 sm:$0xff] (!%p6165_p5)   ;;  %v7693_v60 = vld [vmem:[#allocation11 + $0xe4] ss:$16 sps:$4 sm:$0xff] (!%p6165_p5)   ;;  %v7696_v15 = vld [vmem:[#allocation11 + $0xec] ss:$16 sps:$4 sm:$0xff] (!%p6165_p5)  }
 0x724   : > { %3774 = vst [vmem:[%s9792_s5 + $0x30] sm:$0xff] %v3763_v41  ;;  %4024 = vmatprep.subr.bf16.mxu0 (!%p6165_p5), %v7607_v20  ;;  %v7684_v41 = vld [vmem:[#allocation11 + $0xac] ss:$16 sps:$4 sm:$0xff] (!%p6165_p5)   ;;  %v7694_v20 = vld [vmem:[#allocation11 + $0xe8] ss:$16 sps:$4 sm:$0xff] (!%p6165_p5)  }
 0x726   : > { %v7118_v8 = vpop.permute.xlu1 %7117  ;;  %3779 = sbr.rel (%p6165_p5) target bundleno = 2331 (0x91b), region = 76 }
 0x727   : > { %v7120_v27 = vunpack.i.h.bf16 %v7118_v8  ;;  %v7119_v3 = vunpack.i.l.bf16 %v7118_v8  ;;  %4025 = vmatpush1.bf16.msra.mxu0 (!%p6165_p5), %v7611_v48  ;;  %v7679_v8 = vld [vmem:[#allocation11 + $0xa0] ss:$16 sps:$4 sm:$0xff] (!%p6165_p5)   ;;  %v7702_v48 = vld [vmem:[#allocation11 + $0x20c] ss:$16 sps:$4 sm:$0xff] (!%p6165_p5)  }
 0x728   : > { %4026 = vmatprep.subr.bf16.mxu0 (!%p6165_p5), %v7613_v24 }
 0x729   : > { %v3756_v4 = vsel %vm2464_vm0, %v9777_v33, %v7120_v27  ;;  %v3755_v47 = vsel %vm2464_vm0, %v9775_v11, %v7119_v3  ;;  %v7606_v33 = vld [vmem:[#allocation11 + $0x108] ss:$16 sps:$4 sm:$0xff] (!%p6165_p5)   ;;  %v7609_v11 = vld [vmem:[#allocation11 + $0x12c] ss:$16 sps:$4 sm:$0xff] (!%p6165_p5)   ;;  %v7687_v3 = vld [vmem:[#allocation11 + $0xc4] ss:$16 sps:$4 sm:$0xff] (!%p6165_p5)  }
 0x72a   : > { %v3764_v42 = vpack.c.bf16 %v3756_v4, %v3755_v47  ;;  %4136 = vmatpush1.bf16.msra.mxu1 (!%p6165_p5), %v7606_v33  ;;  %v7682_v27 = vld [vmem:[#allocation11 + $0xa8] ss:$16 sps:$4 sm:$0xff] (!%p6165_p5)   ;;  %v7690_v4 = vld [vmem:[#allocation11 + $0xcc] ss:$16 sps:$4 sm:$0xff] (!%p6165_p5)   ;;  %v7691_v33 = vld [vmem:[#allocation11 + $0xe0] ss:$16 sps:$4 sm:$0xff] (!%p6165_p5)  }
 0x72b   : > { %4137 = vmatprep.subr.bf16.mxu1 (!%p6165_p5), %v7609_v11  ;;  %4027 = vmatpush1.bf16.msra.mxu0 (!%p6165_p5), %v7617_v43  ;;  %v7699_v11 = vld [vmem:[#allocation11 + $0x204] ss:$16 sps:$4 sm:$0xff] (!%p6165_p5)  }
 0x72c   : > { %3775 = vst [vmem:[%s9792_s5 + $0x38] sm:$0xff] %v3764_v42  ;;  %4028 = vmatprep.subr.bf16.mxu0 (!%p6165_p5), %v7619_v50  ;;  %v7685_v42 = vld [vmem:[#allocation11 + $0xc0] ss:$16 sps:$4 sm:$0xff] (!%p6165_p5)  }
 0x72d   : > { %v7697_v50 = vld [vmem:[#allocation11 + $0x200] ss:$16 sps:$4 sm:$0xff]  }
 0x72e   : > { %4138 = vmatpush1.bf16.msra.mxu1 %v7612_v18 }
 0x72f   : > { %4139 = vmatprep.subr.bf16.mxu1 %v7615_v22  ;;  %4029 = vmatpush1.bf16.msra.mxu0 %v7623_v26  ;;  %v7705_v26 = vld [vmem:[#allocation11 + $0x224] ss:$16 sps:$4 sm:$0xff]  }
 0x730   : > { %4030 = vmatprep.subr.bf16.mxu0 %v7625_v31  ;;  %v7703_v31 = vld [vmem:[#allocation11 + $0x220] ss:$16 sps:$4 sm:$0xff]  }
 0x732   : > { %4140 = vmatpush1.bf16.msra.mxu1 %v7618_v10 }
 0x733   : > { %4141 = vmatprep.subr.bf16.mxu1 %v7621_v51  ;;  %4031 = vmatpush1.bf16.msra.mxu0 %v7629_v7  ;;  %v3821_v40 = vld [vmem:[#allocation2 + $0x40] sm:$0xff]  ;;  %v3822_v17 = vld [vmem:[#allocation2 + $0x48] sm:$0xff]  ;;  %v3823_v2 = vld [vmem:[#allocation2 + $0x50] sm:$0xff] }
 0x734   : > { %4032 = vmatprep.subr.bf16.mxu0 %v7631_v12  ;;  %v3824_v47 = vld [vmem:[#allocation2 + $0x58] sm:$0xff]  ;;  %v3825_v18 = vld [vmem:[#allocation2 + $0x60] sm:$0xff]  ;;  %v3826_v24 = vld [vmem:[#allocation2 + $0x68] sm:$0xff] }
 0x735   : > { %v3827_v22 = vld [vmem:[#allocation2 + $0x70] sm:$0xff]  ;;  %v3828_v43 = vld [vmem:[#allocation2 + $0x78] sm:$0xff]  ;;  %v3780_v10 = vld [vmem:[#allocation2] sm:$0xff] }
 0x736   : > { %4142 = vmatpush1.bf16.msra.mxu1 %v7624_v0  ;;  %v7700_v51 = vld [vmem:[#allocation11 + $0x208] ss:$16 sps:$4 sm:$0xff]   ;;  %v7708_v0 = vld [vmem:[#allocation11 + $0x22c] ss:$16 sps:$4 sm:$0xff]   ;;  %v7711_v7 = vld [vmem:[#allocation11 + $0x244] ss:$16 sps:$4 sm:$0xff]  }
 0x737   : > { %4143 = vmatprep.subr.bf16.mxu1 %v7627_v57  ;;  %4033 = vmatpush1.bf16.msra.mxu0 %v7635_v44  ;;  %v7706_v57 = vld [vmem:[#allocation11 + $0x228] ss:$16 sps:$4 sm:$0xff]  }
 0x738   : > { %4034 = vmatprep.subr.bf16.mxu0 %v7637_v6  ;;  %v3781_v12 = vld [vmem:[#allocation2 + $0x8] sm:$0xff] }
 0x739   : > { %v7712_v44 = vld [vmem:[#allocation11 + $0x248] ss:$16 sps:$4 sm:$0xff]   ;;  %v7720_v6 = vld [vmem:[#allocation11 + $0x26c] ss:$16 sps:$4 sm:$0xff]  }
 0x73a   : > { %4144 = vmatpush1.bf16.msra.mxu1 %v7630_v14  ;;  %v7714_v14 = vld [vmem:[#allocation11 + $0x24c] ss:$16 sps:$4 sm:$0xff]  }
 0x73b   : > { %4145 = vmatprep.subr.bf16.mxu1 %v7633_v61  ;;  %4035 = vmatpush1.bf16.msra.mxu0 %v7641_v46  ;;  %v7709_v61 = vld [vmem:[#allocation11 + $0x240] ss:$16 sps:$4 sm:$0xff]   ;;  %v7718_v46 = vld [vmem:[#allocation11 + $0x268] ss:$16 sps:$4 sm:$0xff]  }
 0x73c   : > { %4036 = vmatprep.subr.bf16.mxu0 %v7643_v49  ;;  %v7726_v49 = vld [vmem:[#allocation11 + $0x28c] ss:$16 sps:$4 sm:$0xff]  }
 0x73e   : > { %4146 = vmatpush1.bf16.msra.mxu1 %v7636_v45  ;;  %v7717_v45 = vld [vmem:[#allocation11 + $0x264] ss:$16 sps:$4 sm:$0xff]  }
 0x73f   : > { %4147 = vmatprep.subr.bf16.mxu1 %v7639_v56  ;;  %4037 = vmatpush1.bf16.msra.mxu0 %v7647_v37  ;;  %v7715_v56 = vld [vmem:[#allocation11 + $0x260] ss:$16 sps:$4 sm:$0xff]  }
 0x740   : > { %4408 = vmatprep.subr.bf16.mxu0 %v7651_v35  ;;  %v7721_v37 = vld [vmem:[#allocation11 + $0x280] ss:$16 sps:$4 sm:$0xff]   ;;  %v7729_v35 = vld [vmem:[#allocation11 + $0x2a4] ss:$16 sps:$4 sm:$0xff]  }
 0x742   : > { %4148 = vmatpush1.bf16.msra.mxu1 %v7642_v38  ;;  %4055 = vmatmul.mubr.bf16.vlgmr.msra.gmra.mrb[0].mxu0 %v3821_v40  ;;  %v7723_v38 = vld [vmem:[#allocation11 + $0x284] ss:$16 sps:$4 sm:$0xff]  }
 0x743   : > { %4149 = vmatprep.subr.bf16.mxu1 %v7645_v29  ;;  %4409 = vmatpush1.bf16.msra.mxu0 %v7649_v16  ;;  %v3782_v29 = vld [vmem:[#allocation2 + $0x10] sm:$0xff]  ;;  %v7730_v16 = vld [vmem:[#allocation11 + $0x2a8] ss:$16 sps:$4 sm:$0xff]  }
 0x744   : > { %4064 = vmatprep.mubr.bf16.mxu0 %v8091_v21  ;;  %4410 = vmatprep.subr.bf16.mxu0 %v7657_v13  ;;  %v7738_v13 = vld [vmem:[#allocation11 + $0x2cc] ss:$16 sps:$4 sm:$0xff]  }
 0x746   : > { %4150 = vmatpush1.bf16.msra.mxu1 %v7648_v28  ;;  %v7724_v28 = vld [vmem:[#allocation11 + $0x288] ss:$16 sps:$4 sm:$0xff]  }
 0x747   : > { %4521 = vmatprep.subr.bf16.mxu1 %v7654_v53  ;;  %4411 = vmatpush1.bf16.msra.mxu0 %v7655_v30  ;;  %v7732_v53 = vld [vmem:[#allocation11 + $0x2ac] ss:$16 sps:$4 sm:$0xff]   ;;  %v7733_v30 = vld [vmem:[#allocation11 + $0x2c0] ss:$16 sps:$4 sm:$0xff]  }
 0x748   : > { %4412 = vmatprep.subr.bf16.mxu0 %v7663_v39  ;;  %v7741_v39 = vld [vmem:[#allocation11 + $0x2e4] ss:$16 sps:$4 sm:$0xff]  }
 0x749   : > { %4168 = vmatmul.mubr.bf16.vlgmr.msra.gmra.mrb[0].mxu1 %v3821_v40  ;;  %v7727_v40 = vld [vmem:[#allocation11 + $0x2a0] ss:$16 sps:$4 sm:$0xff]  }
 0x74a   : > { %4522 = vmatpush1.bf16.msra.mxu1 %v7652_v9  ;;  %4177 = vmatprep.mubr.bf16.mxu1 %v8091_v21  ;;  %v7735_v9 = vld [vmem:[#allocation11 + $0x2c4] ss:$16 sps:$4 sm:$0xff]  }
 0x74b   : > { %4523 = vmatprep.subr.bf16.mxu1 %v7660_v32  ;;  %4065 = vmatmul.mubr.bf16.gmra.mrb[4].mxu0 %v3822_v17  ;;  %v3783_v32 = vld [vmem:[#allocation2 + $0x18] sm:$0xff] }
 0x74c   : > { %4074 = vmatprep.mubr.bf16.mxu0 %v8091_v21  ;;  %4413 = vmatpush1.bf16.msra.mxu0 %v7661_v63  ;;  %v7742_v63 = vld [vmem:[#allocation11 + $0x2e8] ss:$16 sps:$4 sm:$0xff]  }
 0x74d   : > { %4414 = vmatprep.subr.bf16.mxu0 %v7669_v52  ;;  %v7750_v52 = vld [vmem:[#allocation11 + $0x30c] ss:$16 sps:$4 sm:$0xff]  }
 0x74e   : > { %4524 = vmatpush1.bf16.msra.mxu1 %v7658_v5  ;;  %v7736_v5 = vld [vmem:[#allocation11 + $0x2c8] ss:$16 sps:$4 sm:$0xff]  }
 0x74f   : > { %4525 = vmatprep.subr.bf16.mxu1 %v7666_v23  ;;  %v7744_v23 = vld [vmem:[#allocation11 + $0x2ec] ss:$16 sps:$4 sm:$0xff]  }
 0x750   : > { %4415 = vmatpush1.bf16.msra.mxu0 %v7667_v54  ;;  %v3785_v54 = vld [vmem:[#allocation2 + $0x28] sm:$0xff] }
 0x751   : > { %4178 = vmatmul.mubr.bf16.gmra.mrb[4].mxu1 %v3822_v17  ;;  %4416 = vmatprep.subr.bf16.mxu0 %v7675_v59  ;;  %v7739_v17 = vld [vmem:[#allocation11 + $0x2e0] ss:$16 sps:$4 sm:$0xff]   ;;  %v3787_v59 = vld [vmem:[#allocation2 + $0x38] sm:$0xff] }
 0x752   : > { %4187 = vmatprep.mubr.bf16.mxu1 %v8091_v21  ;;  %4526 = vmatpush1.bf16.msra.mxu1 %v7664_v36  ;;  %v7747_v36 = vld [vmem:[#allocation11 + $0x304] ss:$16 sps:$4 sm:$0xff]  }
 0x753   : > { %4527 = vmatprep.subr.bf16.mxu1 %v7672_v1  ;;  %4075 = vmatmul.mubr.bf16.gmra.mrb[8].mxu0 %v3823_v2  ;;  %v3784_v1 = vld [vmem:[#allocation2 + $0x20] sm:$0xff] }
 0x754   : > { %4084 = vmatprep.mubr.bf16.mxu0 %v8091_v21  ;;  %4417 = vmatpush1.bf16.msra.mxu0 %v7673_v34  ;;  %v7748_v34 = vld [vmem:[#allocation11 + $0x308] ss:$16 sps:$4 sm:$0xff]  }
 0x755   : > { %4418 = vmatprep.subr.bf16.mxu0 %v7681_v55  ;;  %v7756_v55 = vld [vmem:[#allocation11 + $0x32c] ss:$16 sps:$4 sm:$0xff]  }
 0x756   : > { %4528 = vmatpush1.bf16.msra.mxu1 %v7670_v19  ;;  %v3786_v19 = vld [vmem:[#allocation2 + $0x30] sm:$0xff] }
 0x757   : > { %4529 = vmatprep.subr.bf16.mxu1 %v7678_v25  ;;  %v4635_v25 = vld [vmem:[#allocation2 + $0x80] sm:$0xff] }
 0x758   : > { %4419 = vmatpush1.bf16.msra.mxu0 %v7679_v8  ;;  %v7754_v8 = vld [vmem:[#allocation11 + $0x328] ss:$16 sps:$4 sm:$0xff]  }
 0x759   : > { %4188 = vmatmul.mubr.bf16.gmra.mrb[8].mxu1 %v3823_v2  ;;  %4420 = vmatprep.subr.bf16.mxu0 %v7687_v3  ;;  %v7745_v2 = vld [vmem:[#allocation11 + $0x300] ss:$16 sps:$4 sm:$0xff]   ;;  %v7762_v3 = vld [vmem:[#allocation11 + $0x34c] ss:$16 sps:$4 sm:$0xff]  }
 0x75a   : > { %4197 = vmatprep.mubr.bf16.mxu1 %v8091_v21  ;;  %4530 = vmatpush1.bf16.msra.mxu1 %v7676_v62  ;;  %v7753_v62 = vld [vmem:[#allocation11 + $0x324] ss:$16 sps:$4 sm:$0xff]  }
 0x75b   : > { %4531 = vmatprep.subr.bf16.mxu1 %v7684_v41  ;;  %4085 = vmatmul.mubr.bf16.gmra.mrb[12].mxu0 %v3824_v47  ;;  %v7751_v41 = vld [vmem:[#allocation11 + $0x320] ss:$16 sps:$4 sm:$0xff]  }
 0x75c   : > { %4094 = vmatprep.mubr.bf16.mxu0 %v8091_v21  ;;  %4421 = vmatpush1.bf16.msra.mxu0 %v7685_v42  ;;  %v7760_v42 = vld [vmem:[#allocation11 + $0x348] ss:$16 sps:$4 sm:$0xff]  }
 0x75d   : > { %4422 = vmatprep.subr.bf16.mxu0 %v7693_v60  ;;  %v7768_v60 = vld [vmem:[#allocation11 + $0x36c] ss:$16 sps:$4 sm:$0xff]  }
 0x75e   : > { %4532 = vmatpush1.bf16.msra.mxu1 %v7682_v27  ;;  %v7759_v27 = vld [vmem:[#allocation11 + $0x344] ss:$16 sps:$4 sm:$0xff]  }
 0x75f   : > { %4533 = vmatprep.subr.bf16.mxu1 %v7690_v4  ;;  %v4636_v4 = vld [vmem:[#allocation2 + $0x88] sm:$0xff] }
 0x760   : > { %4423 = vmatpush1.bf16.msra.mxu0 %v7691_v33  ;;  %v7766_v33 = vld [vmem:[#allocation11 + $0x368] ss:$16 sps:$4 sm:$0xff]  }
 0x761   : > { %4198 = vmatmul.mubr.bf16.gmra.mrb[12].mxu1 %v3824_v47  ;;  %4836 = vmatprep.subr.bf16.mxu0 %v7699_v11  ;;  %v7757_v47 = vld [vmem:[#allocation11 + $0x340] ss:$16 sps:$4 sm:$0xff]   ;;  %v7774_v11 = vld [vmem:[#allocation11 + $0x38c] ss:$16 sps:$4 sm:$0xff]  }
 0x762   : > { %4207 = vmatprep.mubr.bf16.mxu1 %v8091_v21  ;;  %4534 = vmatpush1.bf16.msra.mxu1 %v7688_v58  ;;  %v7765_v58 = vld [vmem:[#allocation11 + $0x364] ss:$16 sps:$4 sm:$0xff]  }
 0x763   : > { %4535 = vmatprep.subr.bf16.mxu1 %v7696_v15  ;;  %4095 = vmatmul.mubr.bf16.gmra.mrb[16].mxu0 %v3825_v18  ;;  %v7763_v15 = vld [vmem:[#allocation11 + $0x360] ss:$16 sps:$4 sm:$0xff]  }
 0x764   : > { %4104 = vmatprep.mubr.bf16.mxu0 %v8091_v21 }
 0x766   : > { %4536 = vmatpush1.bf16.msra.mxu1 %v7694_v20  ;;  %v7771_v20 = vld [vmem:[#allocation11 + $0x384] ss:$16 sps:$4 sm:$0xff]  }
 0x767   : > { %4949 = vmatprep.subr.bf16.mxu1 %v7702_v48  ;;  %v4637_v48 = vld [vmem:[#allocation2 + $0x90] sm:$0xff] }
 0x769   : > { %4208 = vmatmul.mubr.bf16.gmra.mrb[16].mxu1 %v3825_v18  ;;  %v7769_v18 = vld [vmem:[#allocation11 + $0x380] ss:$16 sps:$4 sm:$0xff]  }
 0x76a   : > { %4217 = vmatprep.mubr.bf16.mxu1 %v8091_v21 }
 0x76b   : > { %4105 = vmatmul.mubr.bf16.gmra.mrb[20].mxu0 %v3826_v24 }
 0x76c   : > { %4114 = vmatprep.mubr.bf16.mxu0 %v8091_v21 }
 0x771   : > { %4218 = vmatmul.mubr.bf16.gmra.mrb[20].mxu1 %v3826_v24  ;;  %v7772_v24 = vld [vmem:[#allocation11 + $0x388] ss:$16 sps:$4 sm:$0xff]  }
 0x772   : > { %4227 = vmatprep.mubr.bf16.mxu1 %v8091_v21 }
 0x773   : > { %4115 = vmatmul.mubr.bf16.gmra.mrb[24].mxu0 %v3827_v22 }
 0x774   : > { %4124 = vmatprep.mubr.bf16.mxu0 %v8091_v21 }
 0x779   : > { %4228 = vmatmul.mubr.bf16.gmra.mrb[24].mxu1 %v3827_v22  ;;  %v7777_v22 = vld [vmem:[#allocation11 + $0x3a4] ss:$16 sps:$4 sm:$0xff]  }
 0x77a   : > { %4237 = vmatprep.mubr.bf16.mxu1 %v8091_v21 }
 0x77b   : > { %4125 = vmatmul.mubr.bf16.gmra.mrb[28].mxu0 %v3828_v43 }
 0x77c   : > { %4440 = vmatprep.mubr.bf16.mxu0 %v8091_v21 }
 0x781   : > { %4238 = vmatmul.mubr.bf16.gmra.mrb[28].mxu1 %v3828_v43  ;;  %v7780_v43 = vld [vmem:[#allocation11 + $0x3ac] ss:$16 sps:$4 sm:$0xff]  }
 0x782   : > { %4553 = vmatprep.mubr.bf16.mxu1 %v8091_v21 }
 0x783   : > { %4441 = vmatmul.mubr.bf16.vlgmr.msra.gmra.mrb[0].mxu0 %v3780_v10 }
 0x784   : > { %4837 = vmatpush1.bf16.msra.mxu0 %v7697_v50  ;;  %4450 = vmatprep.mubr.bf16.mxu0 %v8091_v21  ;;  %v7778_v50 = vld [vmem:[#allocation11 + $0x3a8] ss:$16 sps:$4 sm:$0xff]  }
 0x785   : > { %4838 = vmatprep.subr.bf16.mxu0 %v7705_v26  ;;  %v7786_v26 = vld [vmem:[#allocation11 + $0x3cc] ss:$16 sps:$4 sm:$0xff]  }
 0x788   : > { %4839 = vmatpush1.bf16.msra.mxu0 %v7703_v31  ;;  %v7781_v31 = vld [vmem:[#allocation11 + $0x3c0] ss:$16 sps:$4 sm:$0xff]  }
 0x789   : > { %4554 = vmatmul.mubr.bf16.vlgmr.msra.gmra.mrb[0].mxu1 %v3780_v10  ;;  %4840 = vmatprep.subr.bf16.mxu0 %v7711_v7  ;;  %v7775_v10 = vld [vmem:[#allocation11 + $0x3a0] ss:$16 sps:$4 sm:$0xff]   ;;  %v7789_v7 = vld [vmem:[#allocation11 + $0x3e4] ss:$16 sps:$4 sm:$0xff]  }
 0x78a   : > { %4950 = vmatpush1.bf16.msra.mxu1 %v7700_v51  ;;  %4563 = vmatprep.mubr.bf16.mxu1 %v8091_v21  ;;  %v7783_v51 = vld [vmem:[#allocation11 + $0x3c4] ss:$16 sps:$4 sm:$0xff]  }
 0x78b   : > { %4951 = vmatprep.subr.bf16.mxu1 %v7708_v0  ;;  %4451 = vmatmul.mubr.bf16.gmra.mrb[4].mxu0 %v3781_v12  ;;  %v4638_v0 = vld [vmem:[#allocation2 + $0x98] sm:$0xff] }
 0x78c   : > { %4460 = vmatprep.mubr.bf16.mxu0 %v8091_v21  ;;  %4841 = vmatpush1.bf16.msra.mxu0 %v7709_v61  ;;  %v7790_v61 = vld [vmem:[#allocation11 + $0x3e8] ss:$16 sps:$4 sm:$0xff]  }
 0x78d   : > { %4842 = vmatprep.subr.bf16.mxu0 %v7717_v45  ;;  %v4640_v45 = vld [vmem:[#allocation2 + $0xa8] sm:$0xff] }
 0x78e   : > { %4952 = vmatpush1.bf16.msra.mxu1 %v7706_v57  ;;  %v7784_v57 = vld [vmem:[#allocation11 + $0x3c8] ss:$16 sps:$4 sm:$0xff]  }
 0x78f   : > { %4953 = vmatprep.subr.bf16.mxu1 %v7714_v14  ;;  %v7792_v14 = vld [vmem:[#allocation11 + $0x3ec] ss:$16 sps:$4 sm:$0xff]  }
 0x790   : > { %4843 = vmatpush1.bf16.msra.mxu0 %v7715_v56  ;;  %v4642_v56 = vld [vmem:[#allocation2 + $0xb8] sm:$0xff] }
 0x791   : > { %4564 = vmatmul.mubr.bf16.gmra.mrb[4].mxu1 %v3781_v12  ;;  %4844 = vmatprep.subr.bf16.mxu0 %v7723_v38  ;;  %v7787_v12 = vld [vmem:[#allocation11 + $0x3e0] ss:$16 sps:$4 sm:$0xff]   ;;  %v5128_v38 = vld [vmem:[#allocation2 + $0xc8] sm:$0xff] }
 0x792   : > { %4573 = vmatprep.mubr.bf16.mxu1 %v8091_v21  ;;  %4954 = vmatpush1.bf16.msra.mxu1 %v7712_v44  ;;  %v4639_v44 = vld [vmem:[#allocation2 + $0xa0] sm:$0xff] }
 0x793   : > { %4955 = vmatprep.subr.bf16.mxu1 %v7720_v6  ;;  %4461 = vmatmul.mubr.bf16.gmra.mrb[8].mxu0 %v3782_v29  ;;  %v4641_v6 = vld [vmem:[#allocation2 + $0xb0] sm:$0xff] }
 0x794   : > { %4470 = vmatprep.mubr.bf16.mxu0 %v8091_v21  ;;  %4845 = vmatpush1.bf16.msra.mxu0 %v7721_v37  ;;  %v5131_v37 = vld [vmem:[#allocation2 + $0xe0] sm:$0xff] }
 0x795   : > { %4846 = vmatprep.subr.bf16.mxu0 %v7729_v35  ;;  %v5133_v35 = vld [vmem:[#allocation2 + $0xf0] sm:$0xff] }
 0x796   : > { %4956 = vmatpush1.bf16.msra.mxu1 %v7718_v46  ;;  %v5127_v46 = vld [vmem:[#allocation2 + $0xc0] sm:$0xff] }
 0x797   : > { %4957 = vmatprep.subr.bf16.mxu1 %v7726_v49  ;;  %v5129_v49 = vld [vmem:[#allocation2 + $0xd0] sm:$0xff] }
 0x798   : > { %4847 = vmatpush1.bf16.msra.mxu0 %v7727_v40  ;;  %v5620_v40 = vlaneseq }
 0x799   : > { %4574 = vmatmul.mubr.bf16.gmra.mrb[8].mxu1 %v3782_v29  ;;  %4848 = vmatprep.subr.bf16.mxu0 %v7735_v9  ;;  %v5130_v29 = vld [vmem:[#allocation2 + $0xd8] sm:$0xff] }
 0x79a   : > { %4583 = vmatprep.mubr.bf16.mxu1 %v8091_v21  ;;  %4958 = vmatpush1.bf16.msra.mxu1 %v7724_v28  ;;  %v5132_v28 = vld [vmem:[#allocation2 + $0xe8] sm:$0xff] }
 0x79b   : > { %4959 = vmatprep.subr.bf16.mxu1 %v7732_v53  ;;  %4471 = vmatmul.mubr.bf16.gmra.mrb[12].mxu0 %v3783_v32  ;;  %v5134_v53 = vld [vmem:[#allocation2 + $0xf8] sm:$0xff] }
 0x79c   : > { %4480 = vmatprep.mubr.bf16.mxu0 %v8091_v21  ;;  %4849 = vmatpush1.bf16.msra.mxu0 %v7733_v30 }
 0x79d   : > { %4850 = vmatprep.subr.bf16.mxu0 %v7741_v39 }
 0x79e   : > { %4960 = vmatpush1.bf16.msra.mxu1 %v7730_v16  ;;  %v5621_v16 = vshrl.u32 %v5620_v40, 7 }
 0x79f   : > { %4961 = vmatprep.subr.bf16.mxu1 %v7738_v13 }
 0x7a0   : > { %4851 = vmatpush1.bf16.msra.mxu0 %v7739_v17  ;;  %v5622_v9 = vsub.s32 0, %v5621_v16  ;;  %v5630_v13 = vsub.s32 2, %v5621_v16  ;;  %v5626_v30 = vsub.s32 1, %v5621_v16 }
 0x7a1   : > { %4584 = vmatmul.mubr.bf16.gmra.mrb[12].mxu1 %v3783_v32  ;;  %5328 = vmatprep.subr.bf16.mxu0 %v7747_v36  ;;  %v5618_v32 = vld [vmem:[%s10274_s7] sm:$0xf] }
 0x7a2   : > { %4593 = vmatprep.mubr.bf16.mxu1 %v8091_v21  ;;  %4962 = vmatpush1.bf16.msra.mxu1 %v7736_v5  ;;  %v5634_v5 = vsub.s32 3, %v5621_v16  ;;  %v9901_v39 = vrot.slane %v5618_v32, %v5622_v9 }
 0x7a3   : > { %4963 = vmatprep.subr.bf16.mxu1 %v7744_v23  ;;  %4481 = vmatmul.mubr.bf16.gmra.mrb[16].mxu0 %v3784_v1  ;;  %v9903_v23 = vrot.slane %v5618_v32, %v5630_v13 }
 0x7a4   : > { %4490 = vmatprep.mubr.bf16.mxu0 %v8091_v21  ;;  %v9907_v17 = vrot.slane %v5618_v32, %v5634_v5 }
 0x7a6   : > { %4964 = vmatpush1.bf16.msra.mxu1 %v7742_v63 }
 0x7a7   : > { %5441 = vmatprep.subr.bf16.mxu1 %v7750_v52 }
 0x7a9   : > { %4594 = vmatmul.mubr.bf16.gmra.mrb[16].mxu1 %v3784_v1 }
 0x7aa   : > { %4603 = vmatprep.mubr.bf16.mxu1 %v8091_v21 }
 0x7ab   : > { %4491 = vmatmul.mubr.bf16.gmra.mrb[20].mxu0 %v3785_v54 }
 0x7ac   : > { %4500 = vmatprep.mubr.bf16.mxu0 %v8091_v21 }
 0x7b1   : > { %4604 = vmatmul.mubr.bf16.gmra.mrb[20].mxu1 %v3785_v54 }
 0x7b2   : > { %4613 = vmatprep.mubr.bf16.mxu1 %v8091_v21 }
 0x7b3   : > { %4501 = vmatmul.mubr.bf16.gmra.mrb[24].mxu0 %v3786_v19 }
 0x7b4   : > { %4510 = vmatprep.mubr.bf16.mxu0 %v8091_v21 }
 0x7b9   : > { %4614 = vmatmul.mubr.bf16.gmra.mrb[24].mxu1 %v3786_v19 }
 0x7ba   : > { %4623 = vmatprep.mubr.bf16.mxu1 %v8091_v21 }
 0x7bb   : > { %4511 = vmatmul.mubr.bf16.gmra.mrb[28].mxu0 %v3787_v59 }
 0x7bc   : > { %4868 = vmatprep.mubr.bf16.mxu0 %v8091_v21 }
 0x7c1   : > { %4624 = vmatmul.mubr.bf16.gmra.mrb[28].mxu1 %v3787_v59 }
 0x7c2   : > { %4981 = vmatprep.mubr.bf16.mxu1 %v8091_v21 }
 0x7c3   : > { %4869 = vmatmul.mubr.bf16.vlgmr.msra.gmra.mrb[0].mxu0 %v4635_v25 }
 0x7c4   : > { %5329 = vmatpush1.bf16.msra.mxu0 %v7745_v2  ;;  %4878 = vmatprep.mubr.bf16.mxu0 %v8091_v21 }
 0x7c5   : > { %5330 = vmatprep.subr.bf16.mxu0 %v7753_v62 }
 0x7c8   : > { %5331 = vmatpush1.bf16.msra.mxu0 %v7751_v41 }
 0x7c9   : > { %4982 = vmatmul.mubr.bf16.vlgmr.msra.gmra.mrb[0].mxu1 %v4635_v25  ;;  %5332 = vmatprep.subr.bf16.mxu0 %v7759_v27 }
 0x7ca   : > { %5442 = vmatpush1.bf16.msra.mxu1 %v7748_v34  ;;  %4991 = vmatprep.mubr.bf16.mxu1 %v8091_v21 }
 0x7cb   : > { %5443 = vmatprep.subr.bf16.mxu1 %v7756_v55  ;;  %4879 = vmatmul.mubr.bf16.gmra.mrb[4].mxu0 %v4636_v4 }
 0x7cc   : > { %4888 = vmatprep.mubr.bf16.mxu0 %v8091_v21  ;;  %5333 = vmatpush1.bf16.msra.mxu0 %v7757_v47 }
 0x7cd   : > { %5334 = vmatprep.subr.bf16.mxu0 %v7765_v58 }
 0x7ce   : > { %5444 = vmatpush1.bf16.msra.mxu1 %v7754_v8 }
 0x7cf   : > { %5445 = vmatprep.subr.bf16.mxu1 %v7762_v3 }
 0x7d0   : > { %5335 = vmatpush1.bf16.msra.mxu0 %v7763_v15 }
 0x7d1   : > { %4992 = vmatmul.mubr.bf16.gmra.mrb[4].mxu1 %v4636_v4  ;;  %5336 = vmatprep.subr.bf16.mxu0 %v7771_v20 }
 0x7d2   : > { %5001 = vmatprep.mubr.bf16.mxu1 %v8091_v21  ;;  %5446 = vmatpush1.bf16.msra.mxu1 %v7760_v42 }
 0x7d3   : > { %5447 = vmatprep.subr.bf16.mxu1 %v7768_v60  ;;  %4889 = vmatmul.mubr.bf16.gmra.mrb[8].mxu0 %v4637_v48 }
 0x7d4   : > { %4898 = vmatprep.mubr.bf16.mxu0 %v8091_v21  ;;  %5337 = vmatpush1.bf16.msra.mxu0 %v7769_v18 }
 0x7d5   : > { %5338 = vmatprep.subr.bf16.mxu0 %v7777_v22 }
 0x7d6   : > { %5448 = vmatpush1.bf16.msra.mxu1 %v7766_v33 }
 0x7d7   : > { %5449 = vmatprep.subr.bf16.mxu1 %v7774_v11 }
 0x7d8   : > { %5339 = vmatpush1.bf16.msra.mxu0 %v7775_v10 }
 0x7d9   : > { %5002 = vmatmul.mubr.bf16.gmra.mrb[8].mxu1 %v4637_v48  ;;  %5340 = vmatprep.subr.bf16.mxu0 %v7783_v51 }
 0x7da   : > { %5011 = vmatprep.mubr.bf16.mxu1 %v8091_v21  ;;  %5450 = vmatpush1.bf16.msra.mxu1 %v7772_v24 }
 0x7db   : > { %5451 = vmatprep.subr.bf16.mxu1 %v7780_v43  ;;  %4899 = vmatmul.mubr.bf16.gmra.mrb[12].mxu0 %v4638_v0 }
 0x7dc   : > { %4908 = vmatprep.mubr.bf16.mxu0 %v8091_v21  ;;  %5341 = vmatpush1.bf16.msra.mxu0 %v7781_v31 }
 0x7dd   : > { %5342 = vmatprep.subr.bf16.mxu0 %v7789_v7 }
 0x7de   : > { %5452 = vmatpush1.bf16.msra.mxu1 %v7778_v50 }
 0x7df   : > { %5453 = vmatprep.subr.bf16.mxu1 %v7786_v26 }
 0x7e0   : > { %5343 = vmatpush1.bf16.msra.mxu0 %v7787_v12 }
 0x7e1   : > { %5012 = vmatmul.mubr.bf16.gmra.mrb[12].mxu1 %v4638_v0 }
 0x7e2   : > { %5021 = vmatprep.mubr.bf16.mxu1 %v8091_v21  ;;  %5454 = vmatpush1.bf16.msra.mxu1 %v7784_v57 }
 0x7e3   : > { %5455 = vmatprep.subr.bf16.mxu1 %v7792_v14  ;;  %4909 = vmatmul.mubr.bf16.gmra.mrb[16].mxu0 %v4639_v44 }
 0x7e4   : > { %4918 = vmatprep.mubr.bf16.mxu0 %v8091_v21 }
 0x7e6   : > { %5456 = vmatpush1.bf16.msra.mxu1 %v7790_v61 }
 0x7e9   : > { %5022 = vmatmul.mubr.bf16.gmra.mrb[16].mxu1 %v4639_v44 }
 0x7ea   : > { %5031 = vmatprep.mubr.bf16.mxu1 %v8091_v21 }
 0x7eb   : > { %4919 = vmatmul.mubr.bf16.gmra.mrb[20].mxu0 %v4640_v45 }
 0x7ec   : > { %4928 = vmatprep.mubr.bf16.mxu0 %v8091_v21 }
 0x7f1   : > { %5032 = vmatmul.mubr.bf16.gmra.mrb[20].mxu1 %v4640_v45 }
 0x7f2   : > { %5041 = vmatprep.mubr.bf16.mxu1 %v8091_v21 }
 0x7f3   : > { %4929 = vmatmul.mubr.bf16.gmra.mrb[24].mxu0 %v4641_v6 }
 0x7f4   : > { %4938 = vmatprep.mubr.bf16.mxu0 %v8091_v21 }
 0x7f9   : > { %5042 = vmatmul.mubr.bf16.gmra.mrb[24].mxu1 %v4641_v6 }
 0x7fa   : > { %5051 = vmatprep.mubr.bf16.mxu1 %v8091_v21 }
 0x7fb   : > { %4939 = vmatmul.mubr.bf16.gmra.mrb[28].mxu0 %v4642_v56 }
 0x7fc   : > { %5360 = vmatprep.mubr.bf16.mxu0 %v8091_v21 }
 0x801   : > { %5052 = vmatmul.mubr.bf16.gmra.mrb[28].mxu1 %v4642_v56 }
 0x802   : > { %5473 = vmatprep.mubr.bf16.mxu1 %v8091_v21 }
 0x803   : > { %5361 = vmatmul.mubr.bf16.vlgmr.msra.gmra.mrb[0].mxu0 %v5127_v46 }
 0x804   : > { %5370 = vmatprep.mubr.bf16.mxu0 %v8091_v21 }
 0x809   : > { %5474 = vmatmul.mubr.bf16.vlgmr.msra.gmra.mrb[0].mxu1 %v5127_v46 }
 0x80a   : > { %5483 = vmatprep.mubr.bf16.mxu1 %v8091_v21 }
 0x80b   : > { %5371 = vmatmul.mubr.bf16.gmra.mrb[4].mxu0 %v5128_v38 }
 0x80c   : > { %5380 = vmatprep.mubr.bf16.mxu0 %v8091_v21 }
 0x811   : > { %5484 = vmatmul.mubr.bf16.gmra.mrb[4].mxu1 %v5128_v38 }
 0x812   : > { %5493 = vmatprep.mubr.bf16.mxu1 %v8091_v21 }
 0x813   : > { %5381 = vmatmul.mubr.bf16.gmra.mrb[8].mxu0 %v5129_v49 }
 0x814   : > { %5390 = vmatprep.mubr.bf16.mxu0 %v8091_v21 }
 0x819   : > { %5494 = vmatmul.mubr.bf16.gmra.mrb[8].mxu1 %v5129_v49 }
 0x81a   : > { %5503 = vmatprep.mubr.bf16.mxu1 %v8091_v21 }
 0x81b   : > { %5391 = vmatmul.mubr.bf16.gmra.mrb[12].mxu0 %v5130_v29 }
 0x81c   : > { %5400 = vmatprep.mubr.bf16.mxu0 %v8091_v21 }
 0x821   : > { %5504 = vmatmul.mubr.bf16.gmra.mrb[12].mxu1 %v5130_v29 }
 0x822   : > { %5513 = vmatprep.mubr.bf16.mxu1 %v8091_v21 }
 0x823   : > { %5401 = vmatmul.mubr.bf16.gmra.mrb[16].mxu0 %v5131_v37 }
 0x824   : > { %5410 = vmatprep.mubr.bf16.mxu0 %v8091_v21 }
 0x829   : > { %5514 = vmatmul.mubr.bf16.gmra.mrb[16].mxu1 %v5131_v37 }
 0x82a   : > { %5523 = vmatprep.mubr.bf16.mxu1 %v8091_v21 }
 0x82b   : > { %5411 = vmatmul.mubr.bf16.gmra.mrb[20].mxu0 %v5132_v28 }
 0x82c   : > { %5420 = vmatprep.mubr.bf16.mxu0 %v8091_v21 }
 0x831   : > { %5524 = vmatmul.mubr.bf16.gmra.mrb[20].mxu1 %v5132_v28 }
 0x832   : > { %5533 = vmatprep.mubr.bf16.mxu1 %v8091_v21 }
 0x833   : > { %5421 = vmatmul.mubr.bf16.gmra.mrb[24].mxu0 %v5133_v35 }
 0x834   : > { %5430 = vmatprep.mubr.bf16.mxu0 %v8091_v21 }
 0x839   : > { %5534 = vmatmul.mubr.bf16.gmra.mrb[24].mxu1 %v5133_v35 }
 0x83a   : > { %5543 = vmatprep.mubr.bf16.mxu1 %v8091_v21  ;;  %v9905_v21 = vrot.slane %v5618_v32, %v5626_v30 }
 0x83b   : > { %5431 = vmatmul.mubr.bf16.gmra.mrb[28].mxu0 %v5134_v53 }
 0x841   : > { %5544 = vmatmul.mubr.bf16.gmra.mrb[28].mxu1 %v5134_v53 }
 0x8d6   : > { %v5362_v63 = vpop.f32.mrb[0].mxu0 }
 0x8d7   : > { %v5640_v52 = vadd.f32 %v9901_v39, %v5362_v63  ;;  %v5364_v54 = vpop.f32.mrb[1].mxu0 }
 0x8d8   : > { %v5641_v59 = vadd.f32 %v9905_v21, %v5364_v54  ;;  %v5366_v2 = vpop.f32.mrb[2].mxu0 }
 0x8d9   : > { %5704 = vst [vmem:[%s9831_s19] sm:$0xff] %v5640_v52  ;;  %v5644_v62 = vadd.f32 %v9901_v39, %v5366_v2  ;;  %v5368_v41 = vpop.f32.mrb[3].mxu0 }
 0x8da   : > { %5705 = vst [vmem:[%s9831_s19 + $0x8] sm:$0xff] %v5641_v59  ;;  %v5645_v27 = vadd.f32 %v9905_v21, %v5368_v41 }
 0x8db   : > { %5708 = vst [vmem:[%s9831_s19 + $0x20] sm:$0xff] %v5644_v62 }
 0x8dc   : > { %v5475_v36 = vpop.f32.mrb[0].mxu1  ;;  %5709 = vst [vmem:[%s9831_s19 + $0x28] sm:$0xff] %v5645_v27 }
 0x8dd   : > { %v5642_v1 = vadd.f32 %v9903_v23, %v5475_v36  ;;  %v5477_v19 = vpop.f32.mrb[1].mxu1 }
 0x8de   : > { %v5643_v25 = vadd.f32 %v9907_v17, %v5477_v19  ;;  %v5479_v34 = vpop.f32.mrb[2].mxu1  ;;  %v5372_v4 = vpop.f32.mrb[4].mxu0 }
 0x8df   : > { %5706 = vst [vmem:[%s9831_s19 + $0x10] sm:$0xff] %v5642_v1  ;;  %v5646_v55 = vadd.f32 %v9903_v23, %v5479_v34  ;;  %v5481_v8 = vpop.f32.mrb[3].mxu1  ;;  %v5648_v42 = vadd.f32 %v9901_v39, %v5372_v4  ;;  %v5374_v60 = vpop.f32.mrb[5].mxu0 }
 0x8e0   : > { %5707 = vst [vmem:[%s9831_s19 + $0x18] sm:$0xff] %v5643_v25  ;;  %v5647_v3 = vadd.f32 %v9907_v17, %v5481_v8  ;;  %v5649_v33 = vadd.f32 %v9905_v21, %v5374_v60  ;;  %v5376_v11 = vpop.f32.mrb[6].mxu0 }
 0x8e1   : > { %5710 = vst [vmem:[%s9831_s19 + $0x30] sm:$0xff] %v5646_v55  ;;  %5712 = vst [vmem:[%s9831_s19 + $0x40] sm:$0xff] %v5648_v42  ;;  %v5652_v18 = vadd.f32 %v9901_v39, %v5376_v11  ;;  %v5378_v22 = vpop.f32.mrb[7].mxu0 }
 0x8e2   : > { %5711 = vst [vmem:[%s9831_s19 + $0x38] sm:$0xff] %v5647_v3  ;;  %5713 = vst [vmem:[%s9831_s19 + $0x48] sm:$0xff] %v5649_v33  ;;  %v5653_v10 = vadd.f32 %v9905_v21, %v5378_v22 }
 0x8e3   : > { %5716 = vst [vmem:[%s9831_s19 + $0x60] sm:$0xff] %v5652_v18 }
 0x8e4   : > { %v5485_v47 = vpop.f32.mrb[4].mxu1  ;;  %5717 = vst [vmem:[%s9831_s19 + $0x68] sm:$0xff] %v5653_v10 }
 0x8e5   : > { %v5650_v58 = vadd.f32 %v9903_v23, %v5485_v47  ;;  %v5487_v15 = vpop.f32.mrb[5].mxu1 }
 0x8e6   : > { %v5651_v20 = vadd.f32 %v9907_v17, %v5487_v15  ;;  %v5489_v48 = vpop.f32.mrb[6].mxu1  ;;  %v5382_v51 = vpop.f32.mrb[8].mxu0 }
 0x8e7   : > { %5714 = vst [vmem:[%s9831_s19 + $0x50] sm:$0xff] %v5650_v58  ;;  %v5654_v24 = vadd.f32 %v9903_v23, %v5489_v48  ;;  %v5491_v43 = vpop.f32.mrb[7].mxu1  ;;  %v5656_v0 = vadd.f32 %v9901_v39, %v5382_v51  ;;  %v5384_v57 = vpop.f32.mrb[9].mxu0 }
 0x8e8   : > { %5715 = vst [vmem:[%s9831_s19 + $0x58] sm:$0xff] %v5651_v20  ;;  %v5655_v50 = vadd.f32 %v9907_v17, %v5491_v43  ;;  %v5657_v14 = vadd.f32 %v9905_v21, %v5384_v57  ;;  %v5386_v61 = vpop.f32.mrb[10].mxu0 }
 0x8e9   : > { %5718 = vst [vmem:[%s9831_s19 + $0x70] sm:$0xff] %v5654_v24  ;;  %5720 = vst [vmem:[%s9831_s19 + $0x80] sm:$0xff] %v5656_v0  ;;  %v5660_v45 = vadd.f32 %v9901_v39, %v5386_v61  ;;  %v5388_v56 = vpop.f32.mrb[11].mxu0 }
 0x8ea   : > { %5719 = vst [vmem:[%s9831_s19 + $0x78] sm:$0xff] %v5655_v50  ;;  %5721 = vst [vmem:[%s9831_s19 + $0x88] sm:$0xff] %v5657_v14  ;;  %v5661_v38 = vadd.f32 %v9905_v21, %v5388_v56 }
 0x8eb   : > { %5724 = vst [vmem:[%s9831_s19 + $0xa0] sm:$0xff] %v5660_v45 }
 0x8ec   : > { %v5495_v26 = vpop.f32.mrb[8].mxu1  ;;  %5725 = vst [vmem:[%s9831_s19 + $0xa8] sm:$0xff] %v5661_v38 }
 0x8ed   : > { %v5658_v31 = vadd.f32 %v9903_v23, %v5495_v26  ;;  %v5497_v7 = vpop.f32.mrb[9].mxu1 }
 0x8ee   : > { %v5659_v12 = vadd.f32 %v9907_v17, %v5497_v7  ;;  %v5499_v44 = vpop.f32.mrb[10].mxu1  ;;  %v5392_v29 = vpop.f32.mrb[12].mxu0 }
 0x8ef   : > { %5722 = vst [vmem:[%s9831_s19 + $0x90] sm:$0xff] %v5658_v31  ;;  %v5662_v6 = vadd.f32 %v9903_v23, %v5499_v44  ;;  %v5501_v46 = vpop.f32.mrb[11].mxu1  ;;  %v5664_v28 = vadd.f32 %v9901_v39, %v5392_v29  ;;  %v5394_v53 = vpop.f32.mrb[13].mxu0 }
 0x8f0   : > { %5723 = vst [vmem:[%s9831_s19 + $0x98] sm:$0xff] %v5659_v12  ;;  %v5663_v49 = vadd.f32 %v9907_v17, %v5501_v46  ;;  %v5665_v16 = vadd.f32 %v9905_v21, %v5394_v53  ;;  %v5396_v13 = vpop.f32.mrb[14].mxu0 }
 0x8f1   : > { %5726 = vst [vmem:[%s9831_s19 + $0xb0] sm:$0xff] %v5662_v6  ;;  %5728 = vst [vmem:[%s9831_s19 + $0xc0] sm:$0xff] %v5664_v28  ;;  %v5668_v30 = vadd.f32 %v9901_v39, %v5396_v13  ;;  %v5398_v63 = vpop.f32.mrb[15].mxu0 }
 0x8f2   : > { %5727 = vst [vmem:[%s9831_s19 + $0xb8] sm:$0xff] %v5663_v49  ;;  %5729 = vst [vmem:[%s9831_s19 + $0xc8] sm:$0xff] %v5665_v16  ;;  %v5669_v52 = vadd.f32 %v9905_v21, %v5398_v63 }
 0x8f3   : > { %5732 = vst [vmem:[%s9831_s19 + $0xe0] sm:$0xff] %v5668_v30 }
 0x8f4   : > { %v5505_v37 = vpop.f32.mrb[12].mxu1  ;;  %5733 = vst [vmem:[%s9831_s19 + $0xe8] sm:$0xff] %v5669_v52 }
 0x8f5   : > { %v5666_v35 = vadd.f32 %v9903_v23, %v5505_v37  ;;  %v5507_v40 = vpop.f32.mrb[13].mxu1 }
 0x8f6   : > { %v5667_v9 = vadd.f32 %v9907_v17, %v5507_v40  ;;  %v5509_v32 = vpop.f32.mrb[14].mxu1  ;;  %v5402_v54 = vpop.f32.mrb[16].mxu0 }
 0x8f7   : > { %5730 = vst [vmem:[%s9831_s19 + $0xd0] sm:$0xff] %v5666_v35  ;;  %v5670_v5 = vadd.f32 %v9903_v23, %v5509_v32  ;;  %v5511_v36 = vpop.f32.mrb[15].mxu1  ;;  %v5672_v59 = vadd.f32 %v9901_v39, %v5402_v54  ;;  %v5404_v2 = vpop.f32.mrb[17].mxu0 }
 0x8f8   : > { %5731 = vst [vmem:[%s9831_s19 + $0xd8] sm:$0xff] %v5667_v9  ;;  %v5671_v1 = vadd.f32 %v9907_v17, %v5511_v36  ;;  %v5673_v62 = vadd.f32 %v9905_v21, %v5404_v2  ;;  %v5406_v41 = vpop.f32.mrb[18].mxu0 }
 0x8f9   : > { %5734 = vst [vmem:[%s9831_s19 + $0xf0] sm:$0xff] %v5670_v5  ;;  %5736 = vst [vmem:[%s9831_s19 + $0x100] sm:$0xff] %v5672_v59  ;;  %v5676_v27 = vadd.f32 %v9901_v39, %v5406_v41  ;;  %v5408_v4 = vpop.f32.mrb[19].mxu0 }
 0x8fa   : > { %5735 = vst [vmem:[%s9831_s19 + $0xf8] sm:$0xff] %v5671_v1  ;;  %5737 = vst [vmem:[%s9831_s19 + $0x108] sm:$0xff] %v5673_v62  ;;  %v5677_v42 = vadd.f32 %v9905_v21, %v5408_v4 }
 0x8fb   : > { %5740 = vst [vmem:[%s9831_s19 + $0x120] sm:$0xff] %v5676_v27 }
 0x8fc   : > { %v5515_v19 = vpop.f32.mrb[16].mxu1  ;;  %5741 = vst [vmem:[%s9831_s19 + $0x128] sm:$0xff] %v5677_v42 }
 0x8fd   : > { %v5674_v25 = vadd.f32 %v9903_v23, %v5515_v19  ;;  %v5517_v34 = vpop.f32.mrb[17].mxu1 }
 0x8fe   : > { %v5675_v55 = vadd.f32 %v9907_v17, %v5517_v34  ;;  %v5519_v8 = vpop.f32.mrb[18].mxu1  ;;  %v5412_v60 = vpop.f32.mrb[20].mxu0 }
 0x8ff   : > { %5738 = vst [vmem:[%s9831_s19 + $0x110] sm:$0xff] %v5674_v25  ;;  %v5678_v3 = vadd.f32 %v9903_v23, %v5519_v8  ;;  %v5521_v47 = vpop.f32.mrb[19].mxu1  ;;  %v5680_v33 = vadd.f32 %v9901_v39, %v5412_v60  ;;  %v5414_v11 = vpop.f32.mrb[21].mxu0 }
 0x900   : > { %5739 = vst [vmem:[%s9831_s19 + $0x118] sm:$0xff] %v5675_v55  ;;  %v5679_v58 = vadd.f32 %v9907_v17, %v5521_v47  ;;  %v5681_v18 = vadd.f32 %v9905_v21, %v5414_v11  ;;  %v5416_v22 = vpop.f32.mrb[22].mxu0 }
 0x901   : > { %5742 = vst [vmem:[%s9831_s19 + $0x130] sm:$0xff] %v5678_v3  ;;  %5744 = vst [vmem:[%s9831_s19 + $0x140] sm:$0xff] %v5680_v33  ;;  %v5684_v10 = vadd.f32 %v9901_v39, %v5416_v22  ;;  %v5418_v51 = vpop.f32.mrb[23].mxu0 }
 0x902   : > { %5743 = vst [vmem:[%s9831_s19 + $0x138] sm:$0xff] %v5679_v58  ;;  %5745 = vst [vmem:[%s9831_s19 + $0x148] sm:$0xff] %v5681_v18  ;;  %v5685_v0 = vadd.f32 %v9905_v21, %v5418_v51 }
 0x903   : > { %5748 = vst [vmem:[%s9831_s19 + $0x160] sm:$0xff] %v5684_v10 }
 0x904   : > { %v5525_v15 = vpop.f32.mrb[20].mxu1  ;;  %5749 = vst [vmem:[%s9831_s19 + $0x168] sm:$0xff] %v5685_v0 }
 0x905   : > { %v5682_v20 = vadd.f32 %v9903_v23, %v5525_v15  ;;  %v5527_v48 = vpop.f32.mrb[21].mxu1 }
 0x906   : > { %v5683_v24 = vadd.f32 %v9907_v17, %v5527_v48  ;;  %v5529_v43 = vpop.f32.mrb[22].mxu1  ;;  %v5422_v57 = vpop.f32.mrb[24].mxu0 }
 0x907   : > { %5746 = vst [vmem:[%s9831_s19 + $0x150] sm:$0xff] %v5682_v20  ;;  %v5686_v50 = vadd.f32 %v9903_v23, %v5529_v43  ;;  %v5531_v26 = vpop.f32.mrb[23].mxu1  ;;  %v5688_v14 = vadd.f32 %v9901_v39, %v5422_v57  ;;  %v5424_v61 = vpop.f32.mrb[25].mxu0 }
 0x908   : > { %5747 = vst [vmem:[%s9831_s19 + $0x158] sm:$0xff] %v5683_v24  ;;  %v5687_v31 = vadd.f32 %v9907_v17, %v5531_v26  ;;  %v5689_v45 = vadd.f32 %v9905_v21, %v5424_v61  ;;  %v5426_v56 = vpop.f32.mrb[26].mxu0 }
 0x909   : > { %5750 = vst [vmem:[%s9831_s19 + $0x170] sm:$0xff] %v5686_v50  ;;  %5752 = vst [vmem:[%s9831_s19 + $0x180] sm:$0xff] %v5688_v14  ;;  %v5692_v38 = vadd.f32 %v9901_v39, %v5426_v56  ;;  %v5428_v29 = vpop.f32.mrb[27].mxu0 }
 0x90a   : > { %5751 = vst [vmem:[%s9831_s19 + $0x178] sm:$0xff] %v5687_v31  ;;  %5753 = vst [vmem:[%s9831_s19 + $0x188] sm:$0xff] %v5689_v45  ;;  %v5693_v28 = vadd.f32 %v9905_v21, %v5428_v29 }
 0x90b   : > { %5756 = vst [vmem:[%s9831_s19 + $0x1a0] sm:$0xff] %v5692_v38 }
 0x90c   : > { %v5535_v7 = vpop.f32.mrb[24].mxu1  ;;  %5757 = vst [vmem:[%s9831_s19 + $0x1a8] sm:$0xff] %v5693_v28 }
 0x90d   : > { %v5690_v12 = vadd.f32 %v9903_v23, %v5535_v7  ;;  %v5537_v44 = vpop.f32.mrb[25].mxu1 }
 0x90e   : > { %v5691_v6 = vadd.f32 %v9907_v17, %v5537_v44  ;;  %v5539_v46 = vpop.f32.mrb[26].mxu1  ;;  %v5432_v53 = vpop.f32.mrb[28].mxu0 }
 0x90f   : > { %5754 = vst [vmem:[%s9831_s19 + $0x190] sm:$0xff] %v5690_v12  ;;  %v5694_v49 = vadd.f32 %v9903_v23, %v5539_v46  ;;  %v5541_v37 = vpop.f32.mrb[27].mxu1  ;;  %v5696_v16 = vadd.f32 %v9901_v39, %v5432_v53  ;;  %v5434_v13 = vpop.f32.mrb[29].mxu0 }
 0x910   : > { %5755 = vst [vmem:[%s9831_s19 + $0x198] sm:$0xff] %v5691_v6  ;;  %v5695_v35 = vadd.f32 %v9907_v17, %v5541_v37  ;;  %v5697_v30 = vadd.f32 %v9905_v21, %v5434_v13  ;;  %v5436_v63 = vpop.f32.mrb[30].mxu0 }
 0x911   : > { %5758 = vst [vmem:[%s9831_s19 + $0x1b0] sm:$0xff] %v5694_v49  ;;  %5760 = vst [vmem:[%s9831_s19 + $0x1c0] sm:$0xff] %v5696_v16  ;;  %v5700_v52 = vadd.f32 %v9901_v39, %v5436_v63  ;;  %v5438_v54 = vpop.f32.mrb[31].mxu0 }
 0x912   : > { %5759 = vst [vmem:[%s9831_s19 + $0x1b8] sm:$0xff] %v5695_v35  ;;  %5761 = vst [vmem:[%s9831_s19 + $0x1c8] sm:$0xff] %v5697_v30  ;;  %v5701_v59 = vadd.f32 %v9905_v21, %v5438_v54 }
 0x913   : > { %5764 = vst [vmem:[%s9831_s19 + $0x1e0] sm:$0xff] %v5700_v52 }
 0x914   : > { %v5545_v40 = vpop.f32.mrb[28].mxu1  ;;  %5765 = vst [vmem:[%s9831_s19 + $0x1e8] sm:$0xff] %v5701_v59 }
 0x915   : > { %v5698_v9 = vadd.f32 %v9903_v23, %v5545_v40  ;;  %v5547_v32 = vpop.f32.mrb[29].mxu1 }
 0x916   : > { %v5699_v5 = vadd.f32 %v9907_v17, %v5547_v32  ;;  %v5549_v36 = vpop.f32.mrb[30].mxu1 }
 0x917   : > { %5762 = vst [vmem:[%s9831_s19 + $0x1d0] sm:$0xff] %v5698_v9  ;;  %v5702_v1 = vadd.f32 %v9903_v23, %v5549_v36  ;;  %v5551_v19 = vpop.f32.mrb[31].mxu1 }
 0x918   : > { %5763 = vst [vmem:[%s9831_s19 + $0x1d8] sm:$0xff] %v5699_v5  ;;  %v5703_v25 = vadd.f32 %v9907_v17, %v5551_v19 }
 0x919   : > { %5766 = vst [vmem:[%s9831_s19 + $0x1f0] sm:$0xff] %v5702_v1 }
 0x91a   : > { %5767 = vst [vmem:[%s9831_s19 + $0x1f8] sm:$0xff] %v5703_v25 }
 0x91b PF: > { %s10275_s13 = sld [smem:[#allocation20_spill]]  ;;  %s10276_s28 = sld [smem:[#allocation21_spill]] }
 0x91c   : > { %s10278_s8 = sld [smem:[#allocation22_spill]]  ;;  %s5785_s21 = sshll.u32 %s9831_s19, 4  ;;  %s10040_s21 = int_to_ptr.vmem [resolvable:$true] %s5785_s21 }
 0x91d   : > { %s10279_s5 = sld [smem:[#allocation64_spill]]  ;;  %s10049_s18 = scalar_lea.sflag [#allocation5], %s400_s12 }
 0x91e   : > { %s7935_s7 = scalar_lea.vmem %s10040_s21, 8192  ;;  %s8092_s19 = smov [#allocation12]  }
 0x91f   : > { %p7936_p6 = scmp.ne.s32.totalorder %s10040_s21, %s7935_s7 }
 0x921   : > { %s6307_s24 = sshll.u32 %s10275_s13, 6  ;;  %s6297_s23 = sshll.u32 %s10276_s28, 7 }
 0x922   : > { %s5782_s26 = sadd.s32 %s6307_s24, %s6297_s23  ;;  %p10280_p10 = scmp.ne.s32.totalorder %s10278_s8, 0 }
 0x923   : > { %s6298_s20 = sshll.u32 %s5782_s26, 7  ;;  %s7939_s13 = sshll.u32 %s8092_s19, 4  ;;  %s7940_s13 = int_to_ptr.vmem [resolvable:$false] %s7939_s13 }
 0x924   : > { %s10045_s22 = scalar_lea.hbm %s10279_s5, %s6298_s20  ;;  %p7937_p13 = pnand %p7936_p6, %p10280_p10 }
 0x925   : > { %s7941_s28 = scalar_lea.vmem %s7940_s13, 16384  ;;  %p7942_p0 = scmp.lt.s32.totalorder %s10040_s21, %s7940_s13 }
 0x926   : > { %p7938_p11 = pneg %p7937_p13  ;;  %p7943_p3 = scmp.lt.s32.totalorder %s7941_s28, %s7935_s7 }
 0x928   : > { %p7944_p7 = por %p7943_p3, %p7942_p0 }
 0x92a   : > { %p7945_p9 = pnand %p7944_p7, %p7938_p11 }
 0x92c   : > { %7948 = shalt.err (!%p7945_p9)
}
 0x92d   : > { %s7949_s12 = scalar_lea.hbm %s10045_s22, 8192  ;;  %s7953_s23 = scalar_lea.hbm %s10279_s5, 32768 }
 0x92e   : > { %p7950_p2 = scmp.ne.s32.totalorder %s10045_s22, %s7949_s12  ;;  %p7954_p12 = scmp.lt.u32.totalorder %s10045_s22, %s10279_s5 }
 0x92f   : > { %p7955_p4 = scmp.lt.u32.totalorder %s7953_s23, %s7949_s12  ;;  %p7957_p6 = scmp.lt.u32.totalorder %s7949_s12, %s10045_s22 }
 0x930   : > { %p7951_p1 = pnand %p7950_p2, %p10280_p10 }
 0x931   : > { %p7956_p5 = por %p7955_p4, %p7954_p12 }
 0x932   : > { %p7952_p8 = pneg %p7951_p1 }
 0x933   : > { %p7958_p13 = por %p7957_p6, %p7956_p5 }
 0x935   : > { %p7959_p11 = pnand %p7958_p13, %p7952_p8 }
 0x937   : > { %7962 = shalt.err (!%p7959_p11)
}
 0x938   : > { %s8093_s11 = smov 512   ;;  %s8094_s27 = smov 32  }
 0x939   : > { %6934 = dma.vmem_to_hbm [thread:$0]  (%p10280_p10), %s10040_s21, 8192, %s10045_s22, %s10049_s18, %s8093_s11, %s8093_s11, %s8094_s27  }
 0x93a PF: > { %s10281_s7 = sld [smem:[#allocation17_spill]]  ;;  %s10282_s19 = sld [smem:[#allocation23_spill]] }
 0x93b   : > { %p6966_p0 = scmp.ge.s32.totalorder %s8081_s17, 2 }
 0x940   : > { %s5800_s13 = sand.u32 1, %s10281_s7   ;;  %p10283_p3 = scmp.ne.s32.totalorder %s10282_s19, 0 }
 0x941   : > { %s5801_s28 = scalar_lea.sflag [#allocation5], %s5800_s13 }
 0x942   : > { %p6954_p7 = pnand %p6966_p0, %p10283_p3 }
 0x944   : > { %8028 = dma.done.wait (!%p6954_p7), %s5801_s28, 8192  }
 0x945   : > { %8030 = vsyncadd (!%p6954_p7), %s5801_s28, 4294959104  ;;  %s26_s17 = sadd.s32 1, %s8081_s17   ;;  %s10285_s27 = sld [smem:[#allocation18_spill]] }
 0x946   : > { %p10078_p9 = scmp.ge.s32.totalorder %s26_s17, 18   ;;  %s10286_s8 = smov %s10300_s30 }
 0x947   : > { %s10288_s28 = smov %s8041_s29  ;;  %s10289_s29 = smov %s8375_s3 }
 0x948   : > { %s10290_s30 = smov %s8049_s9  ;;  %s10291_s9 = smov %s8053_s10 }
 0x949   : > { %s10292_s10 = smov %s8372_s2  ;;  %s10293_s11 = smov %s8069_s14 }
 0x94a   : > { %s10294_s12 = smov %s8073_s15  ;;  %s10295_s13 = smov %s8077_s16 }
 0x94b   : > { %s10296_s14 = smov %s10286_s8  ;;  %s10297_s15 = smov %s10304_s25 }
 0x94c   : > { %s10298_s16 = smov %s10308_s1  ;;  %25 = sbr.rel (!%p10078_p9) target bundleno = 20 (0x14), region = 130 }
 0x953   :  { %5806 = vsyncpa [#allocation4], 1 }
 0x954   :  { %5808 = vsyncpa [#allocation4 + $0x1], 1 }
 0x955   :  { %5809 = vsyncpa [#allocation7], 1 }
 0x956   :  { %5810 = vsyncpa [#allocation10], 1 }
 0x957   :  { %5811 = vsyncpa [#allocation5], 1 }
 0x958   :  { %5813 = vsyncpa [#allocation5 + $0x1], 1 }

</bundles_post_ra>
